<compile_context>
chip_gen: v7x
topology: tpu7x:2x2x1
jax: 0.10.0
libtpu: 0.0.40
codegen_flags: <defaults>
</compile_context>

<pallas_src>
import functools
import numpy as np
import jax
import jax.numpy as jnp
from jax.experimental import pallas as pl
from jax.experimental.pallas import tpu as pltpu

LANE = 128


def _round_up(v, m):
    return ((v + m - 1) // m) * m


def _choose_tm(m):
    """Row-tile size: big tiles for large M (pipeline efficiency), >=2 grid
    steps whenever M allows (v7x megacore), multiples of 16 (bf16 sublanes)."""
    if m >= 1024:
        return 512
    if m >= 256:
        return 128
    return max(16, _round_up(_round_up(m, 2) // 2, 16))


# ---------------------------------------------------------------------------
# Pallas kernels
# ---------------------------------------------------------------------------
def _gemm_kernel(x_ref, w_ref, b_ref, o_ref, *, post_relu):
    # bf16 x / bf16 w on the MXU, fp32 accumulation + fused bias/ReLU epilogue.
    acc = jnp.dot(x_ref[...], w_ref[...], preferred_element_type=jnp.float32)
    acc = acc + b_ref[...]
    if post_relu:
        acc = jnp.maximum(acc, 0.0)
    o_ref[...] = acc


def _resblock_kernel(p_ref, r_ref, w3_ref, w1_ref, o_ref, *, final_relu):
    # Fused residual block: h = relu(patches @ W3); out = h @ W1 + x [; relu].
    # p_ref already holds im2col(relu(x)) patches (bf16); r_ref is raw x (f32).
    h = jnp.dot(p_ref[...], w3_ref[...], preferred_element_type=jnp.float32)
    h = jnp.maximum(h, 0.0).astype(jnp.bfloat16)
    acc = jnp.dot(h, w1_ref[...], preferred_element_type=jnp.float32)
    acc = acc + r_ref[...]
    if final_relu:
        acc = jnp.maximum(acc, 0.0)
    o_ref[...] = acc


def _pallas_gemm(patches, w, b, *, post_relu):
    """out = relu?(patches @ w + b).  patches/w bf16, b/out fp32, N lane-dense."""
    m, k = patches.shape
    _, n_pad = w.shape
    tm = _choose_tm(m)
    m_pad = _round_up(m, tm)
    if m_pad != m:
        patches = jnp.pad(patches, ((0, m_pad - m), (0, 0)))
    out = pl.pallas_call(
        functools.partial(_gemm_kernel, post_relu=post_relu),
        out_shape=jax.ShapeDtypeStruct((m_pad, n_pad), jnp.float32),
        grid=(m_pad // tm,),
        in_specs=[pl.BlockSpec((tm, k), lambda i: (i, 0)),
                  pl.BlockSpec((k, n_pad), lambda i: (0, 0)),
                  pl.BlockSpec((1, n_pad), lambda i: (0, 0))],
        out_specs=pl.BlockSpec((tm, n_pad), lambda i: (i, 0)),
        compiler_params=pltpu.CompilerParams(
            dimension_semantics=("parallel",)),
    )(patches, w, b)
    return out[:m] if m_pad != m else out


def _pallas_resblock(patches, resid, w3, w1, *, final_relu):
    """Fused residual block GEMM chain (two matmuls, one kernel launch)."""
    m, k3 = patches.shape
    rh = w3.shape[1]
    ch_pad = w1.shape[1]
    tm = _choose_tm(m)
    m_pad = _round_up(m, tm)
    if m_pad != m:
        patches = jnp.pad(patches, ((0, m_pad - m), (0, 0)))
        resid = jnp.pad(resid, ((0, m_pad - m), (0, 0)))
    out = pl.pallas_call(
        functools.partial(_resblock_kernel, final_relu=final_relu),
        out_shape=jax.ShapeDtypeStruct((m_pad, ch_pad), jnp.float32),
        grid=(m_pad // tm,),
        in_specs=[pl.BlockSpec((tm, k3), lambda i: (i, 0)),
                  pl.BlockSpec((tm, ch_pad), lambda i: (i, 0)),
                  pl.BlockSpec((k3, rh), lambda i: (0, 0)),
                  pl.BlockSpec((rh, ch_pad), lambda i: (0, 0))],
        out_specs=pl.BlockSpec((tm, ch_pad), lambda i: (i, 0)),
        compiler_params=pltpu.CompilerParams(
            dimension_semantics=("parallel",)),
    )(patches, resid, w3, w1)
    return out[:m] if m_pad != m else out


# ---------------------------------------------------------------------------
# Conv glue (im2col in bf16) in plain JAX
# ---------------------------------------------------------------------------
def _im2col(x, kh, kw, stride, padding):
    """x: NHWC -> (N*OH*OW, kh*kw*C), column order (kh, kw, cin)."""
    n, h, w, c = x.shape
    if padding > 0:
        x = jnp.pad(x, ((0, 0), (padding, padding), (padding, padding), (0, 0)))
    hp, wp = h + 2 * padding, w + 2 * padding
    oh = (hp - kh) // stride + 1
    ow = (wp - kw) // stride + 1
    taps = []
    for i in range(kh):
        for j in range(kw):
            taps.append(x[:, i:i + stride * (oh - 1) + 1:stride,
                          j:j + stride * (ow - 1) + 1:stride, :])
    patches = jnp.stack(taps, axis=3)                   # (N, OH, OW, kh*kw, C)
    return patches.reshape(n * oh * ow, kh * kw * c), (n, oh, ow)


def conv_gemm(x, prep, ksize, stride, padding, *, post_relu=False):
    """Ordinary conv: bf16 im2col + fused Pallas GEMM."""
    patches, (n, oh, ow) = _im2col(x.astype(jnp.bfloat16),
                                   ksize, ksize, stride, padding)
    out = _pallas_gemm(patches, prep["w"], prep["b"], post_relu=post_relu)
    cout = prep["n"]
    return out[:, :cout].reshape(n, oh, ow, cout)


def residual_block(x, prep, *, final_relu):
    """x + Conv1x1(ReLU(Conv3x3(ReLU(x)))), fused in one pallas_call."""
    n, h, w, ch = x.shape
    patches, _ = _im2col(jnp.maximum(x, 0.0).astype(jnp.bfloat16), 3, 3, 1, 1)
    m = n * h * w
    resid = x.reshape(m, ch)
    ch_pad = prep["chpad"]
    if ch_pad != ch:
        resid = jnp.pad(resid, ((0, 0), (0, ch_pad - ch)))
    out = _pallas_resblock(patches, resid, prep["w3"], prep["w1"],
                           final_relu=final_relu)
    return out[:, :ch].reshape(n, h, w, ch)


def conv_transpose_phase(x, prep, *, post_relu=False):
    """ConvTranspose2d(4x4, stride 2, pad 1) via stride-phase decomposition.

    All 4 phases are packed along N of a single lane-dense GEMM over a shared
    3x3/pad-1 patch matrix; outputs are interleaved (depth-to-space)."""
    n, h, w, _ = x.shape
    cout = prep["cout"]
    patches, _ = _im2col(x.astype(jnp.bfloat16), 3, 3, 1, 1)
    out = _pallas_gemm(patches, prep["w"], prep["b"], post_relu=post_relu)
    out = out[:, :4 * cout].reshape(n, h, w, 2, 2, cout)
    out = out.transpose(0, 1, 3, 2, 4, 5).reshape(n, 2 * h, 2 * w, cout)
    return out


# ---------------------------------------------------------------------------
# Parameter init (PyTorch layout, deterministic) + one-time GEMM-layout prep
# ---------------------------------------------------------------------------
def _conv_init(key, cout, cin, kh, kw, bias=True):
    k1, k2 = jax.random.split(key)
    bound = 1.0 / np.sqrt(cin * kh * kw)
    w = jax.random.uniform(k1, (cout, cin, kh, kw), jnp.float32, -bound, bound)
    b = (jax.random.uniform(k2, (cout,), jnp.float32, -bound, bound)
         if bias else jnp.zeros((cout,), jnp.float32))
    return w, b


def _convT_init(key, cin, cout, kh, kw):
    k1, k2 = jax.random.split(key)
    bound = 1.0 / np.sqrt(cout * kh * kw)
    w = jax.random.uniform(k1, (cin, cout, kh, kw), jnp.float32, -bound, bound)
    b = jax.random.uniform(k2, (cout,), jnp.float32, -bound, bound)
    return w, b


def init_params(key, num_hiddens, num_res_layers, num_res_hiddens, in_ch):
    keys = iter(jax.random.split(key, 16 + 4 * num_res_layers))
    p = {}
    nh2 = num_hiddens // 2
    p["e_conv1_w"], p["e_conv1_b"] = _conv_init(next(keys), nh2, in_ch, 4, 4)
    p["e_conv2_w"], p["e_conv2_b"] = _conv_init(next(keys), num_hiddens, nh2, 4, 4)
    p["e_conv3_w"], p["e_conv3_b"] = _conv_init(next(keys), num_hiddens, num_hiddens, 3, 3)
    p["e_res"] = []
    for _ in range(num_res_layers):
        w3, _ = _conv_init(next(keys), num_res_hiddens, num_hiddens, 3, 3, bias=False)
        w1, _ = _conv_init(next(keys), num_hiddens, num_res_hiddens, 1, 1, bias=False)
        p["e_res"].append((w3, w1))
    p["d_conv1_w"], p["d_conv1_b"] = _conv_init(next(keys), num_hiddens, num_hiddens, 3, 3)
    p["d_res"] = []
    for _ in range(num_res_layers):
        w3, _ = _conv_init(next(keys), num_res_hiddens, num_hiddens, 3, 3, bias=False)
        w1, _ = _conv_init(next(keys), num_hiddens, num_res_hiddens, 1, 1, bias=False)
        p["d_res"].append((w3, w1))
    p["d_ct1_w"], p["d_ct1_b"] = _convT_init(next(keys), num_hiddens, nh2, 4, 4)
    p["d_ct2_w"], p["d_ct2_b"] = _convT_init(next(keys), nh2, in_ch, 4, 4)
    return p


def _prep_conv(w, b):
    """PyTorch (Cout,Cin,KH,KW) -> bf16 (KH*KW*Cin, Npad) + f32 (1, Npad)."""
    cout, cin, kh, kw = w.shape
    w_mat = jnp.transpose(w, (2, 3, 1, 0)).reshape(kh * kw * cin, cout)
    n_pad = _round_up(cout, LANE)
    w_mat = jnp.pad(w_mat, ((0, 0), (0, n_pad - cout))).astype(jnp.bfloat16)
    b_mat = jnp.pad(b, (0, n_pad - cout)).reshape(1, n_pad).astype(jnp.float32)
    return {"w": w_mat, "b": b_mat, "n": cout}


def _prep_res(w3, w1):
    """Residual block weights (bias-free) in fused-kernel layout."""
    rh, ch = w3.shape[0], w3.shape[1]
    w3_mat = jnp.transpose(w3, (2, 3, 1, 0)).reshape(9 * ch, rh).astype(jnp.bfloat16)
    ch_pad = _round_up(ch, LANE)
    w1_mat = jnp.transpose(w1, (2, 3, 1, 0)).reshape(rh, ch)
    w1_mat = jnp.pad(w1_mat, ((0, 0), (0, ch_pad - ch))).astype(jnp.bfloat16)
    return {"w3": w3_mat, "w1": w1_mat, "ch": ch, "chpad": ch_pad}


def _prep_convT(w_t, bias):
    """ConvTranspose2d (Cin,Cout,4,4)/s2/p1 -> phase-packed (9*Cin, 4*Cout_pad).

    Output oy = 2*i + a, ox = 2*j + b; phase (a,b) uses original kernel taps
    kh = 3 - (a + 2*dt), kw = 3 - (b + 2*dj) placed at 3x3-window taps
    (a+dt, b+dj), unused taps zero.  Phases stacked along N (order a*2+b)."""
    cin, cout, kh_, kw_ = w_t.shape
    assert kh_ == 4 and kw_ == 4, "phase decomposition assumes 4x4, stride 2, pad 1"
    w9 = jnp.zeros((3, 3, cin, 4 * cout), w_t.dtype)
    for a in range(2):
        for bb in range(2):
            ph = a * 2 + bb
            for dt in range(2):
                for dj in range(2):
                    kh = 3 - (a + 2 * dt)
                    kw = 3 - (bb + 2 * dj)
                    w9 = w9.at[a + dt, bb + dj, :,
                               ph * cout:(ph + 1) * cout].set(w_t[:, :, kh, kw])
    n_true = 4 * cout
    n_pad = _round_up(n_true, LANE)
    w_mat = jnp.pad(w9.reshape(9 * cin, n_true),
                    ((0, 0), (0, n_pad - n_true))).astype(jnp.bfloat16)
    b_mat = jnp.pad(jnp.tile(bias, 4),
                    (0, n_pad - n_true)).reshape(1, n_pad).astype(jnp.float32)
    return {"w": w_mat, "b": b_mat, "cout": cout}


def prepare_params(p):
    prep = {
        "e1": _prep_conv(p["e_conv1_w"], p["e_conv1_b"]),
        "e2": _prep_conv(p["e_conv2_w"], p["e_conv2_b"]),
        "e3": _prep_conv(p["e_conv3_w"], p["e_conv3_b"]),
        "e_res": [_prep_res(w3, w1) for (w3, w1) in p["e_res"]],
        "d1": _prep_conv(p["d_conv1_w"], p["d_conv1_b"]),
        "d_res": [_prep_res(w3, w1) for (w3, w1) in p["d_res"]],
        "dt1": _prep_convT(p["d_ct1_w"], p["d_ct1_b"]),
        "dt2": _prep_convT(p["d_ct2_w"], p["d_ct2_b"]),
    }
    return prep


# ---------------------------------------------------------------------------
# Forward pass (Encoder -> Decoder), matching the PyTorch module
# ---------------------------------------------------------------------------
def _residual_stack(prep_list, x):
    n = len(prep_list)
    for idx, rp in enumerate(prep_list):
        x = residual_block(x, rp, final_relu=(idx == n - 1))
    return x


def encoder_forward(prep, x):
    x = conv_gemm(x, prep["e1"], 4, 2, 1, post_relu=True)
    x = conv_gemm(x, prep["e2"], 4, 2, 1, post_relu=True)
    x = conv_gemm(x, prep["e3"], 3, 1, 1, post_relu=False)
    return _residual_stack(prep["e_res"], x)


def decoder_forward(prep, z):
    x = conv_gemm(z, prep["d1"], 3, 1, 1, post_relu=False)
    x = _residual_stack(prep["d_res"], x)
    x = conv_transpose_phase(x, prep["dt1"], post_relu=True)
    return conv_transpose_phase(x, prep["dt2"], post_relu=False)


def autoencoder_forward(prep, x_nchw):
    x = jnp.transpose(x_nchw, (0, 2, 3, 1))     # NCHW -> NHWC
    z = encoder_forward(prep, x)
    y = decoder_forward(prep, z)
    return jnp.transpose(y, (0, 3, 1, 2))       # NHWC -> NCHW


if __name__ == "__main__":
    key = jax.random.PRNGKey(0)
    # Small shapes consistent with the module's forward (RGB images).
    num_hiddens, num_residual_layers, num_residual_hiddens = 128, 2, 32
    in_channels, batch, spatial = 3, 2, 16

    pkey, xkey = jax.random.split(key)
    params = init_params(pkey, num_hiddens, num_residual_layers,
                         num_residual_hiddens, in_channels)
    prep = prepare_params(params)
    x = jax.random.normal(xkey, (batch, in_channels, spatial, spatial),
                          jnp.float32)

    fwd = jax.jit(lambda xx: autoencoder_forward(prep, xx))
    out = jax.block_until_ready(fwd(x))
    assert out.shape == x.shape and out.dtype == jnp.float32
    print("KERNEL_OK")
</pallas_src>

<mosaic_0001>
module attributes {stable_mosaic.version = 11 : i64} {
  func.func @_gemm_kernel(%arg0: i32, %arg1: memref<64x48xbf16, #tpu.memory_space<vmem>>, %arg2: memref<48x128xbf16, #tpu.memory_space<vmem>>, %arg3: memref<1x128xf32, #tpu.memory_space<vmem>>, %arg4: memref<64x128xf32, #tpu.memory_space<vmem>>) attributes {dimension_semantics = [#tpu.dimension_semantics<parallel>], iteration_bounds = array<i64: 2>, scalar_prefetch = 0 : i64, scratch_operands = 0 : i64, tpu.core_type = #tpu.core_type<tc>, window_params = [{transform_indices = @transform_0, window_bounds = array<i64: 64, 48>}, {pipeline_mode = #tpu.pipeline_mode<synchronous>, transform_indices = @transform_1, window_bounds = array<i64: 48, 128>}, {pipeline_mode = #tpu.pipeline_mode<synchronous>, transform_indices = @transform_2, window_bounds = array<i64: 1, 128>}, {transform_indices = @transform_3, window_bounds = array<i64: 64, 128>}]} {
    %c0 = arith.constant 0 : index
    %c0_0 = arith.constant 0 : index
    %0 = vector.load %arg1[%c0, %c0_0] : memref<64x48xbf16, #tpu.memory_space<vmem>>, vector<64x48xbf16>
    %c0_1 = arith.constant 0 : index
    %c0_2 = arith.constant 0 : index
    %1 = vector.load %arg2[%c0_1, %c0_2] : memref<48x128xbf16, #tpu.memory_space<vmem>>, vector<48x128xbf16>
    %cst = arith.constant dense<0.000000e+00> : vector<64x128xf32>
    %2 = tpu.matmul %0, %1, %cst {dimension_numbers = #tpu.dot_dimension_numbers<[1], [0], [0], [1], [0, 0, 1, 1], [], []>} : vector<64x48xbf16>, vector<48x128xbf16>, vector<64x128xf32> -> vector<64x128xf32>
    %c0_3 = arith.constant 0 : index
    %c0_4 = arith.constant 0 : index
    %3 = vector.load %arg3[%c0_3, %c0_4] : memref<1x128xf32, #tpu.memory_space<vmem>>, vector<1x128xf32>
    %4 = vector.broadcast %3 : vector<1x128xf32> to vector<64x128xf32>
    %5 = arith.addf %2, %4 : vector<64x128xf32>
    %cst_5 = arith.constant 0.000000e+00 : f32
    %6 = vector.broadcast %cst_5 : f32 to vector<64x128xf32>
    %7 = arith.maximumf %5, %6 : vector<64x128xf32>
    %c0_6 = arith.constant 0 : index
    %c0_7 = arith.constant 0 : index
    %8 = vector.load %arg4[%c0_6, %c0_7] : memref<64x128xf32, #tpu.memory_space<vmem>>, vector<64x128xf32>
    tpu.vector_store %arg4[%c0_6, %c0_7], %7 {strides = array<i32>} : memref<64x128xf32, #tpu.memory_space<vmem>>, vector<64x128xf32>,
    return
  }
  func.func @transform_0(%arg0: i32) -> (i32, i32) {
    %c0_i32 = arith.constant 0 : i32
    %c0_i32_0 = arith.constant 0 : i32
    return %arg0, %c0_i32 : i32, i32
  }
  func.func @transform_1(%arg0: i32) -> (i32, i32) {
    %c0_i32 = arith.constant 0 : i32
    %c0_i32_0 = arith.constant 0 : i32
    %c0_i32_1 = arith.constant 0 : i32
    return %c0_i32, %c0_i32_0 : i32, i32
  }
  func.func @transform_2(%arg0: i32) -> (i32, i32) {
    %c0_i32 = arith.constant 0 : i32
    %c0_i32_0 = arith.constant 0 : i32
    %c0_i32_1 = arith.constant 0 : i32
    return %c0_i32, %c0_i32_0 : i32, i32
  }
  func.func @transform_3(%arg0: i32) -> (i32, i32) {
    %c0_i32 = arith.constant 0 : i32
    %c0_i32_0 = arith.constant 0 : i32
    return %arg0, %c0_i32 : i32, i32
  }
}

module attributes {stable_mosaic.version = 11 : i64} {
  func.func @_gemm_kernel(%arg0: i32, %arg1: memref<16x1024xbf16, #tpu.memory_space<vmem>>, %arg2: memref<1024x128xbf16, #tpu.memory_space<vmem>>, %arg3: memref<1x128xf32, #tpu.memory_space<vmem>>, %arg4: memref<16x128xf32, #tpu.memory_space<vmem>>) attributes {dimension_semantics = [#tpu.dimension_semantics<parallel>], iteration_bounds = array<i64: 2>, scalar_prefetch = 0 : i64, scratch_operands = 0 : i64, tpu.core_type = #tpu.core_type<tc>, window_params = [{transform_indices = @transform_0, window_bounds = array<i64: 16, 1024>}, {pipeline_mode = #tpu.pipeline_mode<synchronous>, transform_indices = @transform_1, window_bounds = array<i64: 1024, 128>}, {pipeline_mode = #tpu.pipeline_mode<synchronous>, transform_indices = @transform_2, window_bounds = array<i64: 1, 128>}, {transform_indices = @transform_3, window_bounds = array<i64: 16, 128>}]} {
    %c0 = arith.constant 0 : index
    %c0_0 = arith.constant 0 : index
    %0 = vector.load %arg1[%c0, %c0_0] : memref<16x1024xbf16, #tpu.memory_space<vmem>>, vector<16x1024xbf16>
    %c0_1 = arith.constant 0 : index
    %c0_2 = arith.constant 0 : index
    %1 = vector.load %arg2[%c0_1, %c0_2] : memref<1024x128xbf16, #tpu.memory_space<vmem>>, vector<1024x128xbf16>
    %cst = arith.constant dense<0.000000e+00> : vector<16x128xf32>
    %2 = tpu.matmul %0, %1, %cst {dimension_numbers = #tpu.dot_dimension_numbers<[1], [0], [0], [1], [0, 0, 1, 1], [], []>} : vector<16x1024xbf16>, vector<1024x128xbf16>, vector<16x128xf32> -> vector<16x128xf32>
    %c0_3 = arith.constant 0 : index
    %c0_4 = arith.constant 0 : index
    %3 = vector.load %arg3[%c0_3, %c0_4] : memref<1x128xf32, #tpu.memory_space<vmem>>, vector<1x128xf32>
    %4 = vector.broadcast %3 : vector<1x128xf32> to vector<16x128xf32>
    %5 = arith.addf %2, %4 : vector<16x128xf32>
    %cst_5 = arith.constant 0.000000e+00 : f32
    %6 = vector.broadcast %cst_5 : f32 to vector<16x128xf32>
    %7 = arith.maximumf %5, %6 : vector<16x128xf32>
    %c0_6 = arith.constant 0 : index
    %c0_7 = arith.constant 0 : index
    %8 = vector.load %arg4[%c0_6, %c0_7] : memref<16x128xf32, #tpu.memory_space<vmem>>, vector<16x128xf32>
    tpu.vector_store %arg4[%c0_6, %c0_7], %7 {strides = array<i32>} : memref<16x128xf32, #tpu.memory_space<vmem>>, vector<16x128xf32>,
    return
  }
  func.func @transform_0(%arg0: i32) -> (i32, i32) {
    %c0_i32 = arith.constant 0 : i32
    %c0_i32_0 = arith.constant 0 : i32
    return %arg0, %c0_i32 : i32, i32
  }
  func.func @transform_1(%arg0: i32) -> (i32, i32) {
    %c0_i32 = arith.constant 0 : i32
    %c0_i32_0 = arith.constant 0 : i32
    %c0_i32_1 = arith.constant 0 : i32
    return %c0_i32, %c0_i32_0 : i32, i32
  }
  func.func @transform_2(%arg0: i32) -> (i32, i32) {
    %c0_i32 = arith.constant 0 : i32
    %c0_i32_0 = arith.constant 0 : i32
    %c0_i32_1 = arith.constant 0 : i32
    return %c0_i32, %c0_i32_0 : i32, i32
  }
  func.func @transform_3(%arg0: i32) -> (i32, i32) {
    %c0_i32 = arith.constant 0 : i32
    %c0_i32_0 = arith.constant 0 : i32
    return %arg0, %c0_i32 : i32, i32
  }
}

module attributes {stable_mosaic.version = 11 : i64} {
  func.func @_gemm_kernel(%arg0: i32, %arg1: memref<16x1152xbf16, #tpu.memory_space<vmem>>, %arg2: memref<1152x128xbf16, #tpu.memory_space<vmem>>, %arg3: memref<1x128xf32, #tpu.memory_space<vmem>>, %arg4: memref<16x128xf32, #tpu.memory_space<vmem>>) attributes {dimension_semantics = [#tpu.dimension_semantics<parallel>], iteration_bounds = array<i64: 2>, scalar_prefetch = 0 : i64, scratch_operands = 0 : i64, tpu.core_type = #tpu.core_type<tc>, window_params = [{transform_indices = @transform_0, window_bounds = array<i64: 16, 1152>}, {pipeline_mode = #tpu.pipeline_mode<synchronous>, transform_indices = @transform_1, window_bounds = array<i64: 1152, 128>}, {pipeline_mode = #tpu.pipeline_mode<synchronous>, transform_indices = @transform_2, window_bounds = array<i64: 1, 128>}, {transform_indices = @transform_3, window_bounds = array<i64: 16, 128>}]} {
    %c0 = arith.constant 0 : index
    %c0_0 = arith.constant 0 : index
    %0 = vector.load %arg1[%c0, %c0_0] : memref<16x1152xbf16, #tpu.memory_space<vmem>>, vector<16x1152xbf16>
    %c0_1 = arith.constant 0 : index
    %c0_2 = arith.constant 0 : index
    %1 = vector.load %arg2[%c0_1, %c0_2] : memref<1152x128xbf16, #tpu.memory_space<vmem>>, vector<1152x128xbf16>
    %cst = arith.constant dense<0.000000e+00> : vector<16x128xf32>
    %2 = tpu.matmul %0, %1, %cst {dimension_numbers = #tpu.dot_dimension_numbers<[1], [0], [0], [1], [0, 0, 1, 1], [], []>} : vector<16x1152xbf16>, vector<1152x128xbf16>, vector<16x128xf32> -> vector<16x128xf32>
    %c0_3 = arith.constant 0 : index
    %c0_4 = arith.constant 0 : index
    %3 = vector.load %arg3[%c0_3, %c0_4] : memref<1x128xf32, #tpu.memory_space<vmem>>, vector<1x128xf32>
    %4 = vector.broadcast %3 : vector<1x128xf32> to vector<16x128xf32>
    %5 = arith.addf %2, %4 : vector<16x128xf32>
    %c0_5 = arith.constant 0 : index
    %c0_6 = arith.constant 0 : index
    %6 = vector.load %arg4[%c0_5, %c0_6] : memref<16x128xf32, #tpu.memory_space<vmem>>, vector<16x128xf32>
    tpu.vector_store %arg4[%c0_5, %c0_6], %5 {strides = array<i32>} : memref<16x128xf32, #tpu.memory_space<vmem>>, vector<16x128xf32>,
    return
  }
  func.func @transform_0(%arg0: i32) -> (i32, i32) {
    %c0_i32 = arith.constant 0 : i32
    %c0_i32_0 = arith.constant 0 : i32
    return %arg0, %c0_i32 : i32, i32
  }
  func.func @transform_1(%arg0: i32) -> (i32, i32) {
    %c0_i32 = arith.constant 0 : i32
    %c0_i32_0 = arith.constant 0 : i32
    %c0_i32_1 = arith.constant 0 : i32
    return %c0_i32, %c0_i32_0 : i32, i32
  }
  func.func @transform_2(%arg0: i32) -> (i32, i32) {
    %c0_i32 = arith.constant 0 : i32
    %c0_i32_0 = arith.constant 0 : i32
    %c0_i32_1 = arith.constant 0 : i32
    return %c0_i32, %c0_i32_0 : i32, i32
  }
  func.func @transform_3(%arg0: i32) -> (i32, i32) {
    %c0_i32 = arith.constant 0 : i32
    %c0_i32_0 = arith.constant 0 : i32
    return %arg0, %c0_i32 : i32, i32
  }
}

module attributes {stable_mosaic.version = 11 : i64} {
  func.func @_resblock_kernel(%arg0: i32, %arg1: memref<16x1152xbf16, #tpu.memory_space<vmem>>, %arg2: memref<16x128xf32, #tpu.memory_space<vmem>>, %arg3: memref<1152x32xbf16, #tpu.memory_space<vmem>>, %arg4: memref<32x128xbf16, #tpu.memory_space<vmem>>, %arg5: memref<16x128xf32, #tpu.memory_space<vmem>>) attributes {dimension_semantics = [#tpu.dimension_semantics<parallel>], iteration_bounds = array<i64: 2>, scalar_prefetch = 0 : i64, scratch_operands = 0 : i64, tpu.core_type = #tpu.core_type<tc>, window_params = [{transform_indices = @transform_0, window_bounds = array<i64: 16, 1152>}, {transform_indices = @transform_1, window_bounds = array<i64: 16, 128>}, {pipeline_mode = #tpu.pipeline_mode<synchronous>, transform_indices = @transform_2, window_bounds = array<i64: 1152, 32>}, {pipeline_mode = #tpu.pipeline_mode<synchronous>, transform_indices = @transform_3, window_bounds = array<i64: 32, 128>}, {transform_indices = @transform_4, window_bounds = array<i64: 16, 128>}]} {
    %c0 = arith.constant 0 : index
    %c0_0 = arith.constant 0 : index
    %0 = vector.load %arg1[%c0, %c0_0] : memref<16x1152xbf16, #tpu.memory_space<vmem>>, vector<16x1152xbf16>
    %c0_1 = arith.constant 0 : index
    %c0_2 = arith.constant 0 : index
    %1 = vector.load %arg3[%c0_1, %c0_2] : memref<1152x32xbf16, #tpu.memory_space<vmem>>, vector<1152x32xbf16>
    %cst = arith.constant dense<0.000000e+00> : vector<16x32xf32>
    %2 = tpu.matmul %0, %1, %cst {dimension_numbers = #tpu.dot_dimension_numbers<[1], [0], [0], [1], [0, 0, 1, 1], [], []>} : vector<16x1152xbf16>, vector<1152x32xbf16>, vector<16x32xf32> -> vector<16x32xf32>
    %cst_3 = arith.constant 0.000000e+00 : f32
    %3 = vector.broadcast %cst_3 : f32 to vector<16x32xf32>
    %4 = arith.maximumf %2, %3 : vector<16x32xf32>
    %5 = arith.truncf %4 : vector<16x32xf32> to vector<16x32xbf16>
    %c0_4 = arith.constant 0 : index
    %c0_5 = arith.constant 0 : index
    %6 = vector.load %arg4[%c0_4, %c0_5] : memref<32x128xbf16, #tpu.memory_space<vmem>>, vector<32x128xbf16>
    %cst_6 = arith.constant dense<0.000000e+00> : vector<16x128xf32>
    %7 = tpu.matmul %5, %6, %cst_6 {dimension_numbers = #tpu.dot_dimension_numbers<[1], [0], [0], [1], [0, 0, 1, 1], [], []>} : vector<16x32xbf16>, vector<32x128xbf16>, vector<16x128xf32> -> vector<16x128xf32>
    %c0_7 = arith.constant 0 : index
    %c0_8 = arith.constant 0 : index
    %8 = vector.load %arg2[%c0_7, %c0_8] : memref<16x128xf32, #tpu.memory_space<vmem>>, vector<16x128xf32>
    %9 = arith.addf %7, %8 : vector<16x128xf32>
    %c0_9 = arith.constant 0 : index
    %c0_10 = arith.constant 0 : index
    %10 = vector.load %arg5[%c0_9, %c0_10] : memref<16x128xf32, #tpu.memory_space<vmem>>, vector<16x128xf32>
    tpu.vector_store %arg5[%c0_9, %c0_10], %9 {strides = array<i32>} : memref<16x128xf32, #tpu.memory_space<vmem>>, vector<16x128xf32>,
    return
  }
  func.func @transform_0(%arg0: i32) -> (i32, i32) {
    %c0_i32 = arith.constant 0 : i32
    %c0_i32_0 = arith.constant 0 : i32
    return %arg0, %c0_i32 : i32, i32
  }
  func.func @transform_1(%arg0: i32) -> (i32, i32) {
    %c0_i32 = arith.constant 0 : i32
    %c0_i32_0 = arith.constant 0 : i32
    return %arg0, %c0_i32 : i32, i32
  }
  func.func @transform_2(%arg0: i32) -> (i32, i32) {
    %c0_i32 = arith.constant 0 : i32
    %c0_i32_0 = arith.constant 0 : i32
    %c0_i32_1 = arith.constant 0 : i32
    return %c0_i32, %c0_i32_0 : i32, i32
  }
  func.func @transform_3(%arg0: i32) -> (i32, i32) {
    %c0_i32 = arith.constant 0 : i32
    %c0_i32_0 = arith.constant 0 : i32
    %c0_i32_1 = arith.constant 0 : i32
    return %c0_i32, %c0_i32_0 : i32, i32
  }
  func.func @transform_4(%arg0: i32) -> (i32, i32) {
    %c0_i32 = arith.constant 0 : i32
    %c0_i32_0 = arith.constant 0 : i32
    return %arg0, %c0_i32 : i32, i32
  }
}

module attributes {stable_mosaic.version = 11 : i64} {
  func.func @_resblock_kernel(%arg0: i32, %arg1: memref<16x1152xbf16, #tpu.memory_space<vmem>>, %arg2: memref<16x128xf32, #tpu.memory_space<vmem>>, %arg3: memref<1152x32xbf16, #tpu.memory_space<vmem>>, %arg4: memref<32x128xbf16, #tpu.memory_space<vmem>>, %arg5: memref<16x128xf32, #tpu.memory_space<vmem>>) attributes {dimension_semantics = [#tpu.dimension_semantics<parallel>], iteration_bounds = array<i64: 2>, scalar_prefetch = 0 : i64, scratch_operands = 0 : i64, tpu.core_type = #tpu.core_type<tc>, window_params = [{transform_indices = @transform_0, window_bounds = array<i64: 16, 1152>}, {transform_indices = @transform_1, window_bounds = array<i64: 16, 128>}, {pipeline_mode = #tpu.pipeline_mode<synchronous>, transform_indices = @transform_2, window_bounds = array<i64: 1152, 32>}, {pipeline_mode = #tpu.pipeline_mode<synchronous>, transform_indices = @transform_3, window_bounds = array<i64: 32, 128>}, {transform_indices = @transform_4, window_bounds = array<i64: 16, 128>}]} {
    %c0 = arith.constant 0 : index
    %c0_0 = arith.constant 0 : index
    %0 = vector.load %arg1[%c0, %c0_0] : memref<16x1152xbf16, #tpu.memory_space<vmem>>, vector<16x1152xbf16>
    %c0_1 = arith.constant 0 : index
    %c0_2 = arith.constant 0 : index
    %1 = vector.load %arg3[%c0_1, %c0_2] : memref<1152x32xbf16, #tpu.memory_space<vmem>>, vector<1152x32xbf16>
    %cst = arith.constant dense<0.000000e+00> : vector<16x32xf32>
    %2 = tpu.matmul %0, %1, %cst {dimension_numbers = #tpu.dot_dimension_numbers<[1], [0], [0], [1], [0, 0, 1, 1], [], []>} : vector<16x1152xbf16>, vector<1152x32xbf16>, vector<16x32xf32> -> vector<16x32xf32>
    %cst_3 = arith.constant 0.000000e+00 : f32
    %3 = vector.broadcast %cst_3 : f32 to vector<16x32xf32>
    %4 = arith.maximumf %2, %3 : vector<16x32xf32>
    %5 = arith.truncf %4 : vector<16x32xf32> to vector<16x32xbf16>
    %c0_4 = arith.constant 0 : index
    %c0_5 = arith.constant 0 : index
    %6 = vector.load %arg4[%c0_4, %c0_5] : memref<32x128xbf16, #tpu.memory_space<vmem>>, vector<32x128xbf16>
    %cst_6 = arith.constant dense<0.000000e+00> : vector<16x128xf32>
    %7 = tpu.matmul %5, %6, %cst_6 {dimension_numbers = #tpu.dot_dimension_numbers<[1], [0], [0], [1], [0, 0, 1, 1], [], []>} : vector<16x32xbf16>, vector<32x128xbf16>, vector<16x128xf32> -> vector<16x128xf32>
    %c0_7 = arith.constant 0 : index
    %c0_8 = arith.constant 0 : index
    %8 = vector.load %arg2[%c0_7, %c0_8] : memref<16x128xf32, #tpu.memory_space<vmem>>, vector<16x128xf32>
    %9 = arith.addf %7, %8 : vector<16x128xf32>
    %cst_9 = arith.constant 0.000000e+00 : f32
    %10 = vector.broadcast %cst_9 : f32 to vector<16x128xf32>
    %11 = arith.maximumf %9, %10 : vector<16x128xf32>
    %c0_10 = arith.constant 0 : index
    %c0_11 = arith.constant 0 : index
    %12 = vector.load %arg5[%c0_10, %c0_11] : memref<16x128xf32, #tpu.memory_space<vmem>>, vector<16x128xf32>
    tpu.vector_store %arg5[%c0_10, %c0_11], %11 {strides = array<i32>} : memref<16x128xf32, #tpu.memory_space<vmem>>, vector<16x128xf32>,
    return
  }
  func.func @transform_0(%arg0: i32) -> (i32, i32) {
    %c0_i32 = arith.constant 0 : i32
    %c0_i32_0 = arith.constant 0 : i32
    return %arg0, %c0_i32 : i32, i32
  }
  func.func @transform_1(%arg0: i32) -> (i32, i32) {
    %c0_i32 = arith.constant 0 : i32
    %c0_i32_0 = arith.constant 0 : i32
    return %arg0, %c0_i32 : i32, i32
  }
  func.func @transform_2(%arg0: i32) -> (i32, i32) {
    %c0_i32 = arith.constant 0 : i32
    %c0_i32_0 = arith.constant 0 : i32
    %c0_i32_1 = arith.constant 0 : i32
    return %c0_i32, %c0_i32_0 : i32, i32
  }
  func.func @transform_3(%arg0: i32) -> (i32, i32) {
    %c0_i32 = arith.constant 0 : i32
    %c0_i32_0 = arith.constant 0 : i32
    %c0_i32_1 = arith.constant 0 : i32
    return %c0_i32, %c0_i32_0 : i32, i32
  }
  func.func @transform_4(%arg0: i32) -> (i32, i32) {
    %c0_i32 = arith.constant 0 : i32
    %c0_i32_0 = arith.constant 0 : i32
    return %arg0, %c0_i32 : i32, i32
  }
}

module attributes {stable_mosaic.version = 11 : i64} {
  func.func @_gemm_kernel(%arg0: i32, %arg1: memref<16x1152xbf16, #tpu.memory_space<vmem>>, %arg2: memref<1152x256xbf16, #tpu.memory_space<vmem>>, %arg3: memref<1x256xf32, #tpu.memory_space<vmem>>, %arg4: memref<16x256xf32, #tpu.memory_space<vmem>>) attributes {dimension_semantics = [#tpu.dimension_semantics<parallel>], iteration_bounds = array<i64: 2>, scalar_prefetch = 0 : i64, scratch_operands = 0 : i64, tpu.core_type = #tpu.core_type<tc>, window_params = [{transform_indices = @transform_0, window_bounds = array<i64: 16, 1152>}, {pipeline_mode = #tpu.pipeline_mode<synchronous>, transform_indices = @transform_1, window_bounds = array<i64: 1152, 256>}, {pipeline_mode = #tpu.pipeline_mode<synchronous>, transform_indices = @transform_2, window_bounds = array<i64: 1, 256>}, {transform_indices = @transform_3, window_bounds = array<i64: 16, 256>}]} {
    %c0 = arith.constant 0 : index
    %c0_0 = arith.constant 0 : index
    %0 = vector.load %arg1[%c0, %c0_0] : memref<16x1152xbf16, #tpu.memory_space<vmem>>, vector<16x1152xbf16>
    %c0_1 = arith.constant 0 : index
    %c0_2 = arith.constant 0 : index
    %1 = vector.load %arg2[%c0_1, %c0_2] : memref<1152x256xbf16, #tpu.memory_space<vmem>>, vector<1152x256xbf16>
    %cst = arith.constant dense<0.000000e+00> : vector<16x256xf32>
    %2 = tpu.matmul %0, %1, %cst {dimension_numbers = #tpu.dot_dimension_numbers<[1], [0], [0], [1], [0, 0, 1, 1], [], []>} : vector<16x1152xbf16>, vector<1152x256xbf16>, vector<16x256xf32> -> vector<16x256xf32>
    %c0_3 = arith.constant 0 : index
    %c0_4 = arith.constant 0 : index
    %3 = vector.load %arg3[%c0_3, %c0_4] : memref<1x256xf32, #tpu.memory_space<vmem>>, vector<1x256xf32>
    %4 = vector.broadcast %3 : vector<1x256xf32> to vector<16x256xf32>
    %5 = arith.addf %2, %4 : vector<16x256xf32>
    %cst_5 = arith.constant 0.000000e+00 : f32
    %6 = vector.broadcast %cst_5 : f32 to vector<16x256xf32>
    %7 = arith.maximumf %5, %6 : vector<16x256xf32>
    %c0_6 = arith.constant 0 : index
    %c0_7 = arith.constant 0 : index
    %8 = vector.load %arg4[%c0_6, %c0_7] : memref<16x256xf32, #tpu.memory_space<vmem>>, vector<16x256xf32>
    tpu.vector_store %arg4[%c0_6, %c0_7], %7 {strides = array<i32>} : memref<16x256xf32, #tpu.memory_space<vmem>>, vector<16x256xf32>,
    return
  }
  func.func @transform_0(%arg0: i32) -> (i32, i32) {
    %c0_i32 = arith.constant 0 : i32
    %c0_i32_0 = arith.constant 0 : i32
    return %arg0, %c0_i32 : i32, i32
  }
  func.func @transform_1(%arg0: i32) -> (i32, i32) {
    %c0_i32 = arith.constant 0 : i32
    %c0_i32_0 = arith.constant 0 : i32
    %c0_i32_1 = arith.constant 0 : i32
    return %c0_i32, %c0_i32_0 : i32, i32
  }
  func.func @transform_2(%arg0: i32) -> (i32, i32) {
    %c0_i32 = arith.constant 0 : i32
    %c0_i32_0 = arith.constant 0 : i32
    %c0_i32_1 = arith.constant 0 : i32
    return %c0_i32, %c0_i32_0 : i32, i32
  }
  func.func @transform_3(%arg0: i32) -> (i32, i32) {
    %c0_i32 = arith.constant 0 : i32
    %c0_i32_0 = arith.constant 0 : i32
    return %arg0, %c0_i32 : i32, i32
  }
}

module attributes {stable_mosaic.version = 11 : i64} {
  func.func @_gemm_kernel(%arg0: i32, %arg1: memref<64x576xbf16, #tpu.memory_space<vmem>>, %arg2: memref<576x128xbf16, #tpu.memory_space<vmem>>, %arg3: memref<1x128xf32, #tpu.memory_space<vmem>>, %arg4: memref<64x128xf32, #tpu.memory_space<vmem>>) attributes {dimension_semantics = [#tpu.dimension_semantics<parallel>], iteration_bounds = array<i64: 2>, scalar_prefetch = 0 : i64, scratch_operands = 0 : i64, tpu.core_type = #tpu.core_type<tc>, window_params = [{transform_indices = @transform_0, window_bounds = array<i64: 64, 576>}, {pipeline_mode = #tpu.pipeline_mode<synchronous>, transform_indices = @transform_1, window_bounds = array<i64: 576, 128>}, {pipeline_mode = #tpu.pipeline_mode<synchronous>, transform_indices = @transform_2, window_bounds = array<i64: 1, 128>}, {transform_indices = @transform_3, window_bounds = array<i64: 64, 128>}]} {
    %c0 = arith.constant 0 : index
    %c0_0 = arith.constant 0 : index
    %0 = vector.load %arg1[%c0, %c0_0] : memref<64x576xbf16, #tpu.memory_space<vmem>>, vector<64x576xbf16>
    %c0_1 = arith.constant 0 : index
    %c0_2 = arith.constant 0 : index
    %1 = vector.load %arg2[%c0_1, %c0_2] : memref<576x128xbf16, #tpu.memory_space<vmem>>, vector<576x128xbf16>
    %cst = arith.constant dense<0.000000e+00> : vector<64x128xf32>
    %2 = tpu.matmul %0, %1, %cst {dimension_numbers = #tpu.dot_dimension_numbers<[1], [0], [0], [1], [0, 0, 1, 1], [], []>} : vector<64x576xbf16>, vector<576x128xbf16>, vector<64x128xf32> -> vector<64x128xf32>
    %c0_3 = arith.constant 0 : index
    %c0_4 = arith.constant 0 : index
    %3 = vector.load %arg3[%c0_3, %c0_4] : memref<1x128xf32, #tpu.memory_space<vmem>>, vector<1x128xf32>
    %4 = vector.broadcast %3 : vector<1x128xf32> to vector<64x128xf32>
    %5 = arith.addf %2, %4 : vector<64x128xf32>
    %c0_5 = arith.constant 0 : index
    %c0_6 = arith.constant 0 : index
    %6 = vector.load %arg4[%c0_5, %c0_6] : memref<64x128xf32, #tpu.memory_space<vmem>>, vector<64x128xf32>
    tpu.vector_store %arg4[%c0_5, %c0_6], %5 {strides = array<i32>} : memref<64x128xf32, #tpu.memory_space<vmem>>, vector<64x128xf32>,
    return
  }
  func.func @transform_0(%arg0: i32) -> (i32, i32) {
    %c0_i32 = arith.constant 0 : i32
    %c0_i32_0 = arith.constant 0 : i32
    return %arg0, %c0_i32 : i32, i32
  }
  func.func @transform_1(%arg0: i32) -> (i32, i32) {
    %c0_i32 = arith.constant 0 : i32
    %c0_i32_0 = arith.constant 0 : i32
    %c0_i32_1 = arith.constant 0 : i32
    return %c0_i32, %c0_i32_0 : i32, i32
  }
  func.func @transform_2(%arg0: i32) -> (i32, i32) {
    %c0_i32 = arith.constant 0 : i32
    %c0_i32_0 = arith.constant 0 : i32
    %c0_i32_1 = arith.constant 0 : i32
    return %c0_i32, %c0_i32_0 : i32, i32
  }
  func.func @transform_3(%arg0: i32) -> (i32, i32) {
    %c0_i32 = arith.constant 0 : i32
    %c0_i32_0 = arith.constant 0 : i32
    return %arg0, %c0_i32 : i32, i32
  }
}

</mosaic_0001>

<bundles_post_ra>
// kernel: _lambda_.10
= control target key start
LH: loop header
LB: loop body
LE: loop exit
PB: predicated region body
PF: predicated region fallthrough
CT: control target
= control target key end

     0   :  { %s477_s12 = smov 0   ;;  %s510_s0 = inlined_call_operand.vmem [shape: bf16[128,48], index: 0, kind: input, shape index: {}]   ;;  %s511_s1 = inlined_call_operand.vmem [shape: bf16[48,128], index: 1, kind: input, shape index: {}]   ;;  %s512_s2 = inlined_call_operand.vmem [shape: f32[1,128], index: 2, kind: input, shape index: {}]   ;;  %s513_s3 = inlined_call_operand.vmem [shape: f32[128,128], index: 3, kind: output, shape index: {}]  }
   0x1 LB: > { %s384_s13 = sadd.s32 4294967295, %s455_s12   ;;  %p388_p0 = scmp.ge.s32.totalorder %s455_s12, 1  ;;  %s455_s12 = sphi %s477_s12, %s13_s12  }
   0x2   : > { %p138_p1 = scmp.lt.s32.totalorder %s455_s12, 3 }
   0x4   : > { %p139_p2 = pnand %p388_p0, %p138_p1 }
   0x5   : > { %v442_v0 = vld [vmem:[%s511_s1] sm:$0xff] (!%p139_p2)   ;;  %s389_s16 = sshll.u32 (!%p139_p2), %s384_s13, 3  ;;  %v443_v1 = vld [vmem:[%s511_s1 + $0x8] sm:$0xff] (!%p139_p2)   ;;  %v444_v2 = vld [vmem:[%s511_s1 + $0x10] sm:$0xff] (!%p139_p2)   ;;  %vm234_vm0 = vcmask (!%p139_p2), 392192  }
   0x6   : > { %142 = sbr.rel (%p139_p2) target bundleno = 238 (0xee), region = 32  ;;  %p163_p3 = scmp.lt.s32.totalorder (!%p139_p2), %s389_s16, 15  ;;  %414 = vmatprep.subr.bf16.mxu0 (!%p139_p2), %v442_v0  ;;  %428 = vmatprep.subr.bf16.mxu1 (!%p139_p2), %v442_v0  ;;  %v393_v7 = vld [vmem:[%s512_s2] ss:$0 sm:$0xff] (!%p139_p2) }
   0x7   : > { %415 = vmatpush3.bf16.msra.mxu0 (!%p139_p2), %v442_v0  ;;  %431 = vmatpush3.bf16.msra.mxu1 (!%p139_p2), %v442_v0 }
   0x8   : > { %416 = vmatprep.subr.bf16.mxu0 (!%p139_p2), %v443_v1  ;;  %429 = vmatprep.subr.bf16.mxu1 (!%p139_p2), %v443_v1 }
   0xb   : > { %417 = vmatpush3.bf16.msra.mxu0 (!%p139_p2), %v443_v1  ;;  %432 = vmatpush3.bf16.msra.mxu1 (!%p139_p2), %v443_v1 }
   0xc   : > { %418 = vmatprep.subr.bf16.mxu0 (!%p139_p2), %v444_v2  ;;  %430 = vmatprep.subr.bf16.mxu1 (!%p139_p2), %v444_v2 }
   0xd   : > { %s515_s16 = smov (!%p163_p3, %s389_s16), 15 }
   0xe   : > { %s390_s21 = sshll.u32 %s515_s16, 2  ;;  %s392_s27 = sshll.u32 %s515_s16, 3 }
   0xf   : > { %s166_s24 = scalar_lea.vmem %s510_s0, %s390_s21  ;;  %419 = vmatpush3.bf16.msra.mxu0 %v444_v2  ;;  %433 = vmatpush3.bf16.msra.mxu1 %v444_v2  ;;  %s172_s30 = scalar_lea.vmem %s513_s3, %s392_s27 }
  0x10   : > { %v445_v3 = vld [vmem:[%s166_s24] sm:$0xff]   ;;  %v446_v4 = vld [vmem:[%s166_s24 + $0x10] sm:$0xff]   ;;  %v447_v5 = vld [vmem:[%s166_s24 + $0x8] sm:$0xff]  }
  0x11   : > { %420 = vmatprep.mubr.msk.bf16.mxu0 %vm234_vm0, %v445_v3  ;;  %424 = vmatprep.mubr.msk.bf16.mxu1 %vm234_vm0, %v446_v4  ;;  %v448_v6 = vld [vmem:[%s166_s24 + $0x18] sm:$0xff]  }
  0x12   : > { %421 = vmatmul.mubr.msk.bf16.vlgmr.msra.gmra.mrb[0].mxu0 %vm234_vm0, %v447_v5  ;;  %425 = vmatmul.mubr.msk.bf16.vlgmr.msra.gmra.mrb[0].mxu1 %vm234_vm0, %v448_v6 }
  0xe5   : > { %v422_v8 = vpop.f32.mrb[0].mxu0  ;;  %v426_v9 = vpop.f32.mrb[0].mxu1 }
  0xe6   : > { %v290_v10 = vadd.f32 %v422_v8, %v393_v7  ;;  %v306_v11 = vadd.f32 %v426_v9, %v393_v7  ;;  %v281_v12 = vpop.f32.mrb[1].mxu0  ;;  %v297_v13 = vpop.f32.mrb[1].mxu1 }
  0xe7   : > { %v282_v14 = vadd.f32 %v393_v7, %v281_v12  ;;  %v298_v15 = vadd.f32 %v393_v7, %v297_v13  ;;  %v423_v16 = vpop.f32.mrb[2].mxu0  ;;  %v427_v17 = vpop.f32.mrb[2].mxu1 }
  0xe8   : > { %v314_v18 = vmax.f32 %v290_v10, 0.0  ;;  %v318_v19 = vmax.f32 %v306_v11, 0.0  ;;  %v293_v20 = vadd.f32 %v423_v16, %v393_v7  ;;  %v309_v21 = vadd.f32 %v427_v17, %v393_v7  ;;  %v284_v22 = vpop.f32.mrb[3].mxu0  ;;  %v300_v23 = vpop.f32.mrb[3].mxu1 }
  0xe9   : > { %v312_v24 = vmax.f32 %v282_v14, 0.0  ;;  %v316_v25 = vmax.f32 %v298_v15, 0.0  ;;  %v285_v26 = vadd.f32 %v393_v7, %v284_v22  ;;  %v301_v27 = vadd.f32 %v393_v7, %v300_v23 }
  0xea   : > { %322 = vst [vmem:[%s172_s30 + $0x10] sm:$0xff] %v314_v18  ;;  %326 = vst [vmem:[%s172_s30 + $0x30] sm:$0xff] %v318_v19  ;;  %v315_v28 = vmax.f32 %v293_v20, 0.0  ;;  %v319_v29 = vmax.f32 %v309_v21, 0.0 }
  0xeb   : > { %320 = vst [vmem:[%s172_s30] sm:$0xff] %v312_v24  ;;  %324 = vst [vmem:[%s172_s30 + $0x20] sm:$0xff] %v316_v25  ;;  %v313_v30 = vmax.f32 %v285_v26, 0.0  ;;  %v317_v31 = vmax.f32 %v301_v27, 0.0 }
  0xec   : > { %323 = vst [vmem:[%s172_s30 + $0x18] sm:$0xff] %v315_v28  ;;  %327 = vst [vmem:[%s172_s30 + $0x38] sm:$0xff] %v319_v29 }
  0xed   : > { %321 = vst [vmem:[%s172_s30 + $0x8] sm:$0xff] %v313_v30  ;;  %325 = vst [vmem:[%s172_s30 + $0x28] sm:$0xff] %v317_v31 }
  0xee PF: > { %s13_s12 = sadd.s32 1, %s455_s12  }
  0xef   : > { %p10_p4 = scmp.ge.s32.totalorder %s13_s12, 4  }
  0xf1   :  { %12 = sbr.rel (!%p10_p4) target bundleno = 1 (0x1), region = 62 }

// kernel: _lambda_.11
= control target key start
LH: loop header
LB: loop body
LE: loop exit
PB: predicated region body
PF: predicated region fallthrough
CT: control target
= control target key end

     0   :  { %s1243_s12 = smov 0   ;;  %s1471_s0 = inlined_call_operand.vmem [shape: bf16[32,1024], index: 0, kind: input, shape index: {}]   ;;  %s1472_s1 = inlined_call_operand.vmem [shape: bf16[1024,128], index: 1, kind: input, shape index: {}]   ;;  %s1473_s2 = inlined_call_operand.vmem [shape: f32[1,128], index: 2, kind: input, shape index: {}]   ;;  %s1474_s3 = inlined_call_operand.vmem [shape: f32[32,128], index: 3, kind: output, shape index: {}]  }
   0x1 LB: > { %s969_s13 = sadd.s32 4294967295, %s1221_s12   ;;  %p973_p0 = scmp.ge.s32.totalorder %s1221_s12, 1  ;;  %s1221_s12 = sphi %s1243_s12, %s13_s12  }
   0x2   : > { %p139_p1 = scmp.lt.s32.totalorder %s1221_s12, 3 }
   0x4   : > { %p140_p2 = pnand %p973_p0, %p139_p1 }
   0x5   : > { %v1151_v0 = vld [vmem:[%s1472_s1 + $0x40] sm:$0xff] (!%p140_p2)   ;;  %v1155_v4 = vld [vmem:[%s1472_s1 + $0x48] sm:$0xff] (!%p140_p2)   ;;  %v1159_v8 = vld [vmem:[%s1472_s1 + $0x50] sm:$0xff] (!%p140_p2)   ;;  %s974_s21 = sshll.u32 (!%p140_p2), %s969_s13, 1 }
   0x6   : > { %143 = sbr.rel (%p140_p2) target bundleno = 295 (0x127), region = 32  ;;  %v1152_v1 = vld [vmem:[%s1472_s1 + $0xc0] sm:$0xff] (!%p140_p2)   ;;  %1055 = vmatprep.subr.bf16.mxu0 (!%p140_p2), %v1151_v0  ;;  %v1156_v5 = vld [vmem:[%s1472_s1 + $0xc8] sm:$0xff] (!%p140_p2)   ;;  %v1160_v9 = vld [vmem:[%s1472_s1 + $0xd0] sm:$0xff] (!%p140_p2)   ;;  %p165_p3 = scmp.lt.s32.totalorder (!%p140_p2), %s974_s21, 3 }
   0x7   : > { %v1153_v2 = vld [vmem:[%s1472_s1] sm:$0xff] (!%p140_p2)   ;;  %1077 = vmatprep.subr.bf16.mxu1 (!%p140_p2), %v1152_v1  ;;  %v1157_v6 = vld [vmem:[%s1472_s1 + $0x8] sm:$0xff] (!%p140_p2)   ;;  %v1161_v10 = vld [vmem:[%s1472_s1 + $0x10] sm:$0xff] (!%p140_p2)  }
   0x8   : > { %v1154_v3 = vld [vmem:[%s1472_s1 + $0x80] sm:$0xff] (!%p140_p2)   ;;  %1056 = vmatpush3.bf16.msra.mxu0 (!%p140_p2), %v1153_v2  ;;  %v1158_v7 = vld [vmem:[%s1472_s1 + $0x88] sm:$0xff] (!%p140_p2)   ;;  %v1162_v11 = vld [vmem:[%s1472_s1 + $0x90] sm:$0xff] (!%p140_p2)  }
   0x9   : > { %1078 = vmatpush3.bf16.msra.mxu1 (!%p140_p2), %v1154_v3  ;;  %1057 = vmatprep.subr.bf16.mxu0 (!%p140_p2), %v1155_v4  ;;  %v1163_v12 = vld [vmem:[%s1472_s1 + $0x58] sm:$0xff] (!%p140_p2)   ;;  %v1167_v16 = vld [vmem:[%s1472_s1 + $0x60] sm:$0xff] (!%p140_p2)   ;;  %v1171_v20 = vld [vmem:[%s1472_s1 + $0x68] sm:$0xff] (!%p140_p2)  }
   0xa   : > { %1079 = vmatprep.subr.bf16.mxu1 (!%p140_p2), %v1156_v5  ;;  %v1164_v13 = vld [vmem:[%s1472_s1 + $0xd8] sm:$0xff] (!%p140_p2)   ;;  %v1168_v17 = vld [vmem:[%s1472_s1 + $0xe0] sm:$0xff] (!%p140_p2)   ;;  %v1172_v21 = vld [vmem:[%s1472_s1 + $0xe8] sm:$0xff] (!%p140_p2)  }
   0xb   : > { %v1165_v14 = vld [vmem:[%s1472_s1 + $0x18] sm:$0xff] (!%p140_p2)   ;;  %v1169_v18 = vld [vmem:[%s1472_s1 + $0x20] sm:$0xff] (!%p140_p2)   ;;  %v1173_v22 = vld [vmem:[%s1472_s1 + $0x28] sm:$0xff] (!%p140_p2)  }
   0xc   : > { %1058 = vmatpush3.bf16.msra.mxu0 (!%p140_p2), %v1157_v6  ;;  %v1166_v15 = vld [vmem:[%s1472_s1 + $0x98] sm:$0xff] (!%p140_p2)   ;;  %v1170_v19 = vld [vmem:[%s1472_s1 + $0xa0] sm:$0xff] (!%p140_p2)   ;;  %v1174_v23 = vld [vmem:[%s1472_s1 + $0xa8] sm:$0xff] (!%p140_p2)  }
   0xd   : > { %1080 = vmatpush3.bf16.msra.mxu1 %v1158_v7  ;;  %1059 = vmatprep.subr.bf16.mxu0 %v1159_v8  ;;  %s1476_s21 = smov (!%p165_p3, %s974_s21), 3  ;;  %v1175_v24 = vld [vmem:[%s1472_s1 + $0x70] sm:$0xff]   ;;  %v1179_v28 = vld [vmem:[%s1472_s1 + $0x78] sm:$0xff]   ;;  %v1183_v40 = vld [vmem:[%s1472_s1 + $0x140] sm:$0xff]  }
   0xe   : > { %1081 = vmatprep.subr.bf16.mxu1 %v1160_v9  ;;  %v1176_v25 = vld [vmem:[%s1472_s1 + $0xf0] sm:$0xff]   ;;  %s1054_s18 = sshll.u32 %s1476_s21, 5  ;;  %v1180_v29 = vld [vmem:[%s1472_s1 + $0xf8] sm:$0xff]   ;;  %v1184_v41 = vld [vmem:[%s1472_s1 + $0x1c0] sm:$0xff]  }
   0xf   : > { %v1177_v26 = vld [vmem:[%s1472_s1 + $0x30] sm:$0xff]   ;;  %s1349_s28 = scalar_lea.vmem %s1471_s0, %s1054_s18  ;;  %v1181_v30 = vld [vmem:[%s1472_s1 + $0x38] sm:$0xff]   ;;  %v1185_v42 = vld [vmem:[%s1472_s1 + $0x100] sm:$0xff]  }
  0x10   : > { %1060 = vmatpush3.bf16.msra.mxu0 %v1161_v10  ;;  %v1178_v27 = vld [vmem:[%s1472_s1 + $0xb0] sm:$0xff]   ;;  %v1182_v31 = vld [vmem:[%s1472_s1 + $0xb8] sm:$0xff]   ;;  %v178_v32 = vld [vmem:[%s1349_s28] sm:$0xff] }
  0x11   : > { %1082 = vmatpush3.bf16.msra.mxu1 %v1162_v11  ;;  %1061 = vmatprep.subr.bf16.mxu0 %v1163_v12  ;;  %v182_v33 = vld [vmem:[%s1349_s28 + $0x20] sm:$0xff]  ;;  %v179_v34 = vld [vmem:[%s1349_s28 + $0x8] sm:$0xff]  ;;  %v1191_v48 = vld [vmem:[%s1472_s1 + $0x150] sm:$0xff]  }
  0x12   : > { %1083 = vmatprep.subr.bf16.mxu1 %v1164_v13  ;;  %v980_v35 = vcombine.low %v178_v32, %v182_v33  ;;  %v981_v36 = vcombine.high %v178_v32, %v182_v33  ;;  %v183_v37 = vld [vmem:[%s1349_s28 + $0x28] sm:$0xff]  ;;  %v1186_v43 = vld [vmem:[%s1472_s1 + $0x180] sm:$0xff]   ;;  %v1192_v49 = vld [vmem:[%s1472_s1 + $0x1d0] sm:$0xff]  }
  0x13   : > { %v982_v38 = vcombine.low %v179_v34, %v183_v37  ;;  %v983_v39 = vcombine.high %v179_v34, %v183_v37  ;;  %v1187_v44 = vld [vmem:[%s1472_s1 + $0x148] sm:$0xff]   ;;  %v1193_v50 = vld [vmem:[%s1472_s1 + $0x110] sm:$0xff]   ;;  %v1195_v52 = vld [vmem:[%s1472_s1 + $0x158] sm:$0xff]  }
  0x14   : > { %1062 = vmatpush3.bf16.msra.mxu0 %v1165_v14  ;;  %777 = vmatprep.mubr.bf16.mxu0 %v981_v36  ;;  %v1188_v45 = vld [vmem:[%s1472_s1 + $0x1c8] sm:$0xff]   ;;  %v1194_v51 = vld [vmem:[%s1472_s1 + $0x190] sm:$0xff]   ;;  %v1196_v53 = vld [vmem:[%s1472_s1 + $0x1d8] sm:$0xff]  }
  0x15   : > { %1084 = vmatpush3.bf16.msra.mxu1 %v1166_v15  ;;  %1063 = vmatprep.subr.bf16.mxu0 %v1167_v16  ;;  %v1189_v46 = vld [vmem:[%s1472_s1 + $0x108] sm:$0xff]   ;;  %v1197_v54 = vld [vmem:[%s1472_s1 + $0x118] sm:$0xff]   ;;  %v1199_v56 = vld [vmem:[%s1472_s1 + $0x160] sm:$0xff]  }
  0x16   : > { %1085 = vmatprep.subr.bf16.mxu1 %v1168_v17  ;;  %818 = vmatprep.mubr.bf16.mxu1 %v983_v39  ;;  %v1190_v47 = vld [vmem:[%s1472_s1 + $0x188] sm:$0xff]   ;;  %v1198_v55 = vld [vmem:[%s1472_s1 + $0x198] sm:$0xff]   ;;  %v1200_v57 = vld [vmem:[%s1472_s1 + $0x1e0] sm:$0xff]  }
  0x17   : > { %v1201_v58 = vld [vmem:[%s1472_s1 + $0x120] sm:$0xff]   ;;  %v1203_v60 = vld [vmem:[%s1472_s1 + $0x168] sm:$0xff]   ;;  %v1207_v0 = vld [vmem:[%s1472_s1 + $0x170] sm:$0xff]  }
  0x18   : > { %1064 = vmatpush3.bf16.msra.mxu0 %v1169_v18  ;;  %v1202_v59 = vld [vmem:[%s1472_s1 + $0x1a0] sm:$0xff]   ;;  %v1204_v61 = vld [vmem:[%s1472_s1 + $0x1e8] sm:$0xff]   ;;  %v1208_v1 = vld [vmem:[%s1472_s1 + $0x1f0] sm:$0xff]  }
  0x19   : > { %1086 = vmatpush3.bf16.msra.mxu1 %v1170_v19  ;;  %1065 = vmatprep.subr.bf16.mxu0 %v1171_v20  ;;  %v1205_v62 = vld [vmem:[%s1472_s1 + $0x128] sm:$0xff]   ;;  %v1209_v2 = vld [vmem:[%s1472_s1 + $0x130] sm:$0xff]   ;;  %v1211_v4 = vld [vmem:[%s1472_s1 + $0x178] sm:$0xff]  }
  0x1a   : > { %1087 = vmatprep.subr.bf16.mxu1 %v1172_v21  ;;  %v1206_v63 = vld [vmem:[%s1472_s1 + $0x1a8] sm:$0xff]   ;;  %v1210_v3 = vld [vmem:[%s1472_s1 + $0x1b0] sm:$0xff]   ;;  %v1212_v5 = vld [vmem:[%s1472_s1 + $0x1f8] sm:$0xff]  }
  0x1b   : > { %v1213_v6 = vld [vmem:[%s1472_s1 + $0x138] sm:$0xff]   ;;  %v180_v8 = vld [vmem:[%s1349_s28 + $0x10] sm:$0xff]  ;;  %v979_v18 = vld [vmem:[%s1473_s2] ss:$0 sm:$0xff] }
  0x1c   : > { %1066 = vmatpush3.bf16.msra.mxu0 %v1173_v22  ;;  %v1214_v7 = vld [vmem:[%s1472_s1 + $0x1b8] sm:$0xff]   ;;  %v184_v9 = vld [vmem:[%s1349_s28 + $0x30] sm:$0xff] }
  0x1d   : > { %1088 = vmatpush3.bf16.msra.mxu1 %v1174_v23  ;;  %1067 = vmatprep.subr.bf16.mxu0 %v1175_v24  ;;  %v984_v10 = vcombine.low %v180_v8, %v184_v9  ;;  %v985_v11 = vcombine.high %v180_v8, %v184_v9  ;;  %v181_v12 = vld [vmem:[%s1349_s28 + $0x18] sm:$0xff] }
  0x1e   : > { %1089 = vmatprep.subr.bf16.mxu1 %v1176_v25  ;;  %v185_v13 = vld [vmem:[%s1349_s28 + $0x38] sm:$0xff]  ;;  %s978_s28 = sshll.u32 %s1476_s21, 3 }
  0x1f   : > { %v986_v14 = vcombine.low %v181_v12, %v185_v13  ;;  %v987_v15 = vcombine.high %v181_v12, %v185_v13  ;;  %s175_s29 = scalar_lea.vmem %s1474_s3, %s978_s28 }
  0x20   : > { %1068 = vmatpush3.bf16.msra.mxu0 %v1177_v26 }
  0x21   : > { %1090 = vmatpush3.bf16.msra.mxu1 %v1178_v27  ;;  %1069 = vmatprep.subr.bf16.mxu0 %v1179_v28 }
  0x22   : > { %1091 = vmatprep.subr.bf16.mxu1 %v1180_v29 }
  0x24   : > { %1070 = vmatpush3.bf16.msra.mxu0 %v1181_v30 }
  0x25   : > { %1092 = vmatpush3.bf16.msra.mxu1 %v1182_v31  ;;  %1099 = vmatprep.subr.bf16.mxu0 %v1183_v40 }
  0x26   : > { %1121 = vmatprep.subr.bf16.mxu1 %v1184_v41 }
  0x27   : > { %778 = vmatmul.mubr.bf16.vlgmr.msra.gmra.mrb[0].mxu0 %v980_v35 }
  0x28   : > { %819 = vmatmul.mubr.bf16.vlgmr.msra.gmra.mrb[0].mxu1 %v982_v38  ;;  %1100 = vmatpush3.bf16.msra.mxu0 %v1185_v42 }
  0x29   : > { %1122 = vmatpush3.bf16.msra.mxu1 %v1186_v43  ;;  %1101 = vmatprep.subr.bf16.mxu0 %v1187_v44 }
  0x2a   : > { %1123 = vmatprep.subr.bf16.mxu1 %v1188_v45  ;;  %859 = vmatprep.mubr.bf16.mxu0 %v985_v11 }
  0x2b   : > { %900 = vmatprep.mubr.bf16.mxu1 %v987_v15 }
  0x2c   : > { %1102 = vmatpush3.bf16.msra.mxu0 %v1189_v46 }
  0x2d   : > { %1124 = vmatpush3.bf16.msra.mxu1 %v1190_v47  ;;  %1103 = vmatprep.subr.bf16.mxu0 %v1191_v48 }
  0x2e   : > { %1125 = vmatprep.subr.bf16.mxu1 %v1192_v49 }
  0x30   : > { %1104 = vmatpush3.bf16.msra.mxu0 %v1193_v50 }
  0x31   : > { %1126 = vmatpush3.bf16.msra.mxu1 %v1194_v51  ;;  %1105 = vmatprep.subr.bf16.mxu0 %v1195_v52 }
  0x32   : > { %1127 = vmatprep.subr.bf16.mxu1 %v1196_v53 }
  0x34   : > { %1106 = vmatpush3.bf16.msra.mxu0 %v1197_v54 }
  0x35   : > { %1128 = vmatpush3.bf16.msra.mxu1 %v1198_v55  ;;  %1107 = vmatprep.subr.bf16.mxu0 %v1199_v56 }
  0x36   : > { %1129 = vmatprep.subr.bf16.mxu1 %v1200_v57 }
  0x38   : > { %1108 = vmatpush3.bf16.msra.mxu0 %v1201_v58 }
  0x39   : > { %1130 = vmatpush3.bf16.msra.mxu1 %v1202_v59  ;;  %1109 = vmatprep.subr.bf16.mxu0 %v1203_v60 }
  0x3a   : > { %1131 = vmatprep.subr.bf16.mxu1 %v1204_v61 }
  0x3c   : > { %1110 = vmatpush3.bf16.msra.mxu0 %v1205_v62 }
  0x3d   : > { %1132 = vmatpush3.bf16.msra.mxu1 %v1206_v63  ;;  %1111 = vmatprep.subr.bf16.mxu0 %v1207_v0 }
  0x3e   : > { %1133 = vmatprep.subr.bf16.mxu1 %v1208_v1 }
  0x40   : > { %1112 = vmatpush3.bf16.msra.mxu0 %v1209_v2 }
  0x41   : > { %1134 = vmatpush3.bf16.msra.mxu1 %v1210_v3  ;;  %1113 = vmatprep.subr.bf16.mxu0 %v1211_v4 }
  0x42   : > { %1135 = vmatprep.subr.bf16.mxu1 %v1212_v5 }
  0x44   : > { %1114 = vmatpush3.bf16.msra.mxu0 %v1213_v6 }
  0x45   : > { %1136 = vmatpush3.bf16.msra.mxu1 %v1214_v7 }
  0x47   : > { %860 = vmatmul.mubr.bf16.vlgmr.msra.gmra.mrb[4].mxu0 %v984_v10 }
  0x48   : > { %901 = vmatmul.mubr.bf16.vlgmr.msra.gmra.mrb[4].mxu1 %v986_v14 }
  0xfa   : > { %v1071_v16 = vpop.f32.mrb[0].mxu0 }
  0xfb   : > { %v1093_v17 = vpop.f32.mrb[0].mxu1  ;;  %v1072_v19 = vpop.f32.mrb[1].mxu0 }
  0xfc   : > { %v1073_v20 = vadd.f32 %v1072_v19, %v1071_v16  ;;  %v1094_v21 = vpop.f32.mrb[1].mxu1  ;;  %v1074_v22 = vpop.f32.mrb[2].mxu0 }
  0xfd   : > { %v1095_v23 = vadd.f32 %v1094_v21, %v1093_v17  ;;  %v1096_v24 = vpop.f32.mrb[2].mxu1  ;;  %v1075_v25 = vpop.f32.mrb[3].mxu0 }
  0xfe   : > { %v780_v26 = vadd.f32 %v1073_v20, %v979_v18  ;;  %v1076_v27 = vadd.f32 %v1075_v25, %v1074_v22  ;;  %v1097_v28 = vpop.f32.mrb[3].mxu1 }
  0xff   : > { %v1098_v29 = vadd.f32 %v1097_v28, %v1096_v24 }
 0x100   : > { %v821_v30 = vadd.f32 %v1095_v23, %v780_v26  ;;  %v783_v31 = vadd.f32 %v1076_v27, %v979_v18 }
 0x102   : > { %v824_v32 = vadd.f32 %v1098_v29, %v783_v31 }
 0x11a   : > { %v1115_v33 = vpop.f32.mrb[4].mxu0 }
 0x11b   : > { %v1137_v34 = vpop.f32.mrb[4].mxu1  ;;  %v1116_v35 = vpop.f32.mrb[5].mxu0 }
 0x11c   : > { %v1117_v36 = vadd.f32 %v1116_v35, %v1115_v33  ;;  %v1138_v37 = vpop.f32.mrb[5].mxu1  ;;  %v1118_v38 = vpop.f32.mrb[6].mxu0 }
 0x11d   : > { %v1139_v39 = vadd.f32 %v1138_v37, %v1137_v34  ;;  %v1140_v40 = vpop.f32.mrb[6].mxu1  ;;  %v1119_v41 = vpop.f32.mrb[7].mxu0 }
 0x11e   : > { %v862_v42 = vadd.f32 %v1117_v36, %v821_v30  ;;  %v1120_v43 = vadd.f32 %v1119_v41, %v1118_v38  ;;  %v1141_v44 = vpop.f32.mrb[7].mxu1 }
 0x11f   : > { %v1142_v45 = vadd.f32 %v1141_v44, %v1140_v40 }
 0x120   : > { %v903_v46 = vadd.f32 %v1139_v39, %v862_v42  ;;  %v865_v47 = vadd.f32 %v1120_v43, %v824_v32 }
 0x122   : > { %v909_v48 = vmax.f32 %v903_v46, 0.0  ;;  %v906_v49 = vadd.f32 %v1142_v45, %v865_v47 }
 0x124   : > { %911 = vst [vmem:[%s175_s29] sm:$0xff] %v909_v48  ;;  %v910_v50 = vmax.f32 %v906_v49, 0.0 }
 0x126   : > { %912 = vst [vmem:[%s175_s29 + $0x8] sm:$0xff] %v910_v50 }
 0x127 PF: > { %s13_s12 = sadd.s32 1, %s1221_s12  }
 0x128   : > { %p10_p4 = scmp.ge.s32.totalorder %s13_s12, 4  }
 0x12a   :  { %12 = sbr.rel (!%p10_p4) target bundleno = 1 (0x1), region = 62 }

// kernel: _lambda_.12
= control target key start
LH: loop header
LB: loop body
LE: loop exit
PB: predicated region body
PF: predicated region fallthrough
CT: control target
= control target key end

     0   :  { %s1416_s12 = smov 0   ;;  %s1669_s0 = inlined_call_operand.vmem [shape: bf16[32,1152], index: 0, kind: input, shape index: {}]   ;;  %s1670_s1 = inlined_call_operand.vmem [shape: bf16[1152,128], index: 1, kind: input, shape index: {}]   ;;  %s1671_s2 = inlined_call_operand.vmem [shape: f32[1,128], index: 2, kind: input, shape index: {}]   ;;  %s1672_s3 = inlined_call_operand.vmem [shape: f32[32,128], index: 3, kind: output, shape index: {}]  }
   0x1 LB: > { %s1080_s13 = sadd.s32 4294967295, %s1392_s12   ;;  %p1084_p0 = scmp.ge.s32.totalorder %s1392_s12, 1  ;;  %s1392_s12 = sphi %s1416_s12, %s13_s12  }
   0x2   : > { %p139_p1 = scmp.lt.s32.totalorder %s1392_s12, 3 }
   0x4   : > { %p140_p2 = pnand %p1084_p0, %p139_p1 }
   0x5   : > { %v1301_v0 = vld [vmem:[%s1670_s1 + $0x40] sm:$0xff] (!%p140_p2)   ;;  %v1305_v4 = vld [vmem:[%s1670_s1 + $0x48] sm:$0xff] (!%p140_p2)   ;;  %v1309_v8 = vld [vmem:[%s1670_s1 + $0x50] sm:$0xff] (!%p140_p2)   ;;  %s1085_s17 = sshll.u32 (!%p140_p2), %s1080_s13, 1  ;;  %vm1395_vm0 = vmmov (!%p140_p2), 0  }
   0x6   : > { %143 = sbr.rel (%p140_p2) target bundleno = 319 (0x13f), region = 32  ;;  %v1302_v1 = vld [vmem:[%s1670_s1] sm:$0xff] (!%p140_p2)   ;;  %1173 = vmatprep.subr.bf16.mxu0 (!%p140_p2), %v1301_v0  ;;  %v1306_v5 = vld [vmem:[%s1670_s1 + $0x8] sm:$0xff] (!%p140_p2)   ;;  %v1310_v9 = vld [vmem:[%s1670_s1 + $0x10] sm:$0xff] (!%p140_p2)   ;;  %p165_p3 = scmp.lt.s32.totalorder (!%p140_p2), %s1085_s17, 3 }
   0x7   : > { %v1303_v2 = vld [vmem:[%s1670_s1 + $0xc0] sm:$0xff] (!%p140_p2)   ;;  %1174 = vmatpush3.bf16.msra.mxu0 (!%p140_p2), %v1302_v1  ;;  %v1307_v6 = vld [vmem:[%s1670_s1 + $0xc8] sm:$0xff] (!%p140_p2)   ;;  %v1311_v10 = vld [vmem:[%s1670_s1 + $0xd0] sm:$0xff] (!%p140_p2)  }
   0x8   : > { %v1304_v3 = vld [vmem:[%s1670_s1 + $0x80] sm:$0xff] (!%p140_p2)   ;;  %1195 = vmatprep.subr.bf16.mxu1 (!%p140_p2), %v1303_v2  ;;  %1175 = vmatprep.subr.bf16.mxu0 (!%p140_p2), %v1305_v4  ;;  %v1308_v7 = vld [vmem:[%s1670_s1 + $0x88] sm:$0xff] (!%p140_p2)   ;;  %v1312_v11 = vld [vmem:[%s1670_s1 + $0x90] sm:$0xff] (!%p140_p2)  }
   0x9   : > { %1196 = vmatpush3.bf16.msra.mxu1 (!%p140_p2), %v1304_v3  ;;  %v1313_v12 = vld [vmem:[%s1670_s1 + $0x58] sm:$0xff] (!%p140_p2)   ;;  %v1317_v16 = vld [vmem:[%s1670_s1 + $0x60] sm:$0xff] (!%p140_p2)   ;;  %v1321_v20 = vld [vmem:[%s1670_s1 + $0x68] sm:$0xff] (!%p140_p2)  }
   0xa   : > { %1197 = vmatprep.subr.bf16.mxu1 (!%p140_p2), %v1307_v6  ;;  %v1314_v13 = vld [vmem:[%s1670_s1 + $0x18] sm:$0xff] (!%p140_p2)   ;;  %v1318_v17 = vld [vmem:[%s1670_s1 + $0x20] sm:$0xff] (!%p140_p2)   ;;  %v1322_v21 = vld [vmem:[%s1670_s1 + $0x28] sm:$0xff] (!%p140_p2)   ;;  %v1394_v6 = vmov (!%p140_p2), 0.0  }
   0xb   : > { %1176 = vmatpush3.bf16.msra.mxu0 (!%p140_p2), %v1306_v5  ;;  %v1315_v14 = vld [vmem:[%s1670_s1 + $0xd8] sm:$0xff] (!%p140_p2)   ;;  %v1319_v18 = vld [vmem:[%s1670_s1 + $0xe0] sm:$0xff] (!%p140_p2)   ;;  %v1323_v22 = vld [vmem:[%s1670_s1 + $0xe8] sm:$0xff] (!%p140_p2)  }
   0xc   : > { %1177 = vmatprep.subr.bf16.mxu0 (!%p140_p2), %v1309_v8  ;;  %v1316_v15 = vld [vmem:[%s1670_s1 + $0x98] sm:$0xff] (!%p140_p2)   ;;  %v1320_v19 = vld [vmem:[%s1670_s1 + $0xa0] sm:$0xff] (!%p140_p2)   ;;  %v1324_v23 = vld [vmem:[%s1670_s1 + $0xa8] sm:$0xff] (!%p140_p2)  }
   0xd   : > { %1198 = vmatpush3.bf16.msra.mxu1 %v1308_v7  ;;  %s1674_s17 = smov (!%p165_p3, %s1085_s17), 3  ;;  %v1325_v24 = vld [vmem:[%s1670_s1 + $0x70] sm:$0xff]   ;;  %v1329_v28 = vld [vmem:[%s1670_s1 + $0x78] sm:$0xff]   ;;  %v1336_v34 = vld [vmem:[%s1670_s1 + $0x140] sm:$0xff]  }
   0xe   : > { %1199 = vmatprep.subr.bf16.mxu1 %v1311_v10  ;;  %s1290_s14 = smul.u32 36, %s1674_s17  ;;  %v1326_v25 = vld [vmem:[%s1670_s1 + $0x30] sm:$0xff]   ;;  %v1330_v29 = vld [vmem:[%s1670_s1 + $0x38] sm:$0xff]   ;;  %v1340_v37 = vld [vmem:[%s1670_s1 + $0x100] sm:$0xff]  }
   0xf   : > { %1178 = vmatpush3.bf16.msra.mxu0 %v1310_v9  ;;  %v1327_v26 = vld [vmem:[%s1670_s1 + $0xf0] sm:$0xff]   ;;  %v1331_v30 = vld [vmem:[%s1670_s1 + $0xf8] sm:$0xff]   ;;  %v1341_v38 = vld [vmem:[%s1670_s1 + $0x1c0] sm:$0xff]  }
  0x10   : > { %1179 = vmatprep.subr.bf16.mxu0 %v1313_v12  ;;  %v1328_v27 = vld [vmem:[%s1670_s1 + $0xb0] sm:$0xff]   ;;  %s1519_s13 = scalar_lea.vmem %s1669_s0, %s1290_s14  ;;  %v1335_v33 = vld [vmem:[%s1670_s1 + $0xb8] sm:$0xff]   ;;  %v1342_v39 = vld [vmem:[%s1670_s1 + $0x180] sm:$0xff]  }
  0x11   : > { %1200 = vmatpush3.bf16.msra.mxu1 %v1312_v11  ;;  %v1332_v31 = vld [vmem:[%s1519_s13] ss:$36 sps:$4 sm:$0xff]   ;;  %v1337_v35 = vld [vmem:[%s1519_s13 + $0x8] ss:$36 sps:$4 sm:$0xff]   ;;  %v1347_v44 = vld [vmem:[%s1670_s1 + $0x150] sm:$0xff]  }
  0x12   : > { %1201 = vmatprep.subr.bf16.mxu1 %v1315_v14  ;;  %v1334_v32 = vld [vmem:[%s1519_s13 + $0x4] ss:$36 sps:$4 sm:$0xff]   ;;  %v1339_v36 = vld [vmem:[%s1519_s13 + $0xc] ss:$36 sps:$4 sm:$0xff]   ;;  %v1351_v48 = vld [vmem:[%s1670_s1 + $0x158] sm:$0xff]  }
  0x13   : > { %1180 = vmatpush3.bf16.msra.mxu0 %v1314_v13  ;;  %849 = vmatprep.mubr.bf16.mxu0 %v1334_v32  ;;  %v1343_v40 = vld [vmem:[%s1670_s1 + $0x148] sm:$0xff]   ;;  %v1348_v45 = vld [vmem:[%s1670_s1 + $0x110] sm:$0xff]   ;;  %v1352_v49 = vld [vmem:[%s1670_s1 + $0x118] sm:$0xff]  }
  0x14   : > { %1181 = vmatprep.subr.bf16.mxu0 %v1317_v16  ;;  %890 = vmatprep.mubr.bf16.mxu1 %v1339_v36  ;;  %v1344_v41 = vld [vmem:[%s1670_s1 + $0x108] sm:$0xff]   ;;  %v1349_v46 = vld [vmem:[%s1670_s1 + $0x1d0] sm:$0xff]   ;;  %v1353_v50 = vld [vmem:[%s1670_s1 + $0x1d8] sm:$0xff]  }
  0x15   : > { %1202 = vmatpush3.bf16.msra.mxu1 %v1316_v15  ;;  %v1345_v42 = vld [vmem:[%s1670_s1 + $0x1c8] sm:$0xff]   ;;  %v1350_v47 = vld [vmem:[%s1670_s1 + $0x190] sm:$0xff]   ;;  %v1354_v51 = vld [vmem:[%s1670_s1 + $0x198] sm:$0xff]  }
  0x16   : > { %1203 = vmatprep.subr.bf16.mxu1 %v1319_v18  ;;  %v1346_v43 = vld [vmem:[%s1670_s1 + $0x188] sm:$0xff]   ;;  %v1355_v52 = vld [vmem:[%s1670_s1 + $0x160] sm:$0xff]   ;;  %v1363_v60 = vld [vmem:[%s1670_s1 + $0x170] sm:$0xff]  }
  0x17   : > { %1182 = vmatpush3.bf16.msra.mxu0 %v1318_v17  ;;  %v1356_v53 = vld [vmem:[%s1670_s1 + $0x120] sm:$0xff]   ;;  %v1359_v56 = vld [vmem:[%s1670_s1 + $0x168] sm:$0xff]   ;;  %v1364_v61 = vld [vmem:[%s1670_s1 + $0x130] sm:$0xff]  }
  0x18   : > { %1183 = vmatprep.subr.bf16.mxu0 %v1321_v20  ;;  %v1357_v54 = vld [vmem:[%s1670_s1 + $0x1e0] sm:$0xff]   ;;  %v1360_v57 = vld [vmem:[%s1670_s1 + $0x128] sm:$0xff]   ;;  %v1365_v62 = vld [vmem:[%s1670_s1 + $0x1f0] sm:$0xff]  }
  0x19   : > { %1204 = vmatpush3.bf16.msra.mxu1 %v1320_v19  ;;  %v1358_v55 = vld [vmem:[%s1670_s1 + $0x1a0] sm:$0xff]   ;;  %v1361_v58 = vld [vmem:[%s1670_s1 + $0x1e8] sm:$0xff]   ;;  %v1366_v63 = vld [vmem:[%s1670_s1 + $0x1b0] sm:$0xff]  }
  0x1a   : > { %1205 = vmatprep.subr.bf16.mxu1 %v1323_v22  ;;  %v1362_v59 = vld [vmem:[%s1670_s1 + $0x1a8] sm:$0xff]   ;;  %v1367_v0 = vld [vmem:[%s1670_s1 + $0x178] sm:$0xff]   ;;  %v1370_v3 = vld [vmem:[%s1519_s13 + $0x10] ss:$36 sps:$4 sm:$0xff]  }
  0x1b   : > { %1184 = vmatpush3.bf16.msra.mxu0 %v1322_v21  ;;  %v1368_v1 = vld [vmem:[%s1670_s1 + $0x138] sm:$0xff]   ;;  %v1377_v9 = vld [vmem:[%s1670_s1 + $0x200] sm:$0xff]   ;;  %v1378_v10 = vld [vmem:[%s1670_s1 + $0x208] sm:$0xff]  }
  0x1c   : > { %1185 = vmatprep.subr.bf16.mxu0 %v1325_v24  ;;  %v1369_v2 = vld [vmem:[%s1670_s1 + $0x1f8] sm:$0xff]   ;;  %v1379_v11 = vld [vmem:[%s1670_s1 + $0x210] sm:$0xff]   ;;  %v1381_v13 = vld [vmem:[%s1670_s1 + $0x220] sm:$0xff]  }
  0x1d   : > { %1206 = vmatpush3.bf16.msra.mxu1 %v1324_v23  ;;  %v1372_v4 = vld [vmem:[%s1519_s13 + $0x14] ss:$36 sps:$4 sm:$0xff]   ;;  %v1376_v8 = vld [vmem:[%s1519_s13 + $0x1c] ss:$36 sps:$4 sm:$0xff]   ;;  %v1382_v14 = vld [vmem:[%s1670_s1 + $0x228] sm:$0xff]  }
  0x1e   : > { %1207 = vmatprep.subr.bf16.mxu1 %v1327_v26  ;;  %v1373_v5 = vld [vmem:[%s1670_s1 + $0x1b8] sm:$0xff]   ;;  %v1383_v15 = vld [vmem:[%s1670_s1 + $0x230] sm:$0xff]   ;;  %v1385_v17 = vld [vmem:[%s1519_s13 + $0x20] ss:$36 sps:$4 sm:$0xff]  }
  0x1f   : > { %1186 = vmatpush3.bf16.msra.mxu0 %v1326_v25  ;;  %v1374_v7 = vld [vmem:[%s1519_s13 + $0x18] ss:$36 sps:$4 sm:$0xff]   ;;  %v1089_v19 = vld [vmem:[%s1671_s2] ss:$0 sm:$0xff]  ;;  %s1088_s13 = sshll.u32 %s1674_s17, 3 }
  0x20   : > { %1187 = vmatprep.subr.bf16.mxu0 %v1329_v28  ;;  %v1380_v12 = vld [vmem:[%s1670_s1 + $0x218] sm:$0xff]   ;;  %s175_s20 = scalar_lea.vmem %s1672_s3, %s1088_s13 }
  0x21   : > { %1208 = vmatpush3.bf16.msra.mxu1 %v1328_v27  ;;  %v1384_v16 = vld [vmem:[%s1670_s1 + $0x238] sm:$0xff]  }
  0x22   : > { %1209 = vmatprep.subr.bf16.mxu1 %v1331_v30 }
  0x23   : > { %1188 = vmatpush3.bf16.msra.mxu0 %v1330_v29 }
  0x24   : > { %1217 = vmatprep.subr.bf16.mxu0 %v1336_v34 }
  0x25   : > { %1210 = vmatpush3.bf16.msra.mxu1 %v1335_v33 }
  0x26   : > { %850 = vmatmul.mubr.bf16.vlgmr.msra.gmra.mrb[0].mxu0 %v1332_v31  ;;  %1239 = vmatprep.subr.bf16.mxu1 %v1341_v38 }
  0x27   : > { %1218 = vmatpush3.bf16.msra.mxu0 %v1340_v37  ;;  %931 = vmatprep.mubr.bf16.mxu0 %v1372_v4 }
  0x28   : > { %891 = vmatmul.mubr.bf16.vlgmr.msra.gmra.mrb[0].mxu1 %v1337_v35  ;;  %1219 = vmatprep.subr.bf16.mxu0 %v1343_v40 }
  0x29   : > { %1240 = vmatpush3.bf16.msra.mxu1 %v1342_v39  ;;  %972 = vmatprep.mubr.bf16.mxu1 %v1376_v8 }
  0x2a   : > { %1241 = vmatprep.subr.bf16.mxu1 %v1345_v42 }
  0x2b   : > { %1220 = vmatpush3.bf16.msra.mxu0 %v1344_v41 }
  0x2c   : > { %1221 = vmatprep.subr.bf16.mxu0 %v1347_v44 }
  0x2d   : > { %1242 = vmatpush3.bf16.msra.mxu1 %v1346_v43 }
  0x2e   : > { %1243 = vmatprep.subr.bf16.mxu1 %v1349_v46 }
  0x2f   : > { %1222 = vmatpush3.bf16.msra.mxu0 %v1348_v45 }
  0x30   : > { %1223 = vmatprep.subr.bf16.mxu0 %v1351_v48 }
  0x31   : > { %1244 = vmatpush3.bf16.msra.mxu1 %v1350_v47 }
  0x32   : > { %1245 = vmatprep.subr.bf16.mxu1 %v1353_v50 }
  0x33   : > { %1224 = vmatpush3.bf16.msra.mxu0 %v1352_v49 }
  0x34   : > { %1225 = vmatprep.subr.bf16.mxu0 %v1355_v52 }
  0x35   : > { %1246 = vmatpush3.bf16.msra.mxu1 %v1354_v51 }
  0x36   : > { %1247 = vmatprep.subr.bf16.mxu1 %v1357_v54 }
  0x37   : > { %1226 = vmatpush3.bf16.msra.mxu0 %v1356_v53 }
  0x38   : > { %1227 = vmatprep.subr.bf16.mxu0 %v1359_v56 }
  0x39   : > { %1248 = vmatpush3.bf16.msra.mxu1 %v1358_v55 }
  0x3a   : > { %1249 = vmatprep.subr.bf16.mxu1 %v1361_v58 }
  0x3b   : > { %1228 = vmatpush3.bf16.msra.mxu0 %v1360_v57 }
  0x3c   : > { %1229 = vmatprep.subr.bf16.mxu0 %v1363_v60 }
  0x3d   : > { %1250 = vmatpush3.bf16.msra.mxu1 %v1362_v59 }
  0x3e   : > { %1251 = vmatprep.subr.bf16.mxu1 %v1365_v62 }
  0x3f   : > { %1230 = vmatpush3.bf16.msra.mxu0 %v1364_v61 }
  0x40   : > { %1231 = vmatprep.subr.bf16.mxu0 %v1367_v0 }
  0x41   : > { %1252 = vmatpush3.bf16.msra.mxu1 %v1366_v63 }
  0x42   : > { %1253 = vmatprep.subr.bf16.mxu1 %v1369_v2 }
  0x43   : > { %1232 = vmatpush3.bf16.msra.mxu0 %v1368_v1 }
  0x44   : > { %1270 = vmatprep.subr.bf16.mxu0 %v1394_v6 }
  0x45   : > { %1254 = vmatpush3.bf16.msra.mxu1 %v1373_v5 }
  0x46   : > { %932 = vmatmul.mubr.bf16.vlgmr.msra.gmra.mrb[4].mxu0 %v1370_v3 }
  0x47   : > { %1286 = vmatprep.mubr.msk.bf16.mxu0 %vm1395_vm0, %v1394_v6  ;;  %1271 = vmatpush3.bf16.msra.mxu0 %v1377_v9 }
  0x48   : > { %973 = vmatmul.mubr.bf16.vlgmr.msra.gmra.mrb[4].mxu1 %v1374_v7  ;;  %1272 = vmatprep.subr.bf16.mxu0 %v1394_v6 }
  0x4b   : > { %1273 = vmatpush3.bf16.msra.mxu0 %v1378_v10 }
  0x4c   : > { %1274 = vmatprep.subr.bf16.mxu0 %v1394_v6 }
  0x4f   : > { %1275 = vmatpush3.bf16.msra.mxu0 %v1379_v11 }
  0x50   : > { %1276 = vmatprep.subr.bf16.mxu0 %v1394_v6 }
  0x53   : > { %1277 = vmatpush3.bf16.msra.mxu0 %v1380_v12 }
  0x54   : > { %1278 = vmatprep.subr.bf16.mxu0 %v1394_v6 }
  0x57   : > { %1279 = vmatpush3.bf16.msra.mxu0 %v1381_v13 }
  0x58   : > { %1280 = vmatprep.subr.bf16.mxu0 %v1394_v6 }
  0x5b   : > { %1281 = vmatpush3.bf16.msra.mxu0 %v1382_v14 }
  0x5c   : > { %1282 = vmatprep.subr.bf16.mxu0 %v1394_v6 }
  0x5f   : > { %1283 = vmatpush3.bf16.msra.mxu0 %v1383_v15 }
  0x60   : > { %1284 = vmatprep.subr.bf16.mxu0 %v1394_v6 }
  0x63   : > { %1285 = vmatpush3.bf16.msra.mxu0 %v1384_v16 }
  0x66   : > { %1287 = vmatmul.mubr.bf16.vlgmr.msra.gmra.mrb[8].mxu0 %v1385_v17 }
  0xf9   : > { %v1189_v18 = vpop.f32.mrb[0].mxu0 }
  0xfa   : > { %v1190_v20 = vpop.f32.mrb[1].mxu0 }
  0xfb   : > { %v1191_v21 = vadd.f32 %v1190_v20, %v1189_v18  ;;  %v1192_v22 = vpop.f32.mrb[2].mxu0  ;;  %v1211_v23 = vpop.f32.mrb[0].mxu1 }
  0xfc   : > { %v1193_v24 = vpop.f32.mrb[3].mxu0  ;;  %v1212_v27 = vpop.f32.mrb[1].mxu1 }
  0xfd   : > { %v852_v25 = vadd.f32 %v1191_v21, %v1089_v19  ;;  %v1194_v26 = vadd.f32 %v1193_v24, %v1192_v22  ;;  %v1213_v28 = vadd.f32 %v1212_v27, %v1211_v23  ;;  %v1214_v29 = vpop.f32.mrb[2].mxu1 }
  0xfe   : > { %v1215_v31 = vpop.f32.mrb[3].mxu1 }
  0xff   : > { %v855_v30 = vadd.f32 %v1194_v26, %v1089_v19  ;;  %v893_v32 = vadd.f32 %v1213_v28, %v852_v25  ;;  %v1216_v33 = vadd.f32 %v1215_v31, %v1214_v29 }
 0x101   : > { %v896_v34 = vadd.f32 %v1216_v33, %v855_v30 }
 0x119   : > { %v1233_v35 = vpop.f32.mrb[4].mxu0 }
 0x11a   : > { %v1234_v36 = vpop.f32.mrb[5].mxu0 }
 0x11b   : > { %v1235_v37 = vadd.f32 %v1234_v36, %v1233_v35  ;;  %v1236_v38 = vpop.f32.mrb[6].mxu0  ;;  %v1255_v39 = vpop.f32.mrb[4].mxu1 }
 0x11c   : > { %v1237_v40 = vpop.f32.mrb[7].mxu0  ;;  %v1256_v43 = vpop.f32.mrb[5].mxu1 }
 0x11d   : > { %v934_v41 = vadd.f32 %v1235_v37, %v893_v32  ;;  %v1238_v42 = vadd.f32 %v1237_v40, %v1236_v38  ;;  %v1257_v44 = vadd.f32 %v1256_v43, %v1255_v39  ;;  %v1258_v45 = vpop.f32.mrb[6].mxu1 }
 0x11e   : > { %v1259_v47 = vpop.f32.mrb[7].mxu1 }
 0x11f   : > { %v937_v46 = vadd.f32 %v1238_v42, %v896_v34  ;;  %v1260_v48 = vadd.f32 %v1259_v47, %v1258_v45  ;;  %v975_v49 = vadd.f32 %v1257_v44, %v934_v41 }
 0x121   : > { %v978_v50 = vadd.f32 %v1260_v48, %v937_v46 }
 0x139   : > { %v1015_v51 = vpop.f32.mrb[8].mxu0 }
 0x13a   : > { %v1016_v52 = vadd.f32 %v1015_v51, %v975_v49  ;;  %v1288_v53 = vpop.f32.mrb[9].mxu0 }
 0x13b   : > { %v1018_v54 = vpop.f32.mrb[10].mxu0 }
 0x13c   : > { %1022 = vst [vmem:[%s175_s20] sm:$0xff] %v1016_v52  ;;  %v1019_v55 = vadd.f32 %v1018_v54, %v978_v50  ;;  %v1289_v56 = vpop.f32.mrb[11].mxu0 }
 0x13e   : > { %1023 = vst [vmem:[%s175_s20 + $0x8] sm:$0xff] %v1019_v55 }
 0x13f PF: > { %s13_s12 = sadd.s32 1, %s1392_s12  }
 0x140   : > { %p10_p4 = scmp.ge.s32.totalorder %s13_s12, 4  }
 0x142   :  { %12 = sbr.rel (!%p10_p4) target bundleno = 1 (0x1), region = 62 }

// kernel: _lambda_.18
= control target key start
LH: loop header
LB: loop body
LE: loop exit
PB: predicated region body
PF: predicated region fallthrough
CT: control target
= control target key end

     0   :  { %s1847_s12 = smov 0   ;;  %s2316_s0 = inlined_call_operand.vmem [shape: bf16[32,1152], index: 0, kind: input, shape index: {}]   ;;  %s2317_s1 = inlined_call_operand.vmem [shape: bf16[1152,256], index: 1, kind: input, shape index: {}]   ;;  %s2318_s2 = inlined_call_operand.vmem [shape: f32[1,256], index: 2, kind: input, shape index: {}]   ;;  %s2319_s3 = inlined_call_operand.vmem [shape: f32[32,256], index: 3, kind: output, shape index: {}]  }
   0x1 LB: > { %s1393_s13 = sadd.s32 4294967295, %s1824_s12   ;;  %p1397_p0 = scmp.ge.s32.totalorder %s1824_s12, 1  ;;  %s1824_s12 = sphi %s1847_s12, %s13_s12  }
   0x2   : > { %p139_p1 = scmp.lt.s32.totalorder %s1824_s12, 3 }
   0x4   : > { %p140_p2 = pnand %p1397_p0, %p139_p1 }
   0x5   : > { %v1589_v0 = vld [vmem:[%s2317_s1 + $0x4] ss:$8 sps:$4 sm:$0xff] (!%p140_p2)   ;;  %v1593_v2 = vld [vmem:[%s2317_s1] ss:$8 sps:$4 sm:$0xff] (!%p140_p2)   ;;  %v1595_v4 = vld [vmem:[%s2317_s1 + $0x14] ss:$8 sps:$4 sm:$0xff] (!%p140_p2)  }
   0x6   : > { %143 = sbr.rel (%p140_p2) target bundleno = 387 (0x183), region = 32  ;;  %v1591_v1 = vld [vmem:[%s2317_s1 + $0x204] ss:$8 sps:$4 sm:$0xff] (!%p140_p2)   ;;  %1112 = vmatprep.subr.bf16.mxu1 (!%p140_p2), %v1589_v0  ;;  %v1594_v3 = vld [vmem:[%s2317_s1 + $0x200] ss:$8 sps:$4 sm:$0xff] (!%p140_p2)   ;;  %s1398_s24 = sshll.u32 (!%p140_p2), %s1393_s13, 1 }
   0x7   : > { %1198 = vmatprep.subr.bf16.mxu0 (!%p140_p2), %v1591_v1  ;;  %1113 = vmatpush1.bf16.msra.mxu1 (!%p140_p2), %v1593_v2  ;;  %v1597_v5 = vld [vmem:[%s2317_s1 + $0x214] ss:$8 sps:$4 sm:$0xff] (!%p140_p2)   ;;  %v1599_v6 = vld [vmem:[%s2317_s1 + $0x10] ss:$8 sps:$4 sm:$0xff] (!%p140_p2)   ;;  %v1601_v8 = vld [vmem:[%s2317_s1 + $0x24] ss:$8 sps:$4 sm:$0xff] (!%p140_p2)  }
   0x8   : > { %1199 = vmatpush1.bf16.msra.mxu0 (!%p140_p2), %v1594_v3  ;;  %1114 = vmatprep.subr.bf16.mxu1 (!%p140_p2), %v1595_v4  ;;  %v1600_v7 = vld [vmem:[%s2317_s1 + $0x210] ss:$8 sps:$4 sm:$0xff] (!%p140_p2)   ;;  %v1603_v9 = vld [vmem:[%s2317_s1 + $0x224] ss:$8 sps:$4 sm:$0xff] (!%p140_p2)   ;;  %v1605_v10 = vld [vmem:[%s2317_s1 + $0x20] ss:$8 sps:$4 sm:$0xff] (!%p140_p2)  }
   0x9   : > { %1200 = vmatprep.subr.bf16.mxu0 (!%p140_p2), %v1597_v5  ;;  %v1606_v11 = vld [vmem:[%s2317_s1 + $0x220] ss:$8 sps:$4 sm:$0xff] (!%p140_p2)   ;;  %v1607_v12 = vld [vmem:[%s2317_s1 + $0x34] ss:$8 sps:$4 sm:$0xff] (!%p140_p2)   ;;  %v1611_v14 = vld [vmem:[%s2317_s1 + $0x30] ss:$8 sps:$4 sm:$0xff] (!%p140_p2)  }
   0xa   : > { %v1609_v13 = vld [vmem:[%s2317_s1 + $0x234] ss:$8 sps:$4 sm:$0xff] (!%p140_p2)   ;;  %v1612_v15 = vld [vmem:[%s2317_s1 + $0x230] ss:$8 sps:$4 sm:$0xff] (!%p140_p2)   ;;  %v1613_v16 = vld [vmem:[%s2317_s1 + $0x44] ss:$8 sps:$4 sm:$0xff] (!%p140_p2)  }
   0xb   : > { %1115 = vmatpush1.bf16.msra.mxu1 (!%p140_p2), %v1599_v6  ;;  %v1615_v17 = vld [vmem:[%s2317_s1 + $0x244] ss:$8 sps:$4 sm:$0xff] (!%p140_p2)   ;;  %v1617_v18 = vld [vmem:[%s2317_s1 + $0x40] ss:$8 sps:$4 sm:$0xff] (!%p140_p2)   ;;  %v1619_v20 = vld [vmem:[%s2317_s1 + $0x54] ss:$8 sps:$4 sm:$0xff] (!%p140_p2)  }
   0xc   : > { %1201 = vmatpush1.bf16.msra.mxu0 (!%p140_p2), %v1600_v7  ;;  %1116 = vmatprep.subr.bf16.mxu1 (!%p140_p2), %v1601_v8  ;;  %v1618_v19 = vld [vmem:[%s2317_s1 + $0x240] ss:$8 sps:$4 sm:$0xff] (!%p140_p2)   ;;  %v1621_v21 = vld [vmem:[%s2317_s1 + $0x254] ss:$8 sps:$4 sm:$0xff] (!%p140_p2)   ;;  %v1623_v22 = vld [vmem:[%s2317_s1 + $0x50] ss:$8 sps:$4 sm:$0xff] (!%p140_p2)  }
   0xd   : > { %1202 = vmatprep.subr.bf16.mxu0 %v1603_v9  ;;  %v1624_v23 = vld [vmem:[%s2317_s1 + $0x250] ss:$8 sps:$4 sm:$0xff]   ;;  %v1625_v24 = vld [vmem:[%s2317_s1 + $0x64] ss:$8 sps:$4 sm:$0xff]   ;;  %v1629_v26 = vld [vmem:[%s2317_s1 + $0x60] ss:$8 sps:$4 sm:$0xff]  }
   0xe   : > { %v1627_v25 = vld [vmem:[%s2317_s1 + $0x264] ss:$8 sps:$4 sm:$0xff]   ;;  %v1630_v27 = vld [vmem:[%s2317_s1 + $0x260] ss:$8 sps:$4 sm:$0xff]   ;;  %v1631_v28 = vld [vmem:[%s2317_s1 + $0x74] ss:$8 sps:$4 sm:$0xff]  }
   0xf   : > { %1117 = vmatpush1.bf16.msra.mxu1 %v1605_v10  ;;  %v1633_v29 = vld [vmem:[%s2317_s1 + $0x274] ss:$8 sps:$4 sm:$0xff]   ;;  %v1635_v30 = vld [vmem:[%s2317_s1 + $0x70] ss:$8 sps:$4 sm:$0xff]   ;;  %v1637_v32 = vld [vmem:[%s2317_s1 + $0x84] ss:$8 sps:$4 sm:$0xff]  }
  0x10   : > { %1203 = vmatpush1.bf16.msra.mxu0 %v1606_v11  ;;  %1118 = vmatprep.subr.bf16.mxu1 %v1607_v12  ;;  %v1636_v31 = vld [vmem:[%s2317_s1 + $0x270] ss:$8 sps:$4 sm:$0xff]   ;;  %p166_p3 = scmp.lt.s32.totalorder %s1398_s24, 3  ;;  %v1639_v33 = vld [vmem:[%s2317_s1 + $0x284] ss:$8 sps:$4 sm:$0xff]  }
  0x11   : > { %1204 = vmatprep.subr.bf16.mxu0 %v1609_v13  ;;  %v1641_v34 = vld [vmem:[%s2317_s1 + $0x80] ss:$8 sps:$4 sm:$0xff]   ;;  %v1643_v36 = vld [vmem:[%s2317_s1 + $0x94] ss:$8 sps:$4 sm:$0xff]   ;;  %v1647_v38 = vld [vmem:[%s2317_s1 + $0x90] ss:$8 sps:$4 sm:$0xff]  }
  0x12   : > { %v1642_v35 = vld [vmem:[%s2317_s1 + $0x280] ss:$8 sps:$4 sm:$0xff]   ;;  %s2321_s24 = smov (!%p166_p3, %s1398_s24), 3  ;;  %v1645_v37 = vld [vmem:[%s2317_s1 + $0x294] ss:$8 sps:$4 sm:$0xff]  }
  0x13   : > { %1119 = vmatpush1.bf16.msra.mxu1 %v1611_v14  ;;  %v1648_v39 = vld [vmem:[%s2317_s1 + $0x290] ss:$8 sps:$4 sm:$0xff]   ;;  %v1649_v40 = vld [vmem:[%s2317_s1 + $0xa4] ss:$8 sps:$4 sm:$0xff]   ;;  %s1579_s21 = smul.u32 36, %s2321_s24  ;;  %s1558_s16 = sshll.u32 %s2321_s24, 4 }
  0x14   : > { %1205 = vmatpush1.bf16.msra.mxu0 %v1612_v15  ;;  %1120 = vmatprep.subr.bf16.mxu1 %v1613_v16  ;;  %v1651_v41 = vld [vmem:[%s2317_s1 + $0x2a4] ss:$8 sps:$4 sm:$0xff]   ;;  %v1653_v42 = vld [vmem:[%s2317_s1 + $0xa0] ss:$8 sps:$4 sm:$0xff]   ;;  %v1655_v44 = vld [vmem:[%s2317_s1 + $0xb4] ss:$8 sps:$4 sm:$0xff]   ;;  %s177_s18 = scalar_lea.vmem %s2319_s3, %s1558_s16 }
  0x15   : > { %1206 = vmatprep.subr.bf16.mxu0 %v1615_v17  ;;  %v1654_v43 = vld [vmem:[%s2317_s1 + $0x2a0] ss:$8 sps:$4 sm:$0xff]   ;;  %s1998_s13 = scalar_lea.vmem %s2316_s0, %s1579_s21  ;;  %v1657_v45 = vld [vmem:[%s2317_s1 + $0x2b4] ss:$8 sps:$4 sm:$0xff]   ;;  %v1659_v46 = vld [vmem:[%s2317_s1 + $0xb0] ss:$8 sps:$4 sm:$0xff]  }
  0x16   : > { %v1660_v47 = vld [vmem:[%s2317_s1 + $0x2b0] ss:$8 sps:$4 sm:$0xff]   ;;  %v1687_v48 = vld [vmem:[%s1998_s13 + $0x4] ss:$36 sps:$4 sm:$0xff]   ;;  %v1667_v54 = vld [vmem:[%s2317_s1 + $0xd4] ss:$8 sps:$4 sm:$0xff]  }
  0x17   : > { %1121 = vmatpush1.bf16.msra.mxu1 %v1617_v18  ;;  %v1661_v49 = vld [vmem:[%s2317_s1 + $0xc4] ss:$8 sps:$4 sm:$0xff]   ;;  %1144 = vmatprep.mubr.bf16.mxu1 %v1687_v48  ;;  %v1693_v51 = vld [vmem:[%s1998_s13 + $0x14] ss:$36 sps:$4 sm:$0xff]   ;;  %v1665_v52 = vld [vmem:[%s2317_s1 + $0xc0] ss:$8 sps:$4 sm:$0xff]  }
  0x18   : > { %1207 = vmatpush1.bf16.msra.mxu0 %v1618_v19  ;;  %1122 = vmatprep.subr.bf16.mxu1 %v1619_v20  ;;  %v1663_v50 = vld [vmem:[%s2317_s1 + $0x2c4] ss:$8 sps:$4 sm:$0xff]   ;;  %v1666_v53 = vld [vmem:[%s2317_s1 + $0x2c0] ss:$8 sps:$4 sm:$0xff]   ;;  %v1669_v55 = vld [vmem:[%s2317_s1 + $0x2d4] ss:$8 sps:$4 sm:$0xff]  }
  0x19   : > { %1208 = vmatprep.subr.bf16.mxu0 %v1621_v21  ;;  %1230 = vmatprep.mubr.bf16.mxu0 %v1693_v51  ;;  %v1671_v56 = vld [vmem:[%s2317_s1 + $0xd0] ss:$8 sps:$4 sm:$0xff]   ;;  %v1673_v58 = vld [vmem:[%s2317_s1 + $0xe4] ss:$8 sps:$4 sm:$0xff]   ;;  %v1677_v60 = vld [vmem:[%s2317_s1 + $0xe0] ss:$8 sps:$4 sm:$0xff]  }
  0x1a   : > { %v1672_v57 = vld [vmem:[%s2317_s1 + $0x2d0] ss:$8 sps:$4 sm:$0xff]   ;;  %v1675_v59 = vld [vmem:[%s2317_s1 + $0x2e4] ss:$8 sps:$4 sm:$0xff]   ;;  %v1678_v61 = vld [vmem:[%s2317_s1 + $0x2e0] ss:$8 sps:$4 sm:$0xff]  }
  0x1b   : > { %1123 = vmatpush1.bf16.msra.mxu1 %v1623_v22  ;;  %v1679_v62 = vld [vmem:[%s2317_s1 + $0xf4] ss:$8 sps:$4 sm:$0xff]   ;;  %v1683_v0 = vld [vmem:[%s2317_s1 + $0xf0] ss:$8 sps:$4 sm:$0xff]   ;;  %v1690_v2 = vld [vmem:[%s2317_s1 + $0x104] ss:$8 sps:$4 sm:$0xff]  }
  0x1c   : > { %1209 = vmatpush1.bf16.msra.mxu0 %v1624_v23  ;;  %1124 = vmatprep.subr.bf16.mxu1 %v1625_v24  ;;  %v1681_v63 = vld [vmem:[%s2317_s1 + $0x2f4] ss:$8 sps:$4 sm:$0xff]   ;;  %v1684_v1 = vld [vmem:[%s2317_s1 + $0x2f0] ss:$8 sps:$4 sm:$0xff]   ;;  %v1696_v3 = vld [vmem:[%s2317_s1 + $0x304] ss:$8 sps:$4 sm:$0xff]  }
  0x1d   : > { %1210 = vmatprep.subr.bf16.mxu0 %v1627_v25  ;;  %v1685_v4 = vld [vmem:[%s1998_s13] ss:$36 sps:$4 sm:$0xff]   ;;  %v1691_v6 = vld [vmem:[%s1998_s13 + $0x10] ss:$36 sps:$4 sm:$0xff]  }
  0x1e   : > { %v1688_v5 = vld [vmem:[%s2317_s1 + $0x100] ss:$8 sps:$4 sm:$0xff]   ;;  %v1699_v8 = vld [vmem:[%s2317_s1 + $0x114] ss:$8 sps:$4 sm:$0xff]   ;;  %v1697_v10 = vld [vmem:[%s2317_s1 + $0x110] ss:$8 sps:$4 sm:$0xff]  }
  0x1f   : > { %1125 = vmatpush1.bf16.msra.mxu1 %v1629_v26  ;;  %v1694_v7 = vld [vmem:[%s2317_s1 + $0x300] ss:$8 sps:$4 sm:$0xff]   ;;  %v1702_v9 = vld [vmem:[%s2317_s1 + $0x314] ss:$8 sps:$4 sm:$0xff]   ;;  %v1700_v11 = vld [vmem:[%s2317_s1 + $0x310] ss:$8 sps:$4 sm:$0xff]  }
  0x20   : > { %1211 = vmatpush1.bf16.msra.mxu0 %v1630_v27  ;;  %1126 = vmatprep.subr.bf16.mxu1 %v1631_v28  ;;  %v1705_v12 = vld [vmem:[%s2317_s1 + $0x124] ss:$8 sps:$4 sm:$0xff]   ;;  %v1703_v14 = vld [vmem:[%s2317_s1 + $0x120] ss:$8 sps:$4 sm:$0xff]   ;;  %v1711_v16 = vld [vmem:[%s2317_s1 + $0x134] ss:$8 sps:$4 sm:$0xff]  }
  0x21   : > { %1212 = vmatprep.subr.bf16.mxu0 %v1633_v29  ;;  %v1708_v13 = vld [vmem:[%s2317_s1 + $0x324] ss:$8 sps:$4 sm:$0xff]   ;;  %v1706_v15 = vld [vmem:[%s2317_s1 + $0x320] ss:$8 sps:$4 sm:$0xff]   ;;  %v1714_v17 = vld [vmem:[%s2317_s1 + $0x334] ss:$8 sps:$4 sm:$0xff]  }
  0x22   : > { %v1709_v18 = vld [vmem:[%s2317_s1 + $0x130] ss:$8 sps:$4 sm:$0xff]   ;;  %v1717_v20 = vld [vmem:[%s2317_s1 + $0x144] ss:$8 sps:$4 sm:$0xff]   ;;  %v1715_v22 = vld [vmem:[%s2317_s1 + $0x140] ss:$8 sps:$4 sm:$0xff]  }
  0x23   : > { %1127 = vmatpush1.bf16.msra.mxu1 %v1635_v30  ;;  %v1712_v19 = vld [vmem:[%s2317_s1 + $0x330] ss:$8 sps:$4 sm:$0xff]   ;;  %v1720_v21 = vld [vmem:[%s2317_s1 + $0x344] ss:$8 sps:$4 sm:$0xff]   ;;  %v1718_v23 = vld [vmem:[%s2317_s1 + $0x340] ss:$8 sps:$4 sm:$0xff]  }
  0x24   : > { %1213 = vmatpush1.bf16.msra.mxu0 %v1636_v31  ;;  %1128 = vmatprep.subr.bf16.mxu1 %v1637_v32  ;;  %v1723_v24 = vld [vmem:[%s2317_s1 + $0x154] ss:$8 sps:$4 sm:$0xff]   ;;  %v1721_v26 = vld [vmem:[%s2317_s1 + $0x150] ss:$8 sps:$4 sm:$0xff]   ;;  %v1729_v28 = vld [vmem:[%s2317_s1 + $0x164] ss:$8 sps:$4 sm:$0xff]  }
  0x25   : > { %1214 = vmatprep.subr.bf16.mxu0 %v1639_v33  ;;  %v1726_v25 = vld [vmem:[%s2317_s1 + $0x354] ss:$8 sps:$4 sm:$0xff]   ;;  %v1724_v27 = vld [vmem:[%s2317_s1 + $0x350] ss:$8 sps:$4 sm:$0xff]   ;;  %v1732_v29 = vld [vmem:[%s2317_s1 + $0x364] ss:$8 sps:$4 sm:$0xff]  }
  0x26   : > { %v1727_v30 = vld [vmem:[%s2317_s1 + $0x160] ss:$8 sps:$4 sm:$0xff]   ;;  %v1735_v32 = vld [vmem:[%s2317_s1 + $0x174] ss:$8 sps:$4 sm:$0xff]  }
  0x27   : > { %1129 = vmatpush1.bf16.msra.mxu1 %v1641_v34  ;;  %v1730_v31 = vld [vmem:[%s2317_s1 + $0x360] ss:$8 sps:$4 sm:$0xff]   ;;  %v1738_v33 = vld [vmem:[%s2317_s1 + $0x374] ss:$8 sps:$4 sm:$0xff]   ;;  %v1789_v34 = vld [vmem:[%s1998_s13 + $0xc] ss:$36 sps:$4 sm:$0xff]  }
  0x28   : > { %1215 = vmatpush1.bf16.msra.mxu0 %v1642_v35  ;;  %1130 = vmatprep.subr.bf16.mxu1 %v1643_v36  ;;  %v1792_v35 = vld [vmem:[%s1998_s13 + $0x1c] ss:$36 sps:$4 sm:$0xff]   ;;  %v1733_v36 = vld [vmem:[%s2317_s1 + $0x170] ss:$8 sps:$4 sm:$0xff]  }
  0x29   : > { %1216 = vmatprep.subr.bf16.mxu0 %v1645_v37  ;;  %v1736_v37 = vld [vmem:[%s2317_s1 + $0x370] ss:$8 sps:$4 sm:$0xff]   ;;  %v1751_v48 = vld [vmem:[%s2317_s1 + $0x1a0] ss:$8 sps:$4 sm:$0xff]   ;;  %v1762_v51 = vld [vmem:[%s2317_s1 + $0x3b4] ss:$8 sps:$4 sm:$0xff]  }
  0x2b   : > { %1131 = vmatpush1.bf16.msra.mxu1 %v1647_v38  ;;  %v1741_v38 = vld [vmem:[%s2317_s1 + $0x184] ss:$8 sps:$4 sm:$0xff]  }
  0x2c   : > { %1217 = vmatpush1.bf16.msra.mxu0 %v1648_v39  ;;  %1132 = vmatprep.subr.bf16.mxu1 %v1649_v40  ;;  %v1744_v39 = vld [vmem:[%s2317_s1 + $0x384] ss:$8 sps:$4 sm:$0xff]   ;;  %v1739_v40 = vld [vmem:[%s2317_s1 + $0x180] ss:$8 sps:$4 sm:$0xff]  }
  0x2d   : > { %1218 = vmatprep.subr.bf16.mxu0 %v1651_v41  ;;  %v1742_v41 = vld [vmem:[%s2317_s1 + $0x380] ss:$8 sps:$4 sm:$0xff]  }
  0x2f   : > { %1133 = vmatpush1.bf16.msra.mxu1 %v1653_v42  ;;  %v1747_v42 = vld [vmem:[%s2317_s1 + $0x194] ss:$8 sps:$4 sm:$0xff]  }
  0x30   : > { %1219 = vmatpush1.bf16.msra.mxu0 %v1654_v43  ;;  %1134 = vmatprep.subr.bf16.mxu1 %v1655_v44  ;;  %v1750_v43 = vld [vmem:[%s2317_s1 + $0x394] ss:$8 sps:$4 sm:$0xff]   ;;  %v1745_v44 = vld [vmem:[%s2317_s1 + $0x190] ss:$8 sps:$4 sm:$0xff]  }
  0x31   : > { %1220 = vmatprep.subr.bf16.mxu0 %v1657_v45  ;;  %v1748_v45 = vld [vmem:[%s2317_s1 + $0x390] ss:$8 sps:$4 sm:$0xff]  }
  0x33   : > { %1135 = vmatpush1.bf16.msra.mxu1 %v1659_v46  ;;  %v1753_v46 = vld [vmem:[%s2317_s1 + $0x1a4] ss:$8 sps:$4 sm:$0xff]  }
  0x34   : > { %1221 = vmatpush1.bf16.msra.mxu0 %v1660_v47  ;;  %1136 = vmatprep.subr.bf16.mxu1 %v1661_v49  ;;  %v1756_v47 = vld [vmem:[%s2317_s1 + $0x3a4] ss:$8 sps:$4 sm:$0xff]   ;;  %v1754_v49 = vld [vmem:[%s2317_s1 + $0x3a0] ss:$8 sps:$4 sm:$0xff]  }
  0x35   : > { %1222 = vmatprep.subr.bf16.mxu0 %v1663_v50  ;;  %v1759_v50 = vld [vmem:[%s2317_s1 + $0x1b4] ss:$8 sps:$4 sm:$0xff]  }
  0x37   : > { %1137 = vmatpush1.bf16.msra.mxu1 %v1665_v52  ;;  %v1757_v52 = vld [vmem:[%s2317_s1 + $0x1b0] ss:$8 sps:$4 sm:$0xff]  }
  0x38   : > { %1223 = vmatpush1.bf16.msra.mxu0 %v1666_v53  ;;  %1138 = vmatprep.subr.bf16.mxu1 %v1667_v54  ;;  %v1760_v53 = vld [vmem:[%s2317_s1 + $0x3b0] ss:$8 sps:$4 sm:$0xff]   ;;  %v1765_v54 = vld [vmem:[%s2317_s1 + $0x1c4] ss:$8 sps:$4 sm:$0xff]  }
  0x39   : > { %1224 = vmatprep.subr.bf16.mxu0 %v1669_v55  ;;  %v1768_v55 = vld [vmem:[%s2317_s1 + $0x3c4] ss:$8 sps:$4 sm:$0xff]  }
  0x3b   : > { %1139 = vmatpush1.bf16.msra.mxu1 %v1671_v56  ;;  %v1763_v56 = vld [vmem:[%s2317_s1 + $0x1c0] ss:$8 sps:$4 sm:$0xff]  }
  0x3c   : > { %1225 = vmatpush1.bf16.msra.mxu0 %v1672_v57  ;;  %1140 = vmatprep.subr.bf16.mxu1 %v1673_v58  ;;  %v1766_v57 = vld [vmem:[%s2317_s1 + $0x3c0] ss:$8 sps:$4 sm:$0xff]   ;;  %v1771_v58 = vld [vmem:[%s2317_s1 + $0x1d4] ss:$8 sps:$4 sm:$0xff]  }
  0x3d   : > { %1226 = vmatprep.subr.bf16.mxu0 %v1675_v59  ;;  %v1774_v59 = vld [vmem:[%s2317_s1 + $0x3d4] ss:$8 sps:$4 sm:$0xff]  }
  0x3f   : > { %1141 = vmatpush1.bf16.msra.mxu1 %v1677_v60  ;;  %v1769_v60 = vld [vmem:[%s2317_s1 + $0x1d0] ss:$8 sps:$4 sm:$0xff]  }
  0x40   : > { %1227 = vmatpush1.bf16.msra.mxu0 %v1678_v61  ;;  %1142 = vmatprep.subr.bf16.mxu1 %v1679_v62  ;;  %v1772_v61 = vld [vmem:[%s2317_s1 + $0x3d0] ss:$8 sps:$4 sm:$0xff]   ;;  %v1777_v62 = vld [vmem:[%s2317_s1 + $0x1e4] ss:$8 sps:$4 sm:$0xff]  }
  0x41   : > { %1228 = vmatprep.subr.bf16.mxu0 %v1681_v63  ;;  %v1780_v63 = vld [vmem:[%s2317_s1 + $0x3e4] ss:$8 sps:$4 sm:$0xff]  }
  0x43   : > { %1143 = vmatpush1.bf16.msra.mxu1 %v1683_v0  ;;  %v1775_v0 = vld [vmem:[%s2317_s1 + $0x1e0] ss:$8 sps:$4 sm:$0xff]  }
  0x44   : > { %1229 = vmatpush1.bf16.msra.mxu0 %v1684_v1  ;;  %1155 = vmatprep.subr.bf16.mxu1 %v1690_v2  ;;  %v1778_v1 = vld [vmem:[%s2317_s1 + $0x3e0] ss:$8 sps:$4 sm:$0xff]   ;;  %v1783_v2 = vld [vmem:[%s2317_s1 + $0x1f4] ss:$8 sps:$4 sm:$0xff]  }
  0x45   : > { %1241 = vmatprep.subr.bf16.mxu0 %v1696_v3  ;;  %v1786_v3 = vld [vmem:[%s2317_s1 + $0x3f4] ss:$8 sps:$4 sm:$0xff]  }
  0x46   : > { %1145 = vmatmul.mubr.bf16.vlgmr.msra.gmra.mrb[0].mxu1 %v1685_v4  ;;  %v1781_v4 = vld [vmem:[%s2317_s1 + $0x1f0] ss:$8 sps:$4 sm:$0xff]  }
  0x47   : > { %1231 = vmatmul.mubr.bf16.vlgmr.msra.gmra.mrb[0].mxu0 %v1691_v6  ;;  %1156 = vmatpush1.bf16.msra.mxu1 %v1688_v5  ;;  %v1784_v5 = vld [vmem:[%s2317_s1 + $0x3f0] ss:$8 sps:$4 sm:$0xff]   ;;  %v1795_v6 = vld [vmem:[%s2317_s1 + $0x404] ss:$8 sps:$4 sm:$0xff]  }
  0x48   : > { %1242 = vmatpush1.bf16.msra.mxu0 %v1694_v7  ;;  %1157 = vmatprep.subr.bf16.mxu1 %v1699_v8  ;;  %v1787_v7 = vld [vmem:[%s1998_s13 + $0x8] ss:$36 sps:$4 sm:$0xff]   ;;  %v1790_v8 = vld [vmem:[%s1998_s13 + $0x18] ss:$36 sps:$4 sm:$0xff]  }
  0x49   : > { %1243 = vmatprep.subr.bf16.mxu0 %v1702_v9  ;;  %1187 = vmatprep.mubr.bf16.mxu1 %v1789_v34  ;;  %v1793_v9 = vld [vmem:[%s2317_s1 + $0x400] ss:$8 sps:$4 sm:$0xff]  }
  0x4a   : > { %1273 = vmatprep.mubr.bf16.mxu0 %v1792_v35 }
  0x4b   : > { %1158 = vmatpush1.bf16.msra.mxu1 %v1697_v10  ;;  %v1798_v10 = vld [vmem:[%s2317_s1 + $0x414] ss:$8 sps:$4 sm:$0xff]  }
  0x4c   : > { %1244 = vmatpush1.bf16.msra.mxu0 %v1700_v11  ;;  %1159 = vmatprep.subr.bf16.mxu1 %v1705_v12  ;;  %v1796_v11 = vld [vmem:[%s2317_s1 + $0x410] ss:$8 sps:$4 sm:$0xff]   ;;  %v1826_v12 = vmov 0  }
  0x4d   : > { %1245 = vmatprep.subr.bf16.mxu0 %v1708_v13  ;;  %v1801_v13 = vld [vmem:[%s2317_s1 + $0x424] ss:$8 sps:$4 sm:$0xff]  }
  0x4f   : > { %1160 = vmatpush1.bf16.msra.mxu1 %v1703_v14  ;;  %v1799_v14 = vld [vmem:[%s2317_s1 + $0x420] ss:$8 sps:$4 sm:$0xff]  }
  0x50   : > { %1246 = vmatpush1.bf16.msra.mxu0 %v1706_v15  ;;  %1161 = vmatprep.subr.bf16.mxu1 %v1711_v16  ;;  %v1804_v15 = vld [vmem:[%s2317_s1 + $0x434] ss:$8 sps:$4 sm:$0xff]   ;;  %v1802_v16 = vld [vmem:[%s2317_s1 + $0x430] ss:$8 sps:$4 sm:$0xff]  }
  0x51   : > { %1247 = vmatprep.subr.bf16.mxu0 %v1714_v17  ;;  %v1807_v17 = vld [vmem:[%s2317_s1 + $0x444] ss:$8 sps:$4 sm:$0xff]  }
  0x53   : > { %1162 = vmatpush1.bf16.msra.mxu1 %v1709_v18  ;;  %v1805_v18 = vld [vmem:[%s2317_s1 + $0x440] ss:$8 sps:$4 sm:$0xff]  }
  0x54   : > { %1248 = vmatpush1.bf16.msra.mxu0 %v1712_v19  ;;  %1163 = vmatprep.subr.bf16.mxu1 %v1717_v20  ;;  %v1810_v19 = vld [vmem:[%s2317_s1 + $0x454] ss:$8 sps:$4 sm:$0xff]   ;;  %v1808_v20 = vld [vmem:[%s2317_s1 + $0x450] ss:$8 sps:$4 sm:$0xff]  }
  0x55   : > { %1249 = vmatprep.subr.bf16.mxu0 %v1720_v21  ;;  %v1813_v21 = vld [vmem:[%s2317_s1 + $0x464] ss:$8 sps:$4 sm:$0xff]  }
  0x57   : > { %1164 = vmatpush1.bf16.msra.mxu1 %v1715_v22  ;;  %v1811_v22 = vld [vmem:[%s2317_s1 + $0x460] ss:$8 sps:$4 sm:$0xff]  }
  0x58   : > { %1250 = vmatpush1.bf16.msra.mxu0 %v1718_v23  ;;  %1165 = vmatprep.subr.bf16.mxu1 %v1723_v24  ;;  %v1816_v23 = vld [vmem:[%s2317_s1 + $0x474] ss:$8 sps:$4 sm:$0xff]   ;;  %v1814_v24 = vld [vmem:[%s2317_s1 + $0x470] ss:$8 sps:$4 sm:$0xff]  }
  0x59   : > { %1251 = vmatprep.subr.bf16.mxu0 %v1726_v25  ;;  %v1817_v25 = vld [vmem:[%s1998_s13 + $0x20] ss:$36 sps:$4 sm:$0xff]  }
  0x5b   : > { %1166 = vmatpush1.bf16.msra.mxu1 %v1721_v26 }
  0x5c   : > { %1252 = vmatpush1.bf16.msra.mxu0 %v1724_v27  ;;  %1167 = vmatprep.subr.bf16.mxu1 %v1729_v28 }
  0x5d   : > { %1253 = vmatprep.subr.bf16.mxu0 %v1732_v29 }
  0x5f   : > { %1168 = vmatpush1.bf16.msra.mxu1 %v1727_v30  ;;  %v336_v30 = vlaneseq }
  0x60   : > { %1254 = vmatpush1.bf16.msra.mxu0 %v1730_v31  ;;  %1169 = vmatprep.subr.bf16.mxu1 %v1735_v32 }
  0x61   : > { %1255 = vmatprep.subr.bf16.mxu0 %v1738_v33  ;;  %v337_v31 = vshrl.u32 %v336_v30, 7  ;;  %v334_v33 = vld [vmem:[%s2318_s2] sm:$0x3] }
  0x63   : > { %1170 = vmatpush1.bf16.msra.mxu1 %v1733_v36  ;;  %v338_v32 = vsub.s32 0, %v337_v31  ;;  %v342_v34 = vsub.s32 1, %v337_v31 }
  0x64   : > { %1256 = vmatpush1.bf16.msra.mxu0 %v1736_v37  ;;  %1171 = vmatprep.subr.bf16.mxu1 %v1741_v38 }
  0x65   : > { %1257 = vmatprep.subr.bf16.mxu0 %v1744_v39  ;;  %v339_v35 = vrot.slane %v334_v33, %v338_v32  ;;  %v343_v36 = vrot.slane %v334_v33, %v342_v34 }
  0x67   : > { %1172 = vmatpush1.bf16.msra.mxu1 %v1739_v40 }
  0x68   : > { %1258 = vmatpush1.bf16.msra.mxu0 %v1742_v41  ;;  %1173 = vmatprep.subr.bf16.mxu1 %v1747_v42 }
  0x69   : > { %1259 = vmatprep.subr.bf16.mxu0 %v1750_v43 }
  0x6b   : > { %1174 = vmatpush1.bf16.msra.mxu1 %v1745_v44 }
  0x6c   : > { %1260 = vmatpush1.bf16.msra.mxu0 %v1748_v45  ;;  %1175 = vmatprep.subr.bf16.mxu1 %v1753_v46 }
  0x6d   : > { %1261 = vmatprep.subr.bf16.mxu0 %v1756_v47 }
  0x6f   : > { %1176 = vmatpush1.bf16.msra.mxu1 %v1751_v48 }
  0x70   : > { %1262 = vmatpush1.bf16.msra.mxu0 %v1754_v49  ;;  %1177 = vmatprep.subr.bf16.mxu1 %v1759_v50 }
  0x71   : > { %1263 = vmatprep.subr.bf16.mxu0 %v1762_v51 }
  0x73   : > { %1178 = vmatpush1.bf16.msra.mxu1 %v1757_v52 }
  0x74   : > { %1264 = vmatpush1.bf16.msra.mxu0 %v1760_v53  ;;  %1179 = vmatprep.subr.bf16.mxu1 %v1765_v54 }
  0x75   : > { %1265 = vmatprep.subr.bf16.mxu0 %v1768_v55 }
  0x77   : > { %1180 = vmatpush1.bf16.msra.mxu1 %v1763_v56 }
  0x78   : > { %1266 = vmatpush1.bf16.msra.mxu0 %v1766_v57  ;;  %1181 = vmatprep.subr.bf16.mxu1 %v1771_v58 }
  0x79   : > { %1267 = vmatprep.subr.bf16.mxu0 %v1774_v59 }
  0x7b   : > { %1182 = vmatpush1.bf16.msra.mxu1 %v1769_v60 }
  0x7c   : > { %1268 = vmatpush1.bf16.msra.mxu0 %v1772_v61  ;;  %1183 = vmatprep.subr.bf16.mxu1 %v1777_v62 }
  0x7d   : > { %1269 = vmatprep.subr.bf16.mxu0 %v1780_v63 }
  0x7f   : > { %1184 = vmatpush1.bf16.msra.mxu1 %v1775_v0 }
  0x80   : > { %1270 = vmatpush1.bf16.msra.mxu0 %v1778_v1  ;;  %1185 = vmatprep.subr.bf16.mxu1 %v1783_v2 }
  0x81   : > { %1271 = vmatprep.subr.bf16.mxu0 %v1786_v3 }
  0x83   : > { %1186 = vmatpush1.bf16.msra.mxu1 %v1781_v4 }
  0x84   : > { %1272 = vmatpush1.bf16.msra.mxu0 %v1784_v5 }
  0x85   : > { %1284 = vmatprep.subr.bf16.mxu0 %v1795_v6 }
  0x86   : > { %1188 = vmatmul.mubr.bf16.vlgmr.msra.gmra.mrb[0].mxu1 %v1787_v7 }
  0x87   : > { %1274 = vmatmul.mubr.bf16.vlgmr.msra.gmra.mrb[0].mxu0 %v1790_v8 }
  0x88   : > { %1285 = vmatpush1.bf16.msra.mxu0 %v1793_v9  ;;  %1316 = vmatprep.mubr.bf16.mxu0 %v1826_v12 }
  0x89   : > { %1286 = vmatprep.subr.bf16.mxu0 %v1798_v10 }
  0x8c   : > { %1287 = vmatpush1.bf16.msra.mxu0 %v1796_v11 }
  0x8d   : > { %1288 = vmatprep.subr.bf16.mxu0 %v1801_v13 }
  0x90   : > { %1289 = vmatpush1.bf16.msra.mxu0 %v1799_v14 }
  0x91   : > { %1290 = vmatprep.subr.bf16.mxu0 %v1804_v15 }
  0x94   : > { %1291 = vmatpush1.bf16.msra.mxu0 %v1802_v16 }
  0x95   : > { %1292 = vmatprep.subr.bf16.mxu0 %v1807_v17 }
  0x98   : > { %1293 = vmatpush1.bf16.msra.mxu0 %v1805_v18 }
  0x99   : > { %1294 = vmatprep.subr.bf16.mxu0 %v1810_v19 }
  0x9c   : > { %1295 = vmatpush1.bf16.msra.mxu0 %v1808_v20 }
  0x9d   : > { %1296 = vmatprep.subr.bf16.mxu0 %v1813_v21 }
  0xa0   : > { %1297 = vmatpush1.bf16.msra.mxu0 %v1811_v22 }
  0xa1   : > { %1298 = vmatprep.subr.bf16.mxu0 %v1816_v23 }
  0xa4   : > { %1299 = vmatpush1.bf16.msra.mxu0 %v1814_v24 }
  0xa7   : > { %1317 = vmatmul.mubr.bf16.vlgmr.msra.gmra.mrb[0].mxu0 %v1817_v25 }
 0x159   : > { %v1189_v26 = vpop.f32.mrb[0].mxu1 }
 0x15a   : > { %v1191_v27 = vpop.f32.mrb[1].mxu1  ;;  %v1559_v37 = vadd.f32 %v1189_v26, %v339_v35 }
 0x15b   : > { %v1193_v28 = vpop.f32.mrb[2].mxu1  ;;  %v1561_v38 = vadd.f32 %v1191_v27, %v343_v36 }
 0x15c   : > { %v1195_v29 = vpop.f32.mrb[3].mxu1  ;;  %v1563_v40 = vadd.f32 %v1193_v28, %v339_v35 }
 0x15d   : > { %v1565_v43 = vadd.f32 %v1195_v29, %v343_v36 }
 0x17a   : > { %v1318_v39 = vpop.f32.mrb[0].mxu0 }
 0x17b   : > { %v1560_v41 = vadd.f32 %v1559_v37, %v1318_v39  ;;  %v1320_v42 = vpop.f32.mrb[1].mxu0 }
 0x17c   : > { %v1562_v44 = vadd.f32 %v1561_v38, %v1320_v42  ;;  %v1322_v45 = vpop.f32.mrb[2].mxu0 }
 0x17d   : > { %v1327_v46 = vmax.f32 %v1560_v41, 0.0  ;;  %v1564_v47 = vadd.f32 %v1563_v40, %v1322_v45  ;;  %v1324_v48 = vpop.f32.mrb[3].mxu0 }
 0x17e   : > { %v1328_v49 = vmax.f32 %v1562_v44, 0.0  ;;  %v1566_v50 = vadd.f32 %v1565_v43, %v1324_v48 }
 0x17f   : > { %1331 = vst [vmem:[%s177_s18] sm:$0xff] %v1327_v46  ;;  %v1329_v51 = vmax.f32 %v1564_v47, 0.0 }
 0x180   : > { %1332 = vst [vmem:[%s177_s18 + $0x8] sm:$0xff] %v1328_v49  ;;  %v1330_v52 = vmax.f32 %v1566_v50, 0.0 }
 0x181   : > { %1333 = vst [vmem:[%s177_s18 + $0x10] sm:$0xff] %v1329_v51 }
 0x182   : > { %1334 = vst [vmem:[%s177_s18 + $0x18] sm:$0xff] %v1330_v52 }
 0x183 PF: > { %s13_s12 = sadd.s32 1, %s1824_s12  }
 0x184   : > { %p10_p4 = scmp.ge.s32.totalorder %s13_s12, 4  }
 0x186   :  { %12 = sbr.rel (!%p10_p4) target bundleno = 1 (0x1), region = 62 }

// kernel: _lambda_.14
= control target key start
LH: loop header
LB: loop body
LE: loop exit
PB: predicated region body
PF: predicated region fallthrough
CT: control target
= control target key end

     0   :  { %s1560_s15 = smov 0   ;;  %s1819_s0 = inlined_call_operand.vmem [shape: bf16[32,1152], index: 0, kind: input, shape index: {}]   ;;  %s1820_s1 = inlined_call_operand.vmem [shape: f32[32,128], index: 1, kind: input, shape index: {}]   ;;  %s1821_s2 = inlined_call_operand.vmem [shape: bf16[1152,32], index: 2, kind: input, shape index: {}]   ;;  %s1822_s3 = inlined_call_operand.vmem [shape: bf16[32,128], index: 3, kind: input, shape index: {}]   ;;  %s1823_s4 = inlined_call_operand.vmem [shape: f32[32,128], index: 4, kind: output, shape index: {}]  }
   0x1 LB: > { %s1202_s16 = sadd.s32 4294967295, %s1531_s15   ;;  %p1206_p0 = scmp.ge.s32.totalorder %s1531_s15, 1  ;;  %s1531_s15 = sphi %s1560_s15, %s14_s15  }
   0x2   : > { %p175_p1 = scmp.lt.s32.totalorder %s1531_s15, 3 }
   0x4   : > { %p176_p2 = pnand %p1206_p0, %p175_p1 }
   0x5   : > { %v1438_v0 = vld [vmem:[%s1821_s2 + $0x40] sm:$0xff] (!%p176_p2)   ;;  %v1442_v4 = vld [vmem:[%s1821_s2 + $0x48] sm:$0xff] (!%p176_p2)   ;;  %v1446_v8 = vld [vmem:[%s1821_s2 + $0x50] sm:$0xff] (!%p176_p2)   ;;  %s1207_s23 = sshll.u32 (!%p176_p2), %s1202_s16, 1  ;;  %vm1534_vm0 = vmmov (!%p176_p2), 0   ;;  %vm1085_vm1 = vcmask (!%p176_p2), 261120  }
   0x6   : > { %179 = sbr.rel (%p176_p2) target bundleno = 542 (0x21e), region = 36  ;;  %v1439_v1 = vld [vmem:[%s1821_s2 + $0xc0] sm:$0xff] (!%p176_p2)   ;;  %1299 = vmatprep.subr.bf16.mxu0 (!%p176_p2), %v1438_v0  ;;  %v1443_v5 = vld [vmem:[%s1821_s2 + $0xc8] sm:$0xff] (!%p176_p2)   ;;  %v1447_v9 = vld [vmem:[%s1821_s2 + $0xd0] sm:$0xff] (!%p176_p2)   ;;  %p208_p3 = scmp.lt.s32.totalorder (!%p176_p2), %s1207_s23, 3 }
   0x7   : > { %v1440_v2 = vld [vmem:[%s1821_s2] sm:$0xff] (!%p176_p2)   ;;  %1321 = vmatprep.subr.bf16.mxu1 (!%p176_p2), %v1439_v1  ;;  %v1444_v6 = vld [vmem:[%s1821_s2 + $0x8] sm:$0xff] (!%p176_p2)   ;;  %v1448_v10 = vld [vmem:[%s1821_s2 + $0x10] sm:$0xff] (!%p176_p2)  }
   0x8   : > { %v1441_v3 = vld [vmem:[%s1821_s2 + $0x80] sm:$0xff] (!%p176_p2)   ;;  %1300 = vmatpush3.bf16.msra.mxu0 (!%p176_p2), %v1440_v2  ;;  %v1445_v7 = vld [vmem:[%s1821_s2 + $0x88] sm:$0xff] (!%p176_p2)   ;;  %v1449_v11 = vld [vmem:[%s1821_s2 + $0x90] sm:$0xff] (!%p176_p2)  }
   0x9   : > { %1322 = vmatpush3.bf16.msra.mxu1 (!%p176_p2), %v1441_v3  ;;  %1301 = vmatprep.subr.bf16.mxu0 (!%p176_p2), %v1442_v4  ;;  %v1450_v12 = vld [vmem:[%s1821_s2 + $0x58] sm:$0xff] (!%p176_p2)   ;;  %v1454_v16 = vld [vmem:[%s1821_s2 + $0x60] sm:$0xff] (!%p176_p2)   ;;  %v1458_v20 = vld [vmem:[%s1821_s2 + $0x68] sm:$0xff] (!%p176_p2)  }
   0xa   : > { %1323 = vmatprep.subr.bf16.mxu1 (!%p176_p2), %v1443_v5  ;;  %v1451_v13 = vld [vmem:[%s1821_s2 + $0xd8] sm:$0xff] (!%p176_p2)   ;;  %v1455_v17 = vld [vmem:[%s1821_s2 + $0xe0] sm:$0xff] (!%p176_p2)   ;;  %v1459_v21 = vld [vmem:[%s1821_s2 + $0xe8] sm:$0xff] (!%p176_p2)  }
   0xb   : > { %v1452_v14 = vld [vmem:[%s1821_s2 + $0x18] sm:$0xff] (!%p176_p2)   ;;  %v1456_v18 = vld [vmem:[%s1821_s2 + $0x20] sm:$0xff] (!%p176_p2)   ;;  %v1460_v22 = vld [vmem:[%s1821_s2 + $0x28] sm:$0xff] (!%p176_p2)  }
   0xc   : > { %1302 = vmatpush3.bf16.msra.mxu0 (!%p176_p2), %v1444_v6  ;;  %v1453_v15 = vld [vmem:[%s1821_s2 + $0x98] sm:$0xff] (!%p176_p2)   ;;  %v1457_v19 = vld [vmem:[%s1821_s2 + $0xa0] sm:$0xff] (!%p176_p2)   ;;  %v1461_v23 = vld [vmem:[%s1821_s2 + $0xa8] sm:$0xff] (!%p176_p2)   ;;  %v1533_v6 = vmov (!%p176_p2), 0.0  }
   0xd   : > { %1324 = vmatpush3.bf16.msra.mxu1 %v1445_v7  ;;  %1303 = vmatprep.subr.bf16.mxu0 %v1446_v8  ;;  %s1825_s23 = smov (!%p208_p3, %s1207_s23), 3  ;;  %v1462_v24 = vld [vmem:[%s1821_s2 + $0x70] sm:$0xff]   ;;  %v1466_v28 = vld [vmem:[%s1821_s2 + $0x78] sm:$0xff]   ;;  %v1476_v36 = vld [vmem:[%s1821_s2 + $0x140] sm:$0xff]  }
   0xe   : > { %1325 = vmatprep.subr.bf16.mxu1 %v1447_v9  ;;  %v1463_v25 = vld [vmem:[%s1821_s2 + $0xf0] sm:$0xff]   ;;  %s1427_s21 = smul.u32 36, %s1825_s23  ;;  %v1467_v29 = vld [vmem:[%s1821_s2 + $0xf8] sm:$0xff]   ;;  %v1477_v37 = vld [vmem:[%s1821_s2 + $0x100] sm:$0xff]  }
   0xf   : > { %v1464_v26 = vld [vmem:[%s1821_s2 + $0x30] sm:$0xff]   ;;  %v1468_v30 = vld [vmem:[%s1821_s2 + $0x38] sm:$0xff]   ;;  %v1478_v38 = vld [vmem:[%s1821_s2 + $0x1c0] sm:$0xff]  }
  0x10   : > { %1304 = vmatpush3.bf16.msra.mxu0 %v1448_v10  ;;  %v1465_v27 = vld [vmem:[%s1821_s2 + $0xb0] sm:$0xff]   ;;  %s1666_s6 = scalar_lea.vmem %s1819_s0, %s1427_s21  ;;  %v1469_v31 = vld [vmem:[%s1821_s2 + $0xb8] sm:$0xff]   ;;  %v1479_v39 = vld [vmem:[%s1821_s2 + $0x180] sm:$0xff]  }
  0x11   : > { %1326 = vmatpush3.bf16.msra.mxu1 %v1449_v11  ;;  %1305 = vmatprep.subr.bf16.mxu0 %v1450_v12  ;;  %v1470_v32 = vld [vmem:[%s1666_s6] ss:$36 sps:$4 sm:$0xff]   ;;  %v1473_v34 = vld [vmem:[%s1666_s6 + $0x8] ss:$36 sps:$4 sm:$0xff]   ;;  %v1484_v44 = vld [vmem:[%s1821_s2 + $0x150] sm:$0xff]  }
  0x12   : > { %1327 = vmatprep.subr.bf16.mxu1 %v1451_v13  ;;  %v1472_v33 = vld [vmem:[%s1666_s6 + $0x4] ss:$36 sps:$4 sm:$0xff]   ;;  %v1475_v35 = vld [vmem:[%s1666_s6 + $0xc] ss:$36 sps:$4 sm:$0xff]   ;;  %v1488_v48 = vld [vmem:[%s1821_s2 + $0x158] sm:$0xff]  }
  0x13   : > { %891 = vmatprep.mubr.bf16.mxu0 %v1472_v33  ;;  %932 = vmatprep.mubr.bf16.mxu1 %v1475_v35  ;;  %v1480_v40 = vld [vmem:[%s1821_s2 + $0x148] sm:$0xff]   ;;  %v1485_v45 = vld [vmem:[%s1821_s2 + $0x110] sm:$0xff]   ;;  %v1489_v49 = vld [vmem:[%s1821_s2 + $0x118] sm:$0xff]  }
  0x14   : > { %1306 = vmatpush3.bf16.msra.mxu0 %v1452_v14  ;;  %v1481_v41 = vld [vmem:[%s1821_s2 + $0x108] sm:$0xff]   ;;  %v1486_v46 = vld [vmem:[%s1821_s2 + $0x1d0] sm:$0xff]   ;;  %v1490_v50 = vld [vmem:[%s1821_s2 + $0x1d8] sm:$0xff]  }
  0x15   : > { %1328 = vmatpush3.bf16.msra.mxu1 %v1453_v15  ;;  %1307 = vmatprep.subr.bf16.mxu0 %v1454_v16  ;;  %v1482_v42 = vld [vmem:[%s1821_s2 + $0x1c8] sm:$0xff]   ;;  %v1487_v47 = vld [vmem:[%s1821_s2 + $0x190] sm:$0xff]   ;;  %v1491_v51 = vld [vmem:[%s1821_s2 + $0x198] sm:$0xff]  }
  0x16   : > { %1329 = vmatprep.subr.bf16.mxu1 %v1455_v17  ;;  %v1483_v43 = vld [vmem:[%s1821_s2 + $0x188] sm:$0xff]   ;;  %v1492_v52 = vld [vmem:[%s1821_s2 + $0x160] sm:$0xff]   ;;  %v1500_v60 = vld [vmem:[%s1821_s2 + $0x170] sm:$0xff]  }
  0x17   : > { %v1493_v53 = vld [vmem:[%s1821_s2 + $0x120] sm:$0xff]   ;;  %v1496_v56 = vld [vmem:[%s1821_s2 + $0x168] sm:$0xff]   ;;  %v1501_v61 = vld [vmem:[%s1821_s2 + $0x130] sm:$0xff]  }
  0x18   : > { %1308 = vmatpush3.bf16.msra.mxu0 %v1456_v18  ;;  %v1494_v54 = vld [vmem:[%s1821_s2 + $0x1e0] sm:$0xff]   ;;  %v1497_v57 = vld [vmem:[%s1821_s2 + $0x128] sm:$0xff]   ;;  %v1502_v62 = vld [vmem:[%s1821_s2 + $0x1f0] sm:$0xff]  }
  0x19   : > { %1330 = vmatpush3.bf16.msra.mxu1 %v1457_v19  ;;  %1309 = vmatprep.subr.bf16.mxu0 %v1458_v20  ;;  %v1495_v55 = vld [vmem:[%s1821_s2 + $0x1a0] sm:$0xff]   ;;  %v1498_v58 = vld [vmem:[%s1821_s2 + $0x1e8] sm:$0xff]   ;;  %v1503_v63 = vld [vmem:[%s1821_s2 + $0x1b0] sm:$0xff]  }
  0x1a   : > { %1331 = vmatprep.subr.bf16.mxu1 %v1459_v21  ;;  %v1499_v59 = vld [vmem:[%s1821_s2 + $0x1a8] sm:$0xff]   ;;  %v1504_v0 = vld [vmem:[%s1821_s2 + $0x178] sm:$0xff]   ;;  %v1507_v3 = vld [vmem:[%s1666_s6 + $0x10] ss:$36 sps:$4 sm:$0xff]  }
  0x1b   : > { %v1505_v1 = vld [vmem:[%s1821_s2 + $0x138] sm:$0xff]   ;;  %v1514_v9 = vld [vmem:[%s1821_s2 + $0x200] sm:$0xff]   ;;  %v1515_v10 = vld [vmem:[%s1821_s2 + $0x208] sm:$0xff]  }
  0x1c   : > { %1310 = vmatpush3.bf16.msra.mxu0 %v1460_v22  ;;  %v1506_v2 = vld [vmem:[%s1821_s2 + $0x1f8] sm:$0xff]   ;;  %v1516_v11 = vld [vmem:[%s1821_s2 + $0x210] sm:$0xff]   ;;  %v1518_v13 = vld [vmem:[%s1821_s2 + $0x220] sm:$0xff]  }
  0x1d   : > { %1332 = vmatpush3.bf16.msra.mxu1 %v1461_v23  ;;  %1311 = vmatprep.subr.bf16.mxu0 %v1462_v24  ;;  %v1509_v4 = vld [vmem:[%s1666_s6 + $0x14] ss:$36 sps:$4 sm:$0xff]   ;;  %v1513_v8 = vld [vmem:[%s1666_s6 + $0x1c] ss:$36 sps:$4 sm:$0xff]   ;;  %v1519_v14 = vld [vmem:[%s1821_s2 + $0x228] sm:$0xff]  }
  0x1e   : > { %1333 = vmatprep.subr.bf16.mxu1 %v1463_v25  ;;  %v1510_v5 = vld [vmem:[%s1821_s2 + $0x1b8] sm:$0xff]   ;;  %v1520_v15 = vld [vmem:[%s1821_s2 + $0x230] sm:$0xff]   ;;  %v1522_v17 = vld [vmem:[%s1666_s6 + $0x20] ss:$36 sps:$4 sm:$0xff]  }
  0x1f   : > { %v1511_v7 = vld [vmem:[%s1666_s6 + $0x18] ss:$36 sps:$4 sm:$0xff]   ;;  %v1523_v18 = vld [vmem:[%s1822_s3] sm:$0xff]   ;;  %v1524_v19 = vld [vmem:[%s1822_s3 + $0x8] sm:$0xff]   ;;  %s1210_s6 = sshll.u32 %s1825_s23, 3 }
  0x20   : > { %1312 = vmatpush3.bf16.msra.mxu0 %v1464_v26  ;;  %v1517_v12 = vld [vmem:[%s1821_s2 + $0x218] sm:$0xff]   ;;  %s218_s5 = scalar_lea.vmem %s1820_s1, %s1210_s6  ;;  %s224_s8 = scalar_lea.vmem %s1823_s4, %s1210_s6 }
  0x21   : > { %1334 = vmatpush3.bf16.msra.mxu1 %v1465_v27  ;;  %1313 = vmatprep.subr.bf16.mxu0 %v1466_v28  ;;  %v1521_v16 = vld [vmem:[%s1821_s2 + $0x238] sm:$0xff]  }
  0x22   : > { %1335 = vmatprep.subr.bf16.mxu1 %v1467_v29 }
  0x24   : > { %1314 = vmatpush3.bf16.msra.mxu0 %v1468_v30 }
  0x25   : > { %1336 = vmatpush3.bf16.msra.mxu1 %v1469_v31  ;;  %1343 = vmatprep.subr.bf16.mxu0 %v1476_v36 }
  0x26   : > { %1365 = vmatprep.subr.bf16.mxu1 %v1478_v38 }
  0x27   : > { %892 = vmatmul.mubr.bf16.vlgmr.msra.gmra.mrb[0].mxu0 %v1470_v32 }
  0x28   : > { %933 = vmatmul.mubr.bf16.vlgmr.msra.gmra.mrb[0].mxu1 %v1473_v34  ;;  %1344 = vmatpush3.bf16.msra.mxu0 %v1477_v37 }
  0x29   : > { %1366 = vmatpush3.bf16.msra.mxu1 %v1479_v39  ;;  %1345 = vmatprep.subr.bf16.mxu0 %v1480_v40 }
  0x2a   : > { %1367 = vmatprep.subr.bf16.mxu1 %v1482_v42  ;;  %973 = vmatprep.mubr.bf16.mxu0 %v1509_v4 }
  0x2b   : > { %1014 = vmatprep.mubr.bf16.mxu1 %v1513_v8 }
  0x2c   : > { %1346 = vmatpush3.bf16.msra.mxu0 %v1481_v41 }
  0x2d   : > { %1368 = vmatpush3.bf16.msra.mxu1 %v1483_v43  ;;  %1347 = vmatprep.subr.bf16.mxu0 %v1484_v44 }
  0x2e   : > { %1369 = vmatprep.subr.bf16.mxu1 %v1486_v46 }
  0x30   : > { %1348 = vmatpush3.bf16.msra.mxu0 %v1485_v45 }
  0x31   : > { %1370 = vmatpush3.bf16.msra.mxu1 %v1487_v47  ;;  %1349 = vmatprep.subr.bf16.mxu0 %v1488_v48 }
  0x32   : > { %1371 = vmatprep.subr.bf16.mxu1 %v1490_v50 }
  0x34   : > { %1350 = vmatpush3.bf16.msra.mxu0 %v1489_v49 }
  0x35   : > { %1372 = vmatpush3.bf16.msra.mxu1 %v1491_v51  ;;  %1351 = vmatprep.subr.bf16.mxu0 %v1492_v52 }
  0x36   : > { %1373 = vmatprep.subr.bf16.mxu1 %v1494_v54 }
  0x38   : > { %1352 = vmatpush3.bf16.msra.mxu0 %v1493_v53 }
  0x39   : > { %1374 = vmatpush3.bf16.msra.mxu1 %v1495_v55  ;;  %1353 = vmatprep.subr.bf16.mxu0 %v1496_v56 }
  0x3a   : > { %1375 = vmatprep.subr.bf16.mxu1 %v1498_v58 }
  0x3c   : > { %1354 = vmatpush3.bf16.msra.mxu0 %v1497_v57 }
  0x3d   : > { %1376 = vmatpush3.bf16.msra.mxu1 %v1499_v59  ;;  %1355 = vmatprep.subr.bf16.mxu0 %v1500_v60  ;;  %v1071_v59 = vld [vmem:[%s218_s5] sm:$0xff] }
  0x3e   : > { %1377 = vmatprep.subr.bf16.mxu1 %v1502_v62 }
  0x40   : > { %1356 = vmatpush3.bf16.msra.mxu0 %v1501_v61  ;;  %v1072_v61 = vld [vmem:[%s218_s5 + $0x8] sm:$0xff] }
  0x41   : > { %1378 = vmatpush3.bf16.msra.mxu1 %v1503_v63  ;;  %1357 = vmatprep.subr.bf16.mxu0 %v1504_v0 }
  0x42   : > { %1379 = vmatprep.subr.bf16.mxu1 %v1506_v2 }
  0x44   : > { %1358 = vmatpush3.bf16.msra.mxu0 %v1505_v1 }
  0x45   : > { %1399 = vmatprep.subr.bf16.mxu0 %v1533_v6  ;;  %1380 = vmatpush3.bf16.msra.mxu1 %v1510_v5 }
  0x46   : > { %1419 = vmatprep.subr.bf16.mxu1 %v1533_v6 }
  0x47   : > { %974 = vmatmul.mubr.bf16.vlgmr.msra.gmra.mrb[4].mxu0 %v1507_v3 }
  0x48   : > { %1415 = vmatprep.mubr.msk.bf16.mxu0 %vm1534_vm0, %v1533_v6  ;;  %1400 = vmatpush3.bf16.msra.mxu0 %v1514_v9 }
  0x49   : > { %1015 = vmatmul.mubr.bf16.vlgmr.msra.gmra.mrb[4].mxu1 %v1511_v7  ;;  %1401 = vmatprep.subr.bf16.mxu0 %v1533_v6 }
  0x4a   : > { %1423 = vmatprep.mubr.msk.bf16.mxu1 %vm1534_vm0, %v1533_v6  ;;  %1420 = vmatpush3.bf16.msra.mxu1 %v1523_v18 }
  0x4b   : > { %1421 = vmatprep.subr.bf16.mxu1 %v1533_v6 }
  0x4c   : > { %1402 = vmatpush3.bf16.msra.mxu0 %v1515_v10 }
  0x4d   : > { %1403 = vmatprep.subr.bf16.mxu0 %v1533_v6 }
  0x4e   : > { %1422 = vmatpush3.bf16.msra.mxu1 %v1524_v19 }
  0x50   : > { %1404 = vmatpush3.bf16.msra.mxu0 %v1516_v11 }
  0x51   : > { %1405 = vmatprep.subr.bf16.mxu0 %v1533_v6 }
  0x54   : > { %1406 = vmatpush3.bf16.msra.mxu0 %v1517_v12 }
  0x55   : > { %1407 = vmatprep.subr.bf16.mxu0 %v1533_v6 }
  0x58   : > { %1408 = vmatpush3.bf16.msra.mxu0 %v1518_v13 }
  0x59   : > { %1409 = vmatprep.subr.bf16.mxu0 %v1533_v6 }
  0x5c   : > { %1410 = vmatpush3.bf16.msra.mxu0 %v1519_v14 }
  0x5d   : > { %1411 = vmatprep.subr.bf16.mxu0 %v1533_v6 }
  0x60   : > { %1412 = vmatpush3.bf16.msra.mxu0 %v1520_v15 }
  0x61   : > { %1413 = vmatprep.subr.bf16.mxu0 %v1533_v6 }
  0x64   : > { %1414 = vmatpush3.bf16.msra.mxu0 %v1521_v16 }
  0x67   : > { %1416 = vmatmul.mubr.bf16.vlgmr.msra.gmra.mrb[8].mxu0 %v1522_v17 }
  0xfa   : > { %v1315_v20 = vpop.f32.mrb[0].mxu0 }
  0xfb   : > { %v1337_v21 = vpop.f32.mrb[0].mxu1  ;;  %v1316_v22 = vpop.f32.mrb[1].mxu0 }
  0xfc   : > { %v1317_v23 = vadd.f32 %v1316_v22, %v1315_v20  ;;  %v1338_v24 = vpop.f32.mrb[1].mxu1  ;;  %v1318_v25 = vpop.f32.mrb[2].mxu0 }
  0xfd   : > { %v1339_v26 = vadd.f32 %v1338_v24, %v1337_v21  ;;  %v1340_v27 = vpop.f32.mrb[2].mxu1  ;;  %v1319_v28 = vpop.f32.mrb[3].mxu0 }
  0xfe   : > { %v1320_v29 = vadd.f32 %v1319_v28, %v1318_v25  ;;  %v1341_v30 = vpop.f32.mrb[3].mxu1 }
  0xff   : > { %v935_v31 = vadd.f32 %v1339_v26, %v1317_v23  ;;  %v1342_v32 = vadd.f32 %v1341_v30, %v1340_v27 }
 0x101   : > { %v938_v33 = vadd.f32 %v1342_v32, %v1320_v29 }
 0x11a   : > { %v1359_v34 = vpop.f32.mrb[4].mxu0 }
 0x11b   : > { %v1360_v35 = vpop.f32.mrb[5].mxu0 }
 0x11c   : > { %v1361_v36 = vadd.f32 %v1360_v35, %v1359_v34  ;;  %v1362_v37 = vpop.f32.mrb[6].mxu0  ;;  %v1381_v38 = vpop.f32.mrb[4].mxu1 }
 0x11d   : > { %v1363_v39 = vpop.f32.mrb[7].mxu0  ;;  %v1382_v42 = vpop.f32.mrb[5].mxu1 }
 0x11e   : > { %v976_v40 = vadd.f32 %v1361_v36, %v935_v31  ;;  %v1364_v41 = vadd.f32 %v1363_v39, %v1362_v37  ;;  %v1383_v43 = vadd.f32 %v1382_v42, %v1381_v38  ;;  %v1384_v44 = vpop.f32.mrb[6].mxu1 }
 0x11f   : > { %v1385_v46 = vpop.f32.mrb[7].mxu1 }
 0x120   : > { %v979_v45 = vadd.f32 %v1364_v41, %v938_v33  ;;  %v1386_v47 = vadd.f32 %v1385_v46, %v1384_v44  ;;  %v1017_v48 = vadd.f32 %v1383_v43, %v976_v40 }
 0x122   : > { %v1020_v49 = vadd.f32 %v1386_v47, %v979_v45 }
 0x13a   : > { %v1057_v50 = vpop.f32.mrb[8].mxu0 }
 0x13b   : > { %v1058_v51 = vadd.f32 %v1057_v50, %v1017_v48  ;;  %v1417_v52 = vpop.f32.mrb[9].mxu0 }
 0x13c   : > { %v1060_v53 = vpop.f32.mrb[10].mxu0 }
 0x13d   : > { %v1061_v54 = vadd.f32 %v1060_v53, %v1020_v49  ;;  %v1418_v55 = vpop.f32.mrb[11].mxu0  ;;  %v1064_v56 = vmax.f32 %v1058_v51, 0.0 }
 0x13f   : > { %v1065_v57 = vmax.f32 %v1061_v54, 0.0 }
 0x141   : > { %v1066_v58 = vpack.c.bf16 %v1065_v57, %v1064_v56 }
 0x143   : > { %1424 = vmatmul.mubr.msk.bf16.vlgmr.msra.gmra.mrb[8].mxu1 %vm1085_vm1, %v1066_v58 }
 0x216   : > { %v1123_v60 = vpop.f32.mrb[8].mxu1 }
 0x217   : > { %v1124_v62 = vadd.f32 %v1123_v60, %v1071_v59  ;;  %v1425_v63 = vpop.f32.mrb[9].mxu1 }
 0x218   : > { %v1126_v0 = vpop.f32.mrb[10].mxu1 }
 0x219   : > { %v1130_v1 = vmax.f32 %v1124_v62, 0.0  ;;  %v1127_v2 = vadd.f32 %v1126_v0, %v1072_v61  ;;  %v1426_v3 = vpop.f32.mrb[11].mxu1 }
 0x21b   : > { %1132 = vst [vmem:[%s224_s8] sm:$0xff] %v1130_v1  ;;  %v1131_v4 = vmax.f32 %v1127_v2, 0.0 }
 0x21d   : > { %1133 = vst [vmem:[%s224_s8 + $0x8] sm:$0xff] %v1131_v4 }
 0x21e PF: > { %s14_s15 = sadd.s32 1, %s1531_s15  }
 0x21f   : > { %p11_p4 = scmp.ge.s32.totalorder %s14_s15, 4  }
 0x221   :  { %13 = sbr.rel (!%p11_p4) target bundleno = 1 (0x1), region = 69 }

// kernel: _lambda_.13
= control target key start
LH: loop header
LB: loop body
LE: loop exit
PB: predicated region body
PF: predicated region fallthrough
CT: control target
= control target key end

     0   :  { %s1558_s15 = smov 0   ;;  %s1817_s0 = inlined_call_operand.vmem [shape: bf16[32,1152], index: 0, kind: input, shape index: {}]   ;;  %s1818_s1 = inlined_call_operand.vmem [shape: f32[32,128], index: 1, kind: input, shape index: {}]   ;;  %s1819_s2 = inlined_call_operand.vmem [shape: bf16[1152,32], index: 2, kind: input, shape index: {}]   ;;  %s1820_s3 = inlined_call_operand.vmem [shape: bf16[32,128], index: 3, kind: input, shape index: {}]   ;;  %s1821_s4 = inlined_call_operand.vmem [shape: f32[32,128], index: 4, kind: output, shape index: {}]  }
   0x1 LB: > { %s1200_s16 = sadd.s32 4294967295, %s1529_s15   ;;  %p1204_p0 = scmp.ge.s32.totalorder %s1529_s15, 1  ;;  %s1529_s15 = sphi %s1558_s15, %s14_s15  }
   0x2   : > { %p175_p1 = scmp.lt.s32.totalorder %s1529_s15, 3 }
   0x4   : > { %p176_p2 = pnand %p1204_p0, %p175_p1 }
   0x5   : > { %v1436_v0 = vld [vmem:[%s1819_s2 + $0x40] sm:$0xff] (!%p176_p2)   ;;  %v1440_v4 = vld [vmem:[%s1819_s2 + $0x48] sm:$0xff] (!%p176_p2)   ;;  %v1444_v8 = vld [vmem:[%s1819_s2 + $0x50] sm:$0xff] (!%p176_p2)   ;;  %s1205_s23 = sshll.u32 (!%p176_p2), %s1200_s16, 1  ;;  %vm1532_vm0 = vmmov (!%p176_p2), 0   ;;  %vm1085_vm1 = vcmask (!%p176_p2), 261120  }
   0x6   : > { %179 = sbr.rel (%p176_p2) target bundleno = 540 (0x21c), region = 36  ;;  %v1437_v1 = vld [vmem:[%s1819_s2 + $0xc0] sm:$0xff] (!%p176_p2)   ;;  %1297 = vmatprep.subr.bf16.mxu0 (!%p176_p2), %v1436_v0  ;;  %v1441_v5 = vld [vmem:[%s1819_s2 + $0xc8] sm:$0xff] (!%p176_p2)   ;;  %v1445_v9 = vld [vmem:[%s1819_s2 + $0xd0] sm:$0xff] (!%p176_p2)   ;;  %p208_p3 = scmp.lt.s32.totalorder (!%p176_p2), %s1205_s23, 3 }
   0x7   : > { %v1438_v2 = vld [vmem:[%s1819_s2] sm:$0xff] (!%p176_p2)   ;;  %1319 = vmatprep.subr.bf16.mxu1 (!%p176_p2), %v1437_v1  ;;  %v1442_v6 = vld [vmem:[%s1819_s2 + $0x8] sm:$0xff] (!%p176_p2)   ;;  %v1446_v10 = vld [vmem:[%s1819_s2 + $0x10] sm:$0xff] (!%p176_p2)  }
   0x8   : > { %v1439_v3 = vld [vmem:[%s1819_s2 + $0x80] sm:$0xff] (!%p176_p2)   ;;  %1298 = vmatpush3.bf16.msra.mxu0 (!%p176_p2), %v1438_v2  ;;  %v1443_v7 = vld [vmem:[%s1819_s2 + $0x88] sm:$0xff] (!%p176_p2)   ;;  %v1447_v11 = vld [vmem:[%s1819_s2 + $0x90] sm:$0xff] (!%p176_p2)  }
   0x9   : > { %1320 = vmatpush3.bf16.msra.mxu1 (!%p176_p2), %v1439_v3  ;;  %1299 = vmatprep.subr.bf16.mxu0 (!%p176_p2), %v1440_v4  ;;  %v1448_v12 = vld [vmem:[%s1819_s2 + $0x58] sm:$0xff] (!%p176_p2)   ;;  %v1452_v16 = vld [vmem:[%s1819_s2 + $0x60] sm:$0xff] (!%p176_p2)   ;;  %v1456_v20 = vld [vmem:[%s1819_s2 + $0x68] sm:$0xff] (!%p176_p2)  }
   0xa   : > { %1321 = vmatprep.subr.bf16.mxu1 (!%p176_p2), %v1441_v5  ;;  %v1449_v13 = vld [vmem:[%s1819_s2 + $0xd8] sm:$0xff] (!%p176_p2)   ;;  %v1453_v17 = vld [vmem:[%s1819_s2 + $0xe0] sm:$0xff] (!%p176_p2)   ;;  %v1457_v21 = vld [vmem:[%s1819_s2 + $0xe8] sm:$0xff] (!%p176_p2)  }
   0xb   : > { %v1450_v14 = vld [vmem:[%s1819_s2 + $0x18] sm:$0xff] (!%p176_p2)   ;;  %v1454_v18 = vld [vmem:[%s1819_s2 + $0x20] sm:$0xff] (!%p176_p2)   ;;  %v1458_v22 = vld [vmem:[%s1819_s2 + $0x28] sm:$0xff] (!%p176_p2)  }
   0xc   : > { %1300 = vmatpush3.bf16.msra.mxu0 (!%p176_p2), %v1442_v6  ;;  %v1451_v15 = vld [vmem:[%s1819_s2 + $0x98] sm:$0xff] (!%p176_p2)   ;;  %v1455_v19 = vld [vmem:[%s1819_s2 + $0xa0] sm:$0xff] (!%p176_p2)   ;;  %v1459_v23 = vld [vmem:[%s1819_s2 + $0xa8] sm:$0xff] (!%p176_p2)   ;;  %v1531_v6 = vmov (!%p176_p2), 0.0  }
   0xd   : > { %1322 = vmatpush3.bf16.msra.mxu1 %v1443_v7  ;;  %1301 = vmatprep.subr.bf16.mxu0 %v1444_v8  ;;  %s1823_s23 = smov (!%p208_p3, %s1205_s23), 3  ;;  %v1460_v24 = vld [vmem:[%s1819_s2 + $0x70] sm:$0xff]   ;;  %v1464_v28 = vld [vmem:[%s1819_s2 + $0x78] sm:$0xff]   ;;  %v1474_v36 = vld [vmem:[%s1819_s2 + $0x140] sm:$0xff]  }
   0xe   : > { %1323 = vmatprep.subr.bf16.mxu1 %v1445_v9  ;;  %v1461_v25 = vld [vmem:[%s1819_s2 + $0xf0] sm:$0xff]   ;;  %s1425_s21 = smul.u32 36, %s1823_s23  ;;  %v1465_v29 = vld [vmem:[%s1819_s2 + $0xf8] sm:$0xff]   ;;  %v1475_v37 = vld [vmem:[%s1819_s2 + $0x100] sm:$0xff]  }
   0xf   : > { %v1462_v26 = vld [vmem:[%s1819_s2 + $0x30] sm:$0xff]   ;;  %v1466_v30 = vld [vmem:[%s1819_s2 + $0x38] sm:$0xff]   ;;  %v1476_v38 = vld [vmem:[%s1819_s2 + $0x1c0] sm:$0xff]  }
  0x10   : > { %1302 = vmatpush3.bf16.msra.mxu0 %v1446_v10  ;;  %v1463_v27 = vld [vmem:[%s1819_s2 + $0xb0] sm:$0xff]   ;;  %s1664_s6 = scalar_lea.vmem %s1817_s0, %s1425_s21  ;;  %v1467_v31 = vld [vmem:[%s1819_s2 + $0xb8] sm:$0xff]   ;;  %v1477_v39 = vld [vmem:[%s1819_s2 + $0x180] sm:$0xff]  }
  0x11   : > { %1324 = vmatpush3.bf16.msra.mxu1 %v1447_v11  ;;  %1303 = vmatprep.subr.bf16.mxu0 %v1448_v12  ;;  %v1468_v32 = vld [vmem:[%s1664_s6] ss:$36 sps:$4 sm:$0xff]   ;;  %v1471_v34 = vld [vmem:[%s1664_s6 + $0x8] ss:$36 sps:$4 sm:$0xff]   ;;  %v1482_v44 = vld [vmem:[%s1819_s2 + $0x150] sm:$0xff]  }
  0x12   : > { %1325 = vmatprep.subr.bf16.mxu1 %v1449_v13  ;;  %v1470_v33 = vld [vmem:[%s1664_s6 + $0x4] ss:$36 sps:$4 sm:$0xff]   ;;  %v1473_v35 = vld [vmem:[%s1664_s6 + $0xc] ss:$36 sps:$4 sm:$0xff]   ;;  %v1486_v48 = vld [vmem:[%s1819_s2 + $0x158] sm:$0xff]  }
  0x13   : > { %891 = vmatprep.mubr.bf16.mxu0 %v1470_v33  ;;  %932 = vmatprep.mubr.bf16.mxu1 %v1473_v35  ;;  %v1478_v40 = vld [vmem:[%s1819_s2 + $0x148] sm:$0xff]   ;;  %v1483_v45 = vld [vmem:[%s1819_s2 + $0x110] sm:$0xff]   ;;  %v1487_v49 = vld [vmem:[%s1819_s2 + $0x118] sm:$0xff]  }
  0x14   : > { %1304 = vmatpush3.bf16.msra.mxu0 %v1450_v14  ;;  %v1479_v41 = vld [vmem:[%s1819_s2 + $0x108] sm:$0xff]   ;;  %v1484_v46 = vld [vmem:[%s1819_s2 + $0x1d0] sm:$0xff]   ;;  %v1488_v50 = vld [vmem:[%s1819_s2 + $0x1d8] sm:$0xff]  }
  0x15   : > { %1326 = vmatpush3.bf16.msra.mxu1 %v1451_v15  ;;  %1305 = vmatprep.subr.bf16.mxu0 %v1452_v16  ;;  %v1480_v42 = vld [vmem:[%s1819_s2 + $0x1c8] sm:$0xff]   ;;  %v1485_v47 = vld [vmem:[%s1819_s2 + $0x190] sm:$0xff]   ;;  %v1489_v51 = vld [vmem:[%s1819_s2 + $0x198] sm:$0xff]  }
  0x16   : > { %1327 = vmatprep.subr.bf16.mxu1 %v1453_v17  ;;  %v1481_v43 = vld [vmem:[%s1819_s2 + $0x188] sm:$0xff]   ;;  %v1490_v52 = vld [vmem:[%s1819_s2 + $0x160] sm:$0xff]   ;;  %v1498_v60 = vld [vmem:[%s1819_s2 + $0x170] sm:$0xff]  }
  0x17   : > { %v1491_v53 = vld [vmem:[%s1819_s2 + $0x120] sm:$0xff]   ;;  %v1494_v56 = vld [vmem:[%s1819_s2 + $0x168] sm:$0xff]   ;;  %v1499_v61 = vld [vmem:[%s1819_s2 + $0x130] sm:$0xff]  }
  0x18   : > { %1306 = vmatpush3.bf16.msra.mxu0 %v1454_v18  ;;  %v1492_v54 = vld [vmem:[%s1819_s2 + $0x1e0] sm:$0xff]   ;;  %v1495_v57 = vld [vmem:[%s1819_s2 + $0x128] sm:$0xff]   ;;  %v1500_v62 = vld [vmem:[%s1819_s2 + $0x1f0] sm:$0xff]  }
  0x19   : > { %1328 = vmatpush3.bf16.msra.mxu1 %v1455_v19  ;;  %1307 = vmatprep.subr.bf16.mxu0 %v1456_v20  ;;  %v1493_v55 = vld [vmem:[%s1819_s2 + $0x1a0] sm:$0xff]   ;;  %v1496_v58 = vld [vmem:[%s1819_s2 + $0x1e8] sm:$0xff]   ;;  %v1501_v63 = vld [vmem:[%s1819_s2 + $0x1b0] sm:$0xff]  }
  0x1a   : > { %1329 = vmatprep.subr.bf16.mxu1 %v1457_v21  ;;  %v1497_v59 = vld [vmem:[%s1819_s2 + $0x1a8] sm:$0xff]   ;;  %v1502_v0 = vld [vmem:[%s1819_s2 + $0x178] sm:$0xff]   ;;  %v1505_v3 = vld [vmem:[%s1664_s6 + $0x10] ss:$36 sps:$4 sm:$0xff]  }
  0x1b   : > { %v1503_v1 = vld [vmem:[%s1819_s2 + $0x138] sm:$0xff]   ;;  %v1512_v9 = vld [vmem:[%s1819_s2 + $0x200] sm:$0xff]   ;;  %v1513_v10 = vld [vmem:[%s1819_s2 + $0x208] sm:$0xff]  }
  0x1c   : > { %1308 = vmatpush3.bf16.msra.mxu0 %v1458_v22  ;;  %v1504_v2 = vld [vmem:[%s1819_s2 + $0x1f8] sm:$0xff]   ;;  %v1514_v11 = vld [vmem:[%s1819_s2 + $0x210] sm:$0xff]   ;;  %v1516_v13 = vld [vmem:[%s1819_s2 + $0x220] sm:$0xff]  }
  0x1d   : > { %1330 = vmatpush3.bf16.msra.mxu1 %v1459_v23  ;;  %1309 = vmatprep.subr.bf16.mxu0 %v1460_v24  ;;  %v1507_v4 = vld [vmem:[%s1664_s6 + $0x14] ss:$36 sps:$4 sm:$0xff]   ;;  %v1511_v8 = vld [vmem:[%s1664_s6 + $0x1c] ss:$36 sps:$4 sm:$0xff]   ;;  %v1517_v14 = vld [vmem:[%s1819_s2 + $0x228] sm:$0xff]  }
  0x1e   : > { %1331 = vmatprep.subr.bf16.mxu1 %v1461_v25  ;;  %v1508_v5 = vld [vmem:[%s1819_s2 + $0x1b8] sm:$0xff]   ;;  %v1518_v15 = vld [vmem:[%s1819_s2 + $0x230] sm:$0xff]   ;;  %v1520_v17 = vld [vmem:[%s1664_s6 + $0x20] ss:$36 sps:$4 sm:$0xff]  }
  0x1f   : > { %v1509_v7 = vld [vmem:[%s1664_s6 + $0x18] ss:$36 sps:$4 sm:$0xff]   ;;  %v1521_v18 = vld [vmem:[%s1820_s3] sm:$0xff]   ;;  %v1522_v19 = vld [vmem:[%s1820_s3 + $0x8] sm:$0xff]   ;;  %s1208_s6 = sshll.u32 %s1823_s23, 3 }
  0x20   : > { %1310 = vmatpush3.bf16.msra.mxu0 %v1462_v26  ;;  %v1515_v12 = vld [vmem:[%s1819_s2 + $0x218] sm:$0xff]   ;;  %s218_s5 = scalar_lea.vmem %s1818_s1, %s1208_s6  ;;  %s224_s8 = scalar_lea.vmem %s1821_s4, %s1208_s6 }
  0x21   : > { %1332 = vmatpush3.bf16.msra.mxu1 %v1463_v27  ;;  %1311 = vmatprep.subr.bf16.mxu0 %v1464_v28  ;;  %v1519_v16 = vld [vmem:[%s1819_s2 + $0x238] sm:$0xff]  }
  0x22   : > { %1333 = vmatprep.subr.bf16.mxu1 %v1465_v29 }
  0x24   : > { %1312 = vmatpush3.bf16.msra.mxu0 %v1466_v30 }
  0x25   : > { %1334 = vmatpush3.bf16.msra.mxu1 %v1467_v31  ;;  %1341 = vmatprep.subr.bf16.mxu0 %v1474_v36 }
  0x26   : > { %1363 = vmatprep.subr.bf16.mxu1 %v1476_v38 }
  0x27   : > { %892 = vmatmul.mubr.bf16.vlgmr.msra.gmra.mrb[0].mxu0 %v1468_v32 }
  0x28   : > { %933 = vmatmul.mubr.bf16.vlgmr.msra.gmra.mrb[0].mxu1 %v1471_v34  ;;  %1342 = vmatpush3.bf16.msra.mxu0 %v1475_v37 }
  0x29   : > { %1364 = vmatpush3.bf16.msra.mxu1 %v1477_v39  ;;  %1343 = vmatprep.subr.bf16.mxu0 %v1478_v40 }
  0x2a   : > { %1365 = vmatprep.subr.bf16.mxu1 %v1480_v42  ;;  %973 = vmatprep.mubr.bf16.mxu0 %v1507_v4 }
  0x2b   : > { %1014 = vmatprep.mubr.bf16.mxu1 %v1511_v8 }
  0x2c   : > { %1344 = vmatpush3.bf16.msra.mxu0 %v1479_v41 }
  0x2d   : > { %1366 = vmatpush3.bf16.msra.mxu1 %v1481_v43  ;;  %1345 = vmatprep.subr.bf16.mxu0 %v1482_v44 }
  0x2e   : > { %1367 = vmatprep.subr.bf16.mxu1 %v1484_v46 }
  0x30   : > { %1346 = vmatpush3.bf16.msra.mxu0 %v1483_v45 }
  0x31   : > { %1368 = vmatpush3.bf16.msra.mxu1 %v1485_v47  ;;  %1347 = vmatprep.subr.bf16.mxu0 %v1486_v48 }
  0x32   : > { %1369 = vmatprep.subr.bf16.mxu1 %v1488_v50 }
  0x34   : > { %1348 = vmatpush3.bf16.msra.mxu0 %v1487_v49 }
  0x35   : > { %1370 = vmatpush3.bf16.msra.mxu1 %v1489_v51  ;;  %1349 = vmatprep.subr.bf16.mxu0 %v1490_v52 }
  0x36   : > { %1371 = vmatprep.subr.bf16.mxu1 %v1492_v54 }
  0x38   : > { %1350 = vmatpush3.bf16.msra.mxu0 %v1491_v53 }
  0x39   : > { %1372 = vmatpush3.bf16.msra.mxu1 %v1493_v55  ;;  %1351 = vmatprep.subr.bf16.mxu0 %v1494_v56 }
  0x3a   : > { %1373 = vmatprep.subr.bf16.mxu1 %v1496_v58 }
  0x3c   : > { %1352 = vmatpush3.bf16.msra.mxu0 %v1495_v57 }
  0x3d   : > { %1374 = vmatpush3.bf16.msra.mxu1 %v1497_v59  ;;  %1353 = vmatprep.subr.bf16.mxu0 %v1498_v60  ;;  %v1071_v59 = vld [vmem:[%s218_s5] sm:$0xff] }
  0x3e   : > { %1375 = vmatprep.subr.bf16.mxu1 %v1500_v62 }
  0x40   : > { %1354 = vmatpush3.bf16.msra.mxu0 %v1499_v61  ;;  %v1072_v61 = vld [vmem:[%s218_s5 + $0x8] sm:$0xff] }
  0x41   : > { %1376 = vmatpush3.bf16.msra.mxu1 %v1501_v63  ;;  %1355 = vmatprep.subr.bf16.mxu0 %v1502_v0 }
  0x42   : > { %1377 = vmatprep.subr.bf16.mxu1 %v1504_v2 }
  0x44   : > { %1356 = vmatpush3.bf16.msra.mxu0 %v1503_v1 }
  0x45   : > { %1397 = vmatprep.subr.bf16.mxu0 %v1531_v6  ;;  %1378 = vmatpush3.bf16.msra.mxu1 %v1508_v5 }
  0x46   : > { %1417 = vmatprep.subr.bf16.mxu1 %v1531_v6 }
  0x47   : > { %974 = vmatmul.mubr.bf16.vlgmr.msra.gmra.mrb[4].mxu0 %v1505_v3 }
  0x48   : > { %1413 = vmatprep.mubr.msk.bf16.mxu0 %vm1532_vm0, %v1531_v6  ;;  %1398 = vmatpush3.bf16.msra.mxu0 %v1512_v9 }
  0x49   : > { %1015 = vmatmul.mubr.bf16.vlgmr.msra.gmra.mrb[4].mxu1 %v1509_v7  ;;  %1399 = vmatprep.subr.bf16.mxu0 %v1531_v6 }
  0x4a   : > { %1421 = vmatprep.mubr.msk.bf16.mxu1 %vm1532_vm0, %v1531_v6  ;;  %1418 = vmatpush3.bf16.msra.mxu1 %v1521_v18 }
  0x4b   : > { %1419 = vmatprep.subr.bf16.mxu1 %v1531_v6 }
  0x4c   : > { %1400 = vmatpush3.bf16.msra.mxu0 %v1513_v10 }
  0x4d   : > { %1401 = vmatprep.subr.bf16.mxu0 %v1531_v6 }
  0x4e   : > { %1420 = vmatpush3.bf16.msra.mxu1 %v1522_v19 }
  0x50   : > { %1402 = vmatpush3.bf16.msra.mxu0 %v1514_v11 }
  0x51   : > { %1403 = vmatprep.subr.bf16.mxu0 %v1531_v6 }
  0x54   : > { %1404 = vmatpush3.bf16.msra.mxu0 %v1515_v12 }
  0x55   : > { %1405 = vmatprep.subr.bf16.mxu0 %v1531_v6 }
  0x58   : > { %1406 = vmatpush3.bf16.msra.mxu0 %v1516_v13 }
  0x59   : > { %1407 = vmatprep.subr.bf16.mxu0 %v1531_v6 }
  0x5c   : > { %1408 = vmatpush3.bf16.msra.mxu0 %v1517_v14 }
  0x5d   : > { %1409 = vmatprep.subr.bf16.mxu0 %v1531_v6 }
  0x60   : > { %1410 = vmatpush3.bf16.msra.mxu0 %v1518_v15 }
  0x61   : > { %1411 = vmatprep.subr.bf16.mxu0 %v1531_v6 }
  0x64   : > { %1412 = vmatpush3.bf16.msra.mxu0 %v1519_v16 }
  0x67   : > { %1414 = vmatmul.mubr.bf16.vlgmr.msra.gmra.mrb[8].mxu0 %v1520_v17 }
  0xfa   : > { %v1313_v20 = vpop.f32.mrb[0].mxu0 }
  0xfb   : > { %v1335_v21 = vpop.f32.mrb[0].mxu1  ;;  %v1314_v22 = vpop.f32.mrb[1].mxu0 }
  0xfc   : > { %v1315_v23 = vadd.f32 %v1314_v22, %v1313_v20  ;;  %v1336_v24 = vpop.f32.mrb[1].mxu1  ;;  %v1316_v25 = vpop.f32.mrb[2].mxu0 }
  0xfd   : > { %v1337_v26 = vadd.f32 %v1336_v24, %v1335_v21  ;;  %v1338_v27 = vpop.f32.mrb[2].mxu1  ;;  %v1317_v28 = vpop.f32.mrb[3].mxu0 }
  0xfe   : > { %v1318_v29 = vadd.f32 %v1317_v28, %v1316_v25  ;;  %v1339_v30 = vpop.f32.mrb[3].mxu1 }
  0xff   : > { %v935_v31 = vadd.f32 %v1337_v26, %v1315_v23  ;;  %v1340_v32 = vadd.f32 %v1339_v30, %v1338_v27 }
 0x101   : > { %v938_v33 = vadd.f32 %v1340_v32, %v1318_v29 }
 0x11a   : > { %v1357_v34 = vpop.f32.mrb[4].mxu0 }
 0x11b   : > { %v1358_v35 = vpop.f32.mrb[5].mxu0 }
 0x11c   : > { %v1359_v36 = vadd.f32 %v1358_v35, %v1357_v34  ;;  %v1360_v37 = vpop.f32.mrb[6].mxu0  ;;  %v1379_v38 = vpop.f32.mrb[4].mxu1 }
 0x11d   : > { %v1361_v39 = vpop.f32.mrb[7].mxu0  ;;  %v1380_v42 = vpop.f32.mrb[5].mxu1 }
 0x11e   : > { %v976_v40 = vadd.f32 %v1359_v36, %v935_v31  ;;  %v1362_v41 = vadd.f32 %v1361_v39, %v1360_v37  ;;  %v1381_v43 = vadd.f32 %v1380_v42, %v1379_v38  ;;  %v1382_v44 = vpop.f32.mrb[6].mxu1 }
 0x11f   : > { %v1383_v46 = vpop.f32.mrb[7].mxu1 }
 0x120   : > { %v979_v45 = vadd.f32 %v1362_v41, %v938_v33  ;;  %v1384_v47 = vadd.f32 %v1383_v46, %v1382_v44  ;;  %v1017_v48 = vadd.f32 %v1381_v43, %v976_v40 }
 0x122   : > { %v1020_v49 = vadd.f32 %v1384_v47, %v979_v45 }
 0x13a   : > { %v1057_v50 = vpop.f32.mrb[8].mxu0 }
 0x13b   : > { %v1058_v51 = vadd.f32 %v1057_v50, %v1017_v48  ;;  %v1415_v52 = vpop.f32.mrb[9].mxu0 }
 0x13c   : > { %v1060_v53 = vpop.f32.mrb[10].mxu0 }
 0x13d   : > { %v1061_v54 = vadd.f32 %v1060_v53, %v1020_v49  ;;  %v1416_v55 = vpop.f32.mrb[11].mxu0  ;;  %v1064_v56 = vmax.f32 %v1058_v51, 0.0 }
 0x13f   : > { %v1065_v57 = vmax.f32 %v1061_v54, 0.0 }
 0x141   : > { %v1066_v58 = vpack.c.bf16 %v1065_v57, %v1064_v56 }
 0x143   : > { %1422 = vmatmul.mubr.msk.bf16.vlgmr.msra.gmra.mrb[8].mxu1 %vm1085_vm1, %v1066_v58 }
 0x216   : > { %v1123_v60 = vpop.f32.mrb[8].mxu1 }
 0x217   : > { %v1124_v62 = vadd.f32 %v1123_v60, %v1071_v59  ;;  %v1423_v63 = vpop.f32.mrb[9].mxu1 }
 0x218   : > { %v1126_v0 = vpop.f32.mrb[10].mxu1 }
 0x219   : > { %1130 = vst [vmem:[%s224_s8] sm:$0xff] %v1124_v62  ;;  %v1127_v1 = vadd.f32 %v1126_v0, %v1072_v61  ;;  %v1424_v2 = vpop.f32.mrb[11].mxu1 }
 0x21b   : > { %1131 = vst [vmem:[%s224_s8 + $0x8] sm:$0xff] %v1127_v1 }
 0x21c PF: > { %s14_s15 = sadd.s32 1, %s1529_s15  }
 0x21d   : > { %p11_p4 = scmp.ge.s32.totalorder %s14_s15, 4  }
 0x21f   :  { %13 = sbr.rel (!%p11_p4) target bundleno = 1 (0x1), region = 69 }

// kernel: _lambda_.19
= control target key start
LH: loop header
LB: loop body
LE: loop exit
PB: predicated region body
PF: predicated region fallthrough
CT: control target
= control target key end

     0   :  { %s1154_s12 = smov 0   ;;  %s1313_s0 = inlined_call_operand.vmem [shape: bf16[128,576], index: 0, kind: input, shape index: {}]   ;;  %s1314_s1 = inlined_call_operand.vmem [shape: bf16[576,128], index: 1, kind: input, shape index: {}]   ;;  %s1315_s2 = inlined_call_operand.vmem [shape: f32[1,128], index: 2, kind: input, shape index: {}]   ;;  %s1316_s3 = inlined_call_operand.vmem [shape: f32[128,128], index: 3, kind: output, shape index: {}]  }
   0x1 LB: > { %s869_s13 = sadd.s32 4294967295, %s1132_s12   ;;  %p873_p0 = scmp.ge.s32.totalorder %s1132_s12, 1  ;;  %s1132_s12 = sphi %s1154_s12, %s13_s12  }
   0x2   : > { %p139_p1 = scmp.lt.s32.totalorder %s1132_s12, 3 }
   0x4   : > { %p140_p2 = pnand %p873_p0, %p139_p1 }
   0x5   : > { %v1062_v0 = vld [vmem:[%s1314_s1 + $0x40] sm:$0xff] (!%p140_p2)   ;;  %v1066_v4 = vld [vmem:[%s1314_s1 + $0x48] sm:$0xff] (!%p140_p2)   ;;  %v1070_v8 = vld [vmem:[%s1314_s1 + $0x50] sm:$0xff] (!%p140_p2)   ;;  %s874_s19 = sshll.u32 (!%p140_p2), %s869_s13, 3  ;;  %vm597_vm0 = vcmask (!%p140_p2), 523264  }
   0x6   : > { %143 = sbr.rel (%p140_p2) target bundleno = 290 (0x122), region = 32  ;;  %v1063_v1 = vld [vmem:[%s1314_s1 + $0xc0] sm:$0xff] (!%p140_p2)   ;;  %941 = vmatprep.subr.bf16.mxu0 (!%p140_p2), %v1062_v0  ;;  %v1067_v5 = vld [vmem:[%s1314_s1 + $0xc8] sm:$0xff] (!%p140_p2)   ;;  %v1071_v9 = vld [vmem:[%s1314_s1 + $0xd0] sm:$0xff] (!%p140_p2)   ;;  %p165_p3 = scmp.lt.s32.totalorder (!%p140_p2), %s874_s19, 15 }
   0x7   : > { %v1064_v2 = vld [vmem:[%s1314_s1] sm:$0xff] (!%p140_p2)   ;;  %981 = vmatprep.subr.bf16.mxu1 (!%p140_p2), %v1063_v1  ;;  %v1068_v6 = vld [vmem:[%s1314_s1 + $0x8] sm:$0xff] (!%p140_p2)   ;;  %v1072_v10 = vld [vmem:[%s1314_s1 + $0x10] sm:$0xff] (!%p140_p2)  }
   0x8   : > { %v1065_v3 = vld [vmem:[%s1314_s1 + $0x80] sm:$0xff] (!%p140_p2)   ;;  %942 = vmatpush3.bf16.msra.mxu0 (!%p140_p2), %v1064_v2  ;;  %v1069_v7 = vld [vmem:[%s1314_s1 + $0x88] sm:$0xff] (!%p140_p2)   ;;  %v1073_v11 = vld [vmem:[%s1314_s1 + $0x90] sm:$0xff] (!%p140_p2)  }
   0x9   : > { %982 = vmatpush3.bf16.msra.mxu1 (!%p140_p2), %v1065_v3  ;;  %943 = vmatprep.subr.bf16.mxu0 (!%p140_p2), %v1066_v4  ;;  %v1074_v12 = vld [vmem:[%s1314_s1 + $0x58] sm:$0xff] (!%p140_p2)   ;;  %v1078_v16 = vld [vmem:[%s1314_s1 + $0x60] sm:$0xff] (!%p140_p2)   ;;  %v1082_v20 = vld [vmem:[%s1314_s1 + $0x68] sm:$0xff] (!%p140_p2)  }
   0xa   : > { %983 = vmatprep.subr.bf16.mxu1 (!%p140_p2), %v1067_v5  ;;  %v1075_v13 = vld [vmem:[%s1314_s1 + $0xd8] sm:$0xff] (!%p140_p2)   ;;  %v1079_v17 = vld [vmem:[%s1314_s1 + $0xe0] sm:$0xff] (!%p140_p2)   ;;  %v1083_v21 = vld [vmem:[%s1314_s1 + $0xe8] sm:$0xff] (!%p140_p2)  }
   0xb   : > { %v1076_v14 = vld [vmem:[%s1314_s1 + $0x18] sm:$0xff] (!%p140_p2)   ;;  %v1080_v18 = vld [vmem:[%s1314_s1 + $0x20] sm:$0xff] (!%p140_p2)   ;;  %v1084_v22 = vld [vmem:[%s1314_s1 + $0x28] sm:$0xff] (!%p140_p2)  }
   0xc   : > { %944 = vmatpush3.bf16.msra.mxu0 (!%p140_p2), %v1068_v6  ;;  %v1077_v15 = vld [vmem:[%s1314_s1 + $0x98] sm:$0xff] (!%p140_p2)   ;;  %v1081_v19 = vld [vmem:[%s1314_s1 + $0xa0] sm:$0xff] (!%p140_p2)   ;;  %v1085_v23 = vld [vmem:[%s1314_s1 + $0xa8] sm:$0xff] (!%p140_p2)  }
   0xd   : > { %984 = vmatpush3.bf16.msra.mxu1 %v1069_v7  ;;  %945 = vmatprep.subr.bf16.mxu0 %v1070_v8  ;;  %s1318_s19 = smov (!%p165_p3, %s874_s19), 15  ;;  %v1086_v24 = vld [vmem:[%s1314_s1 + $0x70] sm:$0xff]   ;;  %v1090_v28 = vld [vmem:[%s1314_s1 + $0x78] sm:$0xff]   ;;  %v1100_v36 = vld [vmem:[%s1314_s1 + $0x100] sm:$0xff]  }
   0xe   : > { %985 = vmatprep.subr.bf16.mxu1 %v1071_v9  ;;  %v1087_v25 = vld [vmem:[%s1314_s1 + $0xf0] sm:$0xff]   ;;  %s1053_s16 = smul.u32 20, %s1318_s19  ;;  %v1091_v29 = vld [vmem:[%s1314_s1 + $0xf8] sm:$0xff]   ;;  %v1107_v39 = vld [vmem:[%s1314_s1 + $0x108] sm:$0xff]   ;;  %s877_s17 = sshll.u32 %s1318_s19, 3 }
   0xf   : > { %v1088_v26 = vld [vmem:[%s1314_s1 + $0x30] sm:$0xff]   ;;  %v1092_v30 = vld [vmem:[%s1314_s1 + $0x38] sm:$0xff]   ;;  %v878_v58 = vld [vmem:[%s1315_s2] ss:$0 sm:$0xff]  ;;  %s175_s21 = scalar_lea.vmem %s1316_s3, %s877_s17 }
  0x10   : > { %946 = vmatpush3.bf16.msra.mxu0 %v1072_v10  ;;  %v1089_v27 = vld [vmem:[%s1314_s1 + $0xb0] sm:$0xff]   ;;  %s1260_s13 = scalar_lea.vmem %s1313_s0, %s1053_s16  ;;  %v1093_v31 = vld [vmem:[%s1314_s1 + $0xb8] sm:$0xff]  }
  0x11   : > { %986 = vmatpush3.bf16.msra.mxu1 %v1073_v11  ;;  %947 = vmatprep.subr.bf16.mxu0 %v1074_v12  ;;  %v1094_v32 = vld [vmem:[%s1260_s13] ss:$20 sps:$4 sm:$0xff]   ;;  %v1096_v33 = vld [vmem:[%s1260_s13 + $0x4] ss:$20 sps:$4 sm:$0xff]   ;;  %v1097_v34 = vld [vmem:[%s1260_s13 + $0x8] ss:$20 sps:$4 sm:$0xff]  }
  0x12   : > { %987 = vmatprep.subr.bf16.mxu1 %v1075_v13  ;;  %v1099_v35 = vld [vmem:[%s1260_s13 + $0xc] ss:$20 sps:$4 sm:$0xff]   ;;  %642 = vmatprep.mubr.bf16.mxu0 %v1096_v33  ;;  %v1103_v38 = vld [vmem:[%s1260_s13 + $0x34] ss:$20 sps:$4 sm:$0xff]   ;;  %v1106_v41 = vld [vmem:[%s1260_s13 + $0x30] ss:$20 sps:$4 sm:$0xff]  }
  0x13   : > { %707 = vmatprep.mubr.bf16.mxu1 %v1099_v35  ;;  %v1101_v37 = vld [vmem:[%s1260_s13 + $0x2c] ss:$20 sps:$4 sm:$0xff]   ;;  %v1105_v40 = vld [vmem:[%s1260_s13 + $0x28] ss:$20 sps:$4 sm:$0xff]   ;;  %v1114_v44 = vld [vmem:[%s1314_s1 + $0x110] sm:$0xff]  }
  0x14   : > { %948 = vmatpush3.bf16.msra.mxu0 %v1076_v14  ;;  %v1108_v42 = vld [vmem:[%s1260_s13 + $0x54] ss:$20 sps:$4 sm:$0xff]   ;;  %v1110_v43 = vld [vmem:[%s1260_s13 + $0x5c] ss:$20 sps:$4 sm:$0xff]   ;;  %v1113_v47 = vld [vmem:[%s1260_s13 + $0x58] ss:$20 sps:$4 sm:$0xff]  }
  0x15   : > { %988 = vmatpush3.bf16.msra.mxu1 %v1077_v15  ;;  %949 = vmatprep.subr.bf16.mxu0 %v1078_v16  ;;  %v1121_v45 = vld [vmem:[%s1314_s1 + $0x118] sm:$0xff]   ;;  %v1112_v46 = vld [vmem:[%s1260_s13 + $0x50] ss:$20 sps:$4 sm:$0xff]   ;;  %v1120_v51 = vld [vmem:[%s1260_s13 + $0x80] ss:$20 sps:$4 sm:$0xff]  }
  0x16   : > { %989 = vmatprep.subr.bf16.mxu1 %v1079_v17  ;;  %v1115_v48 = vld [vmem:[%s1260_s13 + $0x7c] ss:$20 sps:$4 sm:$0xff]   ;;  %v1117_v49 = vld [vmem:[%s1260_s13 + $0x84] ss:$20 sps:$4 sm:$0xff]   ;;  %v1123_v53 = vld [vmem:[%s1260_s13 + $0x60] ss:$20 sps:$4 sm:$0xff]  }
  0x17   : > { %v1119_v50 = vld [vmem:[%s1260_s13 + $0x78] ss:$20 sps:$4 sm:$0xff]   ;;  %v1122_v52 = vld [vmem:[%s1260_s13 + $0x10] ss:$20 sps:$4 sm:$0xff]   ;;  %v1125_v55 = vld [vmem:[%s1260_s13 + $0x88] ss:$20 sps:$4 sm:$0xff]  }
  0x18   : > { %950 = vmatpush3.bf16.msra.mxu0 %v1080_v18  ;;  %v1124_v54 = vld [vmem:[%s1260_s13 + $0x38] ss:$20 sps:$4 sm:$0xff]  }
  0x19   : > { %990 = vmatpush3.bf16.msra.mxu1 %v1081_v19  ;;  %951 = vmatprep.subr.bf16.mxu0 %v1082_v20 }
  0x1a   : > { %991 = vmatprep.subr.bf16.mxu1 %v1083_v21 }
  0x1c   : > { %952 = vmatpush3.bf16.msra.mxu0 %v1084_v22 }
  0x1d   : > { %992 = vmatpush3.bf16.msra.mxu1 %v1085_v23  ;;  %953 = vmatprep.subr.bf16.mxu0 %v1086_v24 }
  0x1e   : > { %993 = vmatprep.subr.bf16.mxu1 %v1087_v25 }
  0x20   : > { %954 = vmatpush3.bf16.msra.mxu0 %v1088_v26 }
  0x21   : > { %994 = vmatpush3.bf16.msra.mxu1 %v1089_v27  ;;  %955 = vmatprep.subr.bf16.mxu0 %v1090_v28 }
  0x22   : > { %995 = vmatprep.subr.bf16.mxu1 %v1091_v29 }
  0x24   : > { %956 = vmatpush3.bf16.msra.mxu0 %v1092_v30 }
  0x25   : > { %996 = vmatpush3.bf16.msra.mxu1 %v1093_v31  ;;  %1029 = vmatprep.subr.bf16.mxu0 %v1100_v36 }
  0x26   : > { %1045 = vmatprep.subr.bf16.mxu1 %v1100_v36 }
  0x27   : > { %643 = vmatmul.mubr.bf16.vlgmr.msra.gmra.mrb[0].mxu0 %v1094_v32 }
  0x28   : > { %708 = vmatmul.mubr.bf16.vlgmr.msra.gmra.mrb[0].mxu1 %v1097_v34  ;;  %1030 = vmatpush3.bf16.msra.mxu0 %v1100_v36 }
  0x29   : > { %1049 = vmatpush3.bf16.msra.mxu1 %v1100_v36  ;;  %650 = vmatprep.mubr.bf16.mxu0 %v1101_v37 }
  0x2a   : > { %715 = vmatprep.mubr.bf16.mxu1 %v1103_v38  ;;  %1031 = vmatprep.subr.bf16.mxu0 %v1107_v39 }
  0x2b   : > { %1046 = vmatprep.subr.bf16.mxu1 %v1107_v39 }
  0x2c   : > { %1032 = vmatpush3.bf16.msra.mxu0 %v1107_v39 }
  0x2d   : > { %1050 = vmatpush3.bf16.msra.mxu1 %v1107_v39  ;;  %1033 = vmatprep.subr.bf16.mxu0 %v1114_v44 }
  0x2e   : > { %1047 = vmatprep.subr.bf16.mxu1 %v1114_v44 }
  0x2f   : > { %651 = vmatmul.mubr.bf16.gmra.mrb[4].mxu0 %v1105_v40 }
  0x30   : > { %716 = vmatmul.mubr.bf16.gmra.mrb[4].mxu1 %v1106_v41  ;;  %658 = vmatprep.mubr.bf16.mxu0 %v1108_v42 }
  0x31   : > { %723 = vmatprep.mubr.bf16.mxu1 %v1110_v43  ;;  %1034 = vmatpush3.bf16.msra.mxu0 %v1114_v44 }
  0x32   : > { %1051 = vmatpush3.bf16.msra.mxu1 %v1114_v44  ;;  %1035 = vmatprep.subr.bf16.mxu0 %v1121_v45 }
  0x33   : > { %1048 = vmatprep.subr.bf16.mxu1 %v1121_v45 }
  0x35   : > { %1036 = vmatpush3.bf16.msra.mxu0 %v1121_v45 }
  0x36   : > { %1052 = vmatpush3.bf16.msra.mxu1 %v1121_v45 }
  0x37   : > { %659 = vmatmul.mubr.bf16.gmra.mrb[8].mxu0 %v1112_v46 }
  0x38   : > { %724 = vmatmul.mubr.bf16.gmra.mrb[8].mxu1 %v1113_v47  ;;  %666 = vmatprep.mubr.bf16.mxu0 %v1115_v48 }
  0x39   : > { %731 = vmatprep.mubr.bf16.mxu1 %v1117_v49 }
  0x3f   : > { %667 = vmatmul.mubr.bf16.gmra.mrb[12].mxu0 %v1119_v50 }
  0x40   : > { %732 = vmatmul.mubr.bf16.gmra.mrb[12].mxu1 %v1120_v51  ;;  %1037 = vmatprep.mubr.msk.bf16.mxu0 %vm597_vm0, %v1122_v52 }
  0x41   : > { %1041 = vmatprep.mubr.msk.bf16.mxu1 %vm597_vm0, %v1123_v53 }
  0x47   : > { %1038 = vmatmul.mubr.msk.bf16.vlgmr.msra.gmra.mrb[16].mxu0 %vm597_vm0, %v1124_v54 }
  0x48   : > { %1042 = vmatmul.mubr.msk.bf16.vlgmr.msra.gmra.mrb[16].mxu1 %vm597_vm0, %v1125_v55 }
  0xfa   : > { %v957_v56 = vpop.f32.mrb[0].mxu0 }
  0xfb   : > { %v997_v57 = vpop.f32.mrb[0].mxu1  ;;  %v958_v59 = vpop.f32.mrb[1].mxu0 }
  0xfc   : > { %v959_v60 = vadd.f32 %v958_v59, %v957_v56  ;;  %v998_v61 = vpop.f32.mrb[1].mxu1  ;;  %v960_v62 = vpop.f32.mrb[2].mxu0 }
  0xfd   : > { %v999_v63 = vadd.f32 %v998_v61, %v997_v57  ;;  %v1000_v0 = vpop.f32.mrb[2].mxu1  ;;  %v961_v1 = vpop.f32.mrb[3].mxu0 }
  0xfe   : > { %v645_v2 = vadd.f32 %v959_v60, %v878_v58  ;;  %v962_v3 = vadd.f32 %v961_v1, %v960_v62  ;;  %v1001_v4 = vpop.f32.mrb[3].mxu1 }
  0xff   : > { %v1002_v5 = vadd.f32 %v1001_v4, %v1000_v0 }
 0x100   : > { %v648_v6 = vadd.f32 %v962_v3, %v878_v58  ;;  %v710_v7 = vadd.f32 %v999_v63, %v645_v2 }
 0x102   : > { %v963_v8 = vpop.f32.mrb[4].mxu0  ;;  %v1303_v9 = vadd.f32 %v1002_v5, %v648_v6 }
 0x103   : > { %v1003_v10 = vpop.f32.mrb[4].mxu1  ;;  %v964_v11 = vpop.f32.mrb[5].mxu0 }
 0x104   : > { %v965_v12 = vadd.f32 %v964_v11, %v963_v8  ;;  %v1004_v13 = vpop.f32.mrb[5].mxu1  ;;  %v966_v14 = vpop.f32.mrb[6].mxu0 }
 0x105   : > { %v1005_v15 = vadd.f32 %v1004_v13, %v1003_v10  ;;  %v1006_v16 = vpop.f32.mrb[6].mxu1  ;;  %v967_v17 = vpop.f32.mrb[7].mxu0 }
 0x106   : > { %v653_v18 = vadd.f32 %v965_v12, %v878_v58  ;;  %v968_v19 = vadd.f32 %v967_v17, %v966_v14  ;;  %v1007_v20 = vpop.f32.mrb[7].mxu1 }
 0x107   : > { %v1008_v21 = vadd.f32 %v1007_v20, %v1006_v16 }
 0x108   : > { %v656_v22 = vadd.f32 %v968_v19, %v878_v58  ;;  %v718_v23 = vadd.f32 %v1005_v15, %v653_v18 }
 0x10a   : > { %v969_v24 = vpop.f32.mrb[8].mxu0  ;;  %v721_v25 = vadd.f32 %v1008_v21, %v656_v22 }
 0x10b   : > { %v1009_v26 = vpop.f32.mrb[8].mxu1  ;;  %v970_v27 = vpop.f32.mrb[9].mxu0 }
 0x10c   : > { %v971_v28 = vadd.f32 %v970_v27, %v969_v24  ;;  %v1010_v29 = vpop.f32.mrb[9].mxu1  ;;  %v972_v30 = vpop.f32.mrb[10].mxu0 }
 0x10d   : > { %v1011_v31 = vadd.f32 %v1010_v29, %v1009_v26  ;;  %v1012_v32 = vpop.f32.mrb[10].mxu1  ;;  %v973_v33 = vpop.f32.mrb[11].mxu0 }
 0x10e   : > { %v661_v34 = vadd.f32 %v971_v28, %v878_v58  ;;  %v974_v35 = vadd.f32 %v973_v33, %v972_v30  ;;  %v1013_v36 = vpop.f32.mrb[11].mxu1 }
 0x10f   : > { %v1014_v37 = vadd.f32 %v1013_v36, %v1012_v32 }
 0x110   : > { %v664_v38 = vadd.f32 %v974_v35, %v878_v58  ;;  %v726_v39 = vadd.f32 %v1011_v31, %v661_v34 }
 0x112   : > { %v975_v40 = vpop.f32.mrb[12].mxu0  ;;  %v729_v41 = vadd.f32 %v1014_v37, %v664_v38 }
 0x113   : > { %v1015_v42 = vpop.f32.mrb[12].mxu1  ;;  %v976_v43 = vpop.f32.mrb[13].mxu0 }
 0x114   : > { %v977_v44 = vadd.f32 %v976_v43, %v975_v40  ;;  %v1016_v45 = vpop.f32.mrb[13].mxu1  ;;  %v978_v46 = vpop.f32.mrb[14].mxu0 }
 0x115   : > { %v1017_v47 = vadd.f32 %v1016_v45, %v1015_v42  ;;  %v1018_v48 = vpop.f32.mrb[14].mxu1  ;;  %v979_v49 = vpop.f32.mrb[15].mxu0 }
 0x116   : > { %v669_v50 = vadd.f32 %v977_v44, %v878_v58  ;;  %v980_v51 = vadd.f32 %v979_v49, %v978_v46  ;;  %v1019_v52 = vpop.f32.mrb[15].mxu1 }
 0x117   : > { %v1020_v53 = vadd.f32 %v1019_v52, %v1018_v48 }
 0x118   : > { %v672_v54 = vadd.f32 %v980_v51, %v878_v58  ;;  %v734_v55 = vadd.f32 %v1017_v47, %v669_v50 }
 0x11a   : > { %v1039_v56 = vpop.f32.mrb[16].mxu0  ;;  %v737_v57 = vadd.f32 %v1020_v53, %v672_v54 }
 0x11b   : > { %v783_v59 = vadd.f32 %v1039_v56, %v718_v23  ;;  %v1043_v60 = vpop.f32.mrb[16].mxu1  ;;  %v774_v61 = vpop.f32.mrb[17].mxu0 }
 0x11c   : > { %v799_v62 = vadd.f32 %v1043_v60, %v734_v55  ;;  %v775_v63 = vadd.f32 %v774_v61, %v710_v7  ;;  %v790_v0 = vpop.f32.mrb[17].mxu1  ;;  %v1040_v1 = vpop.f32.mrb[18].mxu0 }
 0x11d   : > { %807 = vst [vmem:[%s175_s21 + $0x10] sm:$0xff] %v783_v59  ;;  %v791_v2 = vadd.f32 %v790_v0, %v726_v39  ;;  %v786_v3 = vadd.f32 %v1040_v1, %v721_v25  ;;  %v1044_v4 = vpop.f32.mrb[18].mxu1  ;;  %v777_v5 = vpop.f32.mrb[19].mxu0 }
 0x11e   : > { %811 = vst [vmem:[%s175_s21 + $0x30] sm:$0xff] %v799_v62  ;;  %805 = vst [vmem:[%s175_s21] sm:$0xff] %v775_v63  ;;  %v802_v58 = vadd.f32 %v1044_v4, %v737_v57  ;;  %v778_v6 = vadd.f32 %v777_v5, %v1303_v9  ;;  %v793_v8 = vpop.f32.mrb[19].mxu1 }
 0x11f   : > { %809 = vst [vmem:[%s175_s21 + $0x20] sm:$0xff] %v791_v2  ;;  %808 = vst [vmem:[%s175_s21 + $0x18] sm:$0xff] %v786_v3  ;;  %v794_v10 = vadd.f32 %v793_v8, %v729_v41 }
 0x120   : > { %812 = vst [vmem:[%s175_s21 + $0x38] sm:$0xff] %v802_v58  ;;  %806 = vst [vmem:[%s175_s21 + $0x8] sm:$0xff] %v778_v6 }
 0x121   : > { %810 = vst [vmem:[%s175_s21 + $0x28] sm:$0xff] %v794_v10 }
 0x122 PF: > { %s13_s12 = sadd.s32 1, %s1132_s12  }
 0x123   : > { %p10_p4 = scmp.ge.s32.totalorder %s13_s12, 4  }
 0x125   :  { %12 = sbr.rel (!%p10_p4) target bundleno = 1 (0x1), region = 62 }

</bundles_post_ra>
